<compile_context>
chip_gen: v7x
topology: tpu7x:2x2x1
jax: 0.10.0
libtpu: 0.0.40
codegen_flags: <defaults>
</compile_context>

<pallas_src>
import functools

import jax
import jax.numpy as jnp
from jax.experimental import pallas as pl
from jax.experimental.pallas import tpu as pltpu

LANES = 128          # every channel axis is padded to the 128-lane vreg width
EPS = 1e-5


# ---------------------------------------------------------------------------
# In-kernel helpers
# ---------------------------------------------------------------------------
def _mish(x):
    # exact mish in f32: x * tanh(softplus(x)); stable softplus form.
    sp = jnp.maximum(x, 0.0) + jnp.log(1.0 + jnp.exp(-jnp.abs(x)))
    return x * jnp.tanh(sp)


def _zero_halo(slab_ref, *, pad, hw, width):
    # Zero ONLY the top/bottom halo strips; the interior rows are fully
    # overwritten by the group stores every step, so no full-tile zero pass.
    z = jnp.zeros((pad + 8, width), jnp.float32)
    slab_ref[0:pad + 8, :] = z
    slab_ref[pad + hw - 8:2 * pad + hw, :] = z


def _conv3x3(slab_ref, x_flat, w_ref, bias, keep_g0, keep_g2, *, H, W):
    """3x3 'same' conv of a flattened (H*W, LANES) activation slab.

    slab_ref : VMEM scratch (W + H*W + W, 3*LANES) f32; three column groups
               (lane offsets 0/128/256) hold the input shifted so that reading
               group dx at row r yields x[r + dx - 1]:
                 group 0 stored at rows pad+1..   (left  neighbour, w-1)
                 group 1 stored at rows pad..     (centre)
                 group 2 stored at rows pad-1..   (right neighbour, w+1)
    w_ref    : (3, 3*LANES, LANES) bf16; w_ref[dy][dx*LANES + c, o] = K[dy,dx,c,o]
    bias     : (1, LANES) f32 (BatchNorm folded)
    keep_g0  : (H*W, 1) f32 mask, 0 where source col == W-1 (else 1)
    keep_g2  : (H*W, 1) f32 mask, 0 where source col == 0   (else 1)

    Horizontal out-of-range taps are zeroed by the keep-masks at store time;
    vertical out-of-range taps land in the pre-zeroed halo strips.  All nine
    tap reads collapse to THREE sublane-/lane-aligned (H*W, 3*LANES) reads and
    THREE K=3*LANES MXU matmuls (bf16 operands, f32 accumulation).
    """
    HW = H * W
    pad = W
    C = LANES
    slab_ref[pad + 1:pad + 1 + HW, 0:C] = x_flat * keep_g0
    slab_ref[pad:pad + HW, C:2 * C] = x_flat
    slab_ref[pad - 1:pad - 1 + HW, 2 * C:3 * C] = x_flat * keep_g2

    acc = bias                                   # (1, LANES) f32, broadcasts
    for dy in range(3):                          # aligned row starts: 0, W, 2W
        patch = slab_ref[dy * W:dy * W + HW, :].astype(jnp.bfloat16)
        acc = acc + jnp.dot(patch, w_ref[dy],
                            preferred_element_type=jnp.float32)
    return acc                                   # (HW, LANES) f32 pre-activation


def fused_kernel(x_ref, w1_ref, b1_ref, w2_ref, b2_ref, sel_ref, fcw_ref,
                 fcb_ref, o_ref, slab1_ref, slab2_ref, *, H, W, B_blk):
    HW = H * W
    pad = W

    _zero_halo(slab1_ref, pad=pad, hw=HW, width=3 * LANES)
    _zero_halo(slab2_ref, pad=pad, hw=HW, width=3 * LANES)

    # Column-boundary keep masks, shared by both layers and all images.
    w_idx = jax.lax.broadcasted_iota(jnp.int32, (HW, 1), 0) % W
    keep_g0 = (w_idx != W - 1).astype(jnp.float32)
    keep_g2 = (w_idx != 0).astype(jnp.float32)

    rows = []
    for b in range(B_blk):                       # images per grid step
        a1 = _mish(_conv3x3(slab1_ref, x_ref[b], w1_ref, b1_ref[...],
                            keep_g0, keep_g2, H=H, W=W))
        a2 = _mish(_conv3x3(slab2_ref, a1, w2_ref, b2_ref[...],
                            keep_g0, keep_g2, H=H, W=W))
        # stride-2 subsample + spatial mean folded into ONE MXU contraction
        # with a host-precomputed (1, H*W) selection row.
        pooled = jnp.dot(sel_ref[...].astype(jnp.bfloat16),
                         a2.astype(jnp.bfloat16),
                         preferred_element_type=jnp.float32)         # (1, LANES)
        rows.append(jnp.dot(pooled.astype(jnp.bfloat16), fcw_ref[...],
                            preferred_element_type=jnp.float32) + fcb_ref[...])
    o_ref[...] = rows[0] if B_blk == 1 else jnp.concatenate(rows, axis=0)


# ---------------------------------------------------------------------------
# Host-side wrapper
# ---------------------------------------------------------------------------
def _make_sel_row(H, W):
    hh, ww = jnp.meshgrid(jnp.arange(H), jnp.arange(W), indexing="ij")
    keep = ((hh % 2) == 0) & ((ww % 2) == 0)
    inv_n = 1.0 / float((H // 2) * (W // 2))
    return jnp.where(keep, inv_n, 0.0).astype(jnp.float32).reshape(1, H * W)


def _prepare_inputs(x_nchw, images_per_step):
    N, Cin, H, W = x_nchw.shape
    x = jnp.transpose(x_nchw, (0, 2, 3, 1)).astype(jnp.float32)      # NHWC
    x = x.reshape(N, H * W, Cin)
    x = jnp.pad(x, ((0, 0), (0, 0), (0, LANES - Cin)))                # lane pad
    return x.reshape(N // images_per_step, images_per_step, H * W, LANES)


def fancy_featmap_to_latent(fp, x_nchw, *, images_per_step=1):
    """fp: folded+padded params (see fold_and_pad_params); x_nchw: (N,C,H,W)."""
    N, Cin, H, W = x_nchw.shape
    Z = fp["z_dims"]
    assert W % 8 == 0 and H % 2 == 0 and W % 2 == 0
    assert Cin <= LANES and Z <= LANES
    assert N % images_per_step == 0
    B_blk = images_per_step
    G = N // B_blk
    HW = H * W

    x = _prepare_inputs(x_nchw, B_blk)           # (G, B_blk, HW, 128) f32
    sel = _make_sel_row(H, W)

    kern = functools.partial(fused_kernel, H=H, W=W, B_blk=B_blk)

    def rep(shape):                              # replicated (weight-like) input
        nd = len(shape)
        return pl.BlockSpec(shape, lambda n: (0,) * nd)

    out = pl.pallas_call(
        kern,
        out_shape=jax.ShapeDtypeStruct((G, B_blk, LANES), jnp.float32),
        grid_spec=pltpu.PrefetchScalarGridSpec(
            num_scalar_prefetch=0,
            grid=(G,),
            in_specs=[
                pl.BlockSpec((None, B_blk, HW, LANES), lambda n: (n, 0, 0, 0)),
                rep((3, 3 * LANES, LANES)),   # conv1 weight (BN folded, bf16)
                rep((1, LANES)),              # conv1 bias   (BN folded)
                rep((3, 3 * LANES, LANES)),   # conv2 weight (BN folded, bf16)
                rep((1, LANES)),              # conv2 bias   (BN folded)
                rep((1, HW)),                 # stride-2 + mean selection row
                rep((LANES, LANES)),          # FC weight (pre-scaled, transposed, bf16)
                rep((1, LANES)),              # FC bias
            ],
            out_specs=pl.BlockSpec((None, B_blk, LANES), lambda n: (n, 0, 0)),
            scratch_shapes=[
                pltpu.VMEM((HW + 2 * W, 3 * LANES), jnp.float32),   # layer-1 slab
                pltpu.VMEM((HW + 2 * W, 3 * LANES), jnp.float32),   # layer-2 slab
            ],
        ),
        compiler_params=pltpu.CompilerParams(
            dimension_semantics=("parallel",),   # megacore / both v7x TCs
            vmem_limit_bytes=32 * 1024 * 1024,   # safe on v5e/v6e/v7x budgets
        ),
    )(x, fp["w1"], fp["b1"], fp["w2"], fp["b2"], sel, fp["fc_w"], fp["fc_b"])
    return out.reshape(N, LANES)[:, :Z]          # drop lane padding outside


# ---------------------------------------------------------------------------
# Host-side one-time precompute: fold BatchNorm(eval) into conv weight/bias,
# zero-pad all channel axes to 128 lanes, lay conv weights out as
# (3, 3*128, 128) bf16 blocks for the 3-matmul conv, cast MXU operands to bf16.
# ---------------------------------------------------------------------------
def fold_and_pad_params(p, eps=EPS):
    Cin = p["w1"].shape[0] // 9                  # w1 rows ordered (dy, dx, ci)
    Z = p["w1"].shape[1]

    def fold(w, b, g, be, m, v):
        s = g * jax.lax.rsqrt(v + eps)           # (1, Cout)
        return w * s, (b - m) * s + be

    def pad_weight(w, cin):
        w = w.reshape(3, 3, cin, Z)
        w = jnp.pad(w, ((0, 0), (0, 0), (0, LANES - cin), (0, LANES - Z)))
        return w.reshape(3, 3 * LANES, LANES).astype(jnp.bfloat16)

    def pad_bias(b):
        return jnp.pad(b, ((0, 0), (0, LANES - Z))).astype(jnp.float32)

    w1f, b1f = fold(p["w1"], p["b1"], p["g1"], p["be1"], p["m1"], p["v1"])
    w2f, b2f = fold(p["w2"], p["b2"], p["g2"], p["be2"], p["m2"], p["v2"])
    fc_w = jnp.pad(p["fc_w_t"], ((0, LANES - Z), (0, LANES - Z))).astype(jnp.bfloat16)
    fc_b = jnp.pad(p["fc_b"], ((0, 0), (0, LANES - Z))).astype(jnp.float32)
    return dict(w1=pad_weight(w1f, Cin), b1=pad_bias(b1f),
                w2=pad_weight(w2f, Z), b2=pad_bias(b2f),
                fc_w=fc_w, fc_b=fc_b, z_dims=Z)


# ---------------------------------------------------------------------------
# Deterministic synthetic parameters (no checkpoint loading).
# ---------------------------------------------------------------------------
def init_params(key, nc_in, z_dims):
    ks = jax.random.split(key, 16)

    def conv_params(kw, kb, cin, cout):
        scale = (9.0 * cin) ** -0.5
        w = jax.random.normal(kw, (3, 3, cin, cout), jnp.float32) * scale
        b = jax.random.normal(kb, (1, cout), jnp.float32) * 0.01
        return w.reshape(9 * cin, cout), b       # row = (ky*3 + kx)*cin + ci

    def bn_params(kg, kb, km, kv, c):
        g = 1.0 + 0.1 * jax.random.normal(kg, (1, c), jnp.float32)
        be = 0.1 * jax.random.normal(kb, (1, c), jnp.float32)
        m = 0.1 * jax.random.normal(km, (1, c), jnp.float32)
        v = jax.random.uniform(kv, (1, c), jnp.float32, 0.5, 1.5)
        return g, be, m, v

    w1, b1 = conv_params(ks[0], ks[1], nc_in, z_dims)
    g1, be1, m1, v1 = bn_params(ks[2], ks[3], ks[4], ks[5], z_dims)
    w2, b2 = conv_params(ks[6], ks[7], z_dims, z_dims)
    g2, be2, m2, v2 = bn_params(ks[8], ks[9], ks[10], ks[11], z_dims)

    # StyleGAN2 FullyConnectedLayer: weight (out,in) ~ N(0,1), gain = 1/sqrt(in).
    fc_w = jax.random.normal(ks[12], (z_dims, z_dims), jnp.float32)
    fc_w_t = (fc_w * (1.0 / (z_dims ** 0.5))).T              # y = x @ w_t + b
    fc_b = 0.01 * jax.random.normal(ks[13], (1, z_dims), jnp.float32)

    return dict(w1=w1, b1=b1, g1=g1, be1=be1, m1=m1, v1=v1,
                w2=w2, b2=b2, g2=g2, be2=be2, m2=m2, v2=v2,
                fc_w_t=fc_w_t, fc_b=fc_b)


# ---------------------------------------------------------------------------
# Pure-JAX / XLA reference (unfused, f32, true stride-2 conv, exact mish).
# ---------------------------------------------------------------------------
def reference_forward(p, x_nchw, eps=EPS):
    x = jnp.transpose(x_nchw, (0, 2, 3, 1)).astype(jnp.float32)

    def conv_bn_mish(x, w, b, g, be, m, v, stride):
        cout = w.shape[-1]
        cin = w.shape[0] // 9
        w4 = w.reshape(3, 3, cin, cout)                      # HWIO
        y = jax.lax.conv_general_dilated(
            x, w4, window_strides=(stride, stride), padding=((1, 1), (1, 1)),
            dimension_numbers=("NHWC", "HWIO", "NHWC"))
        y = y + b.reshape(1, 1, 1, cout)
        y = (y - m.reshape(1, 1, 1, cout)) * (
            g.reshape(1, 1, 1, cout) * jax.lax.rsqrt(v.reshape(1, 1, 1, cout) + eps)
        ) + be.reshape(1, 1, 1, cout)
        return y * jnp.tanh(jax.nn.softplus(y))

    x = conv_bn_mish(x, p["w1"], p["b1"], p["g1"], p["be1"], p["m1"], p["v1"], 1)
    x = conv_bn_mish(x, p["w2"], p["b2"], p["g2"], p["be2"], p["m2"], p["v2"], 2)
    pooled = jnp.mean(x, axis=(1, 2))
    return pooled @ p["fc_w_t"] + p["fc_b"]


if __name__ == "__main__":
    key = jax.random.PRNGKey(0)
    k_param, k_x = jax.random.split(key)

    N, C, H, W = 2, 4, 16, 16        # batch=2, nc_in=4, 16x16 feature map
    Z = 32                           # z_dims

    params = init_params(k_param, C, Z)
    folded = fold_and_pad_params(params)      # one-time host-side fold + pad
    x = jax.random.normal(k_x, (N, C, H, W), jnp.float32)   # NCHW like PyTorch

    ref = jax.block_until_ready(reference_forward(params, x))

    # One image per grid step: grid = (2,) "parallel" (keeps both v7x TCs busy).
    out = jax.block_until_ready(fancy_featmap_to_latent(folded, x,
                                                        images_per_step=1))
    assert out.shape == (N, Z), out.shape
    assert bool(jnp.all(jnp.isfinite(out)))
    err = float(jnp.max(jnp.abs(out - ref)))
    # bf16 MXU operands + accumulation-order differences -> loose tolerance.
    assert err < 4e-2, f"images_per_step=1: max abs err vs reference = {err}"

    # Batched path: two images per grid step (amortizes per-step overhead).
    out2 = jax.block_until_ready(fancy_featmap_to_latent(folded, x,
                                                         images_per_step=2))
    err2 = float(jnp.max(jnp.abs(out2 - ref)))
    assert err2 < 4e-2, f"images_per_step=2: max abs err vs reference = {err2}"

    print("KERNEL_OK")
</pallas_src>

<mosaic_0001>
module attributes {stable_mosaic.version = 11 : i64} {
  func.func @fused_kernel(%arg0: i32, %arg1: memref<1x1x256x128xf32, #tpu.memory_space<vmem>>, %arg2: memref<3x384x128xbf16, #tpu.memory_space<vmem>>, %arg3: memref<1x128xf32, #tpu.memory_space<vmem>>, %arg4: memref<3x384x128xbf16, #tpu.memory_space<vmem>>, %arg5: memref<1x128xf32, #tpu.memory_space<vmem>>, %arg6: memref<1x256xf32, #tpu.memory_space<vmem>>, %arg7: memref<128x128xbf16, #tpu.memory_space<vmem>>, %arg8: memref<1x128xf32, #tpu.memory_space<vmem>>, %arg9: memref<1x1x128xf32, #tpu.memory_space<vmem>>, %arg10: memref<288x384xf32, #tpu.memory_space<vmem>>, %arg11: memref<288x384xf32, #tpu.memory_space<vmem>>) attributes {dimension_semantics = [#tpu.dimension_semantics<parallel>], iteration_bounds = array<i64: 2>, scalar_prefetch = 0 : i64, scratch_operands = 2 : i64, tpu.core_type = #tpu.core_type<tc>, window_params = [{transform_indices = @transform_0, window_bounds = array<i64: 1, 1, 256, 128>}, {pipeline_mode = #tpu.pipeline_mode<synchronous>, transform_indices = @transform_1, window_bounds = array<i64: 3, 384, 128>}, {pipeline_mode = #tpu.pipeline_mode<synchronous>, transform_indices = @transform_2, window_bounds = array<i64: 1, 128>}, {pipeline_mode = #tpu.pipeline_mode<synchronous>, transform_indices = @transform_3, window_bounds = array<i64: 3, 384, 128>}, {pipeline_mode = #tpu.pipeline_mode<synchronous>, transform_indices = @transform_4, window_bounds = array<i64: 1, 128>}, {pipeline_mode = #tpu.pipeline_mode<synchronous>, transform_indices = @transform_5, window_bounds = array<i64: 1, 256>}, {pipeline_mode = #tpu.pipeline_mode<synchronous>, transform_indices = @transform_6, window_bounds = array<i64: 128, 128>}, {pipeline_mode = #tpu.pipeline_mode<synchronous>, transform_indices = @transform_7, window_bounds = array<i64: 1, 128>}, {transform_indices = @transform_8, window_bounds = array<i64: 1, 1, 128>}]} {
    %cst = arith.constant 0.000000e+00 : f32
    %0 = vector.broadcast %cst : f32 to vector<24x384xf32>
    %c0 = arith.constant 0 : index
    %c0_0 = arith.constant 0 : index
    %1 = vector.load %arg10[%c0, %c0_0] : memref<288x384xf32, #tpu.memory_space<vmem>>, vector<24x384xf32>
    tpu.vector_store %arg10[%c0, %c0_0], %0 {strides = array<i32>} : memref<288x384xf32, #tpu.memory_space<vmem>>, vector<24x384xf32>,
    %c264 = arith.constant 264 : index
    %c0_1 = arith.constant 0 : index
    %2 = vector.load %arg10[%c264, %c0_1] : memref<288x384xf32, #tpu.memory_space<vmem>>, vector<24x384xf32>
    tpu.vector_store %arg10[%c264, %c0_1], %0 {strides = array<i32>} : memref<288x384xf32, #tpu.memory_space<vmem>>, vector<24x384xf32>,
    %cst_2 = arith.constant 0.000000e+00 : f32
    %3 = vector.broadcast %cst_2 : f32 to vector<24x384xf32>
    %c0_3 = arith.constant 0 : index
    %c0_4 = arith.constant 0 : index
    %4 = vector.load %arg11[%c0_3, %c0_4] : memref<288x384xf32, #tpu.memory_space<vmem>>, vector<24x384xf32>
    tpu.vector_store %arg11[%c0_3, %c0_4], %3 {strides = array<i32>} : memref<288x384xf32, #tpu.memory_space<vmem>>, vector<24x384xf32>,
    %c264_5 = arith.constant 264 : index
    %c0_6 = arith.constant 0 : index
    %5 = vector.load %arg11[%c264_5, %c0_6] : memref<288x384xf32, #tpu.memory_space<vmem>>, vector<24x384xf32>
    tpu.vector_store %arg11[%c264_5, %c0_6], %3 {strides = array<i32>} : memref<288x384xf32, #tpu.memory_space<vmem>>, vector<24x384xf32>,
    %6 = tpu.iota {dimensions = array<i32: 0>} : vector<256x1xi32>
    %c16_i32 = arith.constant 16 : i32
    %c0_i32 = arith.constant 0 : i32
    %7 = arith.cmpi eq, %c16_i32, %c0_i32 : i32
    %c1_i32 = arith.constant 1 : i32
    %8 = arith.select %7, %c1_i32, %c16_i32 : i32
    %9 = vector.broadcast %8 : i32 to vector<256x1xi32>
    %10 = arith.remsi %6, %9 : vector<256x1xi32>
    %c0_i32_7 = arith.constant 0 : i32
    %11 = vector.broadcast %c0_i32_7 : i32 to vector<256x1xi32>
    %12 = arith.cmpi ne, %10, %11 : vector<256x1xi32>
    %c0_i32_8 = arith.constant 0 : i32
    %13 = vector.broadcast %c0_i32_8 : i32 to vector<256x1xi32>
    %14 = arith.cmpi slt, %10, %13 : vector<256x1xi32>
    %c0_i32_9 = arith.constant 0 : i32
    %15 = arith.cmpi slt, %8, %c0_i32_9 : i32
    %16 = vector.broadcast %15 : i1 to vector<256x1xi1>
    %17 = vector.broadcast %16 : vector<256x1xi1> to vector<256x1xi1>
    %18 = arith.xori %14, %17 : vector<256x1xi1>
    %19 = arith.andi %18, %12 : vector<256x1xi1>
    %20 = vector.broadcast %8 : i32 to vector<256x1xi32>
    %21 = arith.addi %10, %20 : vector<256x1xi32>
    %22 = arith.select %19, %21, %10 : vector<256x1xi1>, vector<256x1xi32>
    %c15_i32 = arith.constant 15 : i32
    %23 = vector.broadcast %c15_i32 : i32 to vector<256x1xi32>
    %24 = arith.cmpi ne, %22, %23 : vector<256x1xi32>
    %25 = arith.extui %24 : vector<256x1xi1> to vector<256x1xi32>
    %26 = arith.sitofp %25 : vector<256x1xi32> to vector<256x1xf32>
    %c0_i32_10 = arith.constant 0 : i32
    %27 = vector.broadcast %c0_i32_10 : i32 to vector<256x1xi32>
    %28 = arith.cmpi ne, %22, %27 : vector<256x1xi32>
    %29 = arith.extui %28 : vector<256x1xi1> to vector<256x1xi32>
    %30 = arith.sitofp %29 : vector<256x1xi32> to vector<256x1xf32>
    %c0_11 = arith.constant 0 : index
    %c0_12 = arith.constant 0 : index
    %c0_13 = arith.constant 0 : index
    %c0_14 = arith.constant 0 : index
    %31 = vector.load %arg1[%c0_11, %c0_12, %c0_13, %c0_14] : memref<1x1x256x128xf32, #tpu.memory_space<vmem>>, vector<1x1x256x128xf32>
    %32 = vector.shape_cast %31 : vector<1x1x256x128xf32> to vector<256x128xf32>
    %c0_15 = arith.constant 0 : index
    %c0_16 = arith.constant 0 : index
    %33 = vector.load %arg3[%c0_15, %c0_16] : memref<1x128xf32, #tpu.memory_space<vmem>>, vector<1x128xf32>
    %34 = vector.broadcast %26 : vector<256x1xf32> to vector<256x128xf32>
    %35 = arith.mulf %32, %34 : vector<256x128xf32>
    %c17 = arith.constant 17 : index
    %c0_17 = arith.constant 0 : index
    %36 = vector.load %arg10[%c17, %c0_17] : memref<288x384xf32, #tpu.memory_space<vmem>>, vector<256x128xf32>
    tpu.vector_store %arg10[%c17, %c0_17], %35 {strides = array<i32>} : memref<288x384xf32, #tpu.memory_space<vmem>>, vector<256x128xf32>,
    %c16 = arith.constant 16 : index
    %c128 = arith.constant 128 : index
    %37 = vector.load %arg10[%c16, %c128] : memref<288x384xf32, #tpu.memory_space<vmem>>, vector<256x128xf32>
    tpu.vector_store %arg10[%c16, %c128], %32 {strides = array<i32>} : memref<288x384xf32, #tpu.memory_space<vmem>>, vector<256x128xf32>,
    %38 = vector.broadcast %30 : vector<256x1xf32> to vector<256x128xf32>
    %39 = arith.mulf %32, %38 : vector<256x128xf32>
    %c15 = arith.constant 15 : index
    %c256 = arith.constant 256 : index
    %40 = vector.load %arg10[%c15, %c256] : memref<288x384xf32, #tpu.memory_space<vmem>>, vector<256x128xf32>
    tpu.vector_store %arg10[%c15, %c256], %39 {strides = array<i32>} : memref<288x384xf32, #tpu.memory_space<vmem>>, vector<256x128xf32>,
    %c0_18 = arith.constant 0 : index
    %c0_19 = arith.constant 0 : index
    %41 = vector.load %arg10[%c0_18, %c0_19] : memref<288x384xf32, #tpu.memory_space<vmem>>, vector<256x384xf32>
    %42 = arith.truncf %41 : vector<256x384xf32> to vector<256x384xbf16>
    %c0_20 = arith.constant 0 : index
    %c0_21 = arith.constant 0 : index
    %c0_22 = arith.constant 0 : index
    %43 = vector.load %arg2[%c0_20, %c0_21, %c0_22] : memref<3x384x128xbf16, #tpu.memory_space<vmem>>, vector<1x384x128xbf16>
    %44 = vector.shape_cast %43 : vector<1x384x128xbf16> to vector<384x128xbf16>
    %cst_23 = arith.constant dense<0.000000e+00> : vector<256x128xf32>
    %45 = tpu.matmul %42, %44, %cst_23 {dimension_numbers = #tpu.dot_dimension_numbers<[1], [0], [0], [1], [0, 0, 1, 1], [], []>} : vector<256x384xbf16>, vector<384x128xbf16>, vector<256x128xf32> -> vector<256x128xf32>
    %46 = vector.broadcast %33 : vector<1x128xf32> to vector<256x128xf32>
    %47 = arith.addf %46, %45 : vector<256x128xf32>
    %c16_24 = arith.constant 16 : index
    %c0_25 = arith.constant 0 : index
    %48 = vector.load %arg10[%c16_24, %c0_25] : memref<288x384xf32, #tpu.memory_space<vmem>>, vector<256x384xf32>
    %49 = arith.truncf %48 : vector<256x384xf32> to vector<256x384xbf16>
    %c1 = arith.constant 1 : index
    %c0_26 = arith.constant 0 : index
    %c0_27 = arith.constant 0 : index
    %50 = vector.load %arg2[%c1, %c0_26, %c0_27] : memref<3x384x128xbf16, #tpu.memory_space<vmem>>, vector<1x384x128xbf16>
    %51 = vector.shape_cast %50 : vector<1x384x128xbf16> to vector<384x128xbf16>
    %cst_28 = arith.constant dense<0.000000e+00> : vector<256x128xf32>
    %52 = tpu.matmul %49, %51, %cst_28 {dimension_numbers = #tpu.dot_dimension_numbers<[1], [0], [0], [1], [0, 0, 1, 1], [], []>} : vector<256x384xbf16>, vector<384x128xbf16>, vector<256x128xf32> -> vector<256x128xf32>
    %53 = arith.addf %47, %52 : vector<256x128xf32>
    %c32 = arith.constant 32 : index
    %c0_29 = arith.constant 0 : index
    %54 = vector.load %arg10[%c32, %c0_29] : memref<288x384xf32, #tpu.memory_space<vmem>>, vector<256x384xf32>
    %55 = arith.truncf %54 : vector<256x384xf32> to vector<256x384xbf16>
    %c2 = arith.constant 2 : index
    %c0_30 = arith.constant 0 : index
    %c0_31 = arith.constant 0 : index
    %56 = vector.load %arg2[%c2, %c0_30, %c0_31] : memref<3x384x128xbf16, #tpu.memory_space<vmem>>, vector<1x384x128xbf16>
    %57 = vector.shape_cast %56 : vector<1x384x128xbf16> to vector<384x128xbf16>
    %cst_32 = arith.constant dense<0.000000e+00> : vector<256x128xf32>
    %58 = tpu.matmul %55, %57, %cst_32 {dimension_numbers = #tpu.dot_dimension_numbers<[1], [0], [0], [1], [0, 0, 1, 1], [], []>} : vector<256x384xbf16>, vector<384x128xbf16>, vector<256x128xf32> -> vector<256x128xf32>
    %59 = arith.addf %53, %58 : vector<256x128xf32>
    %cst_33 = arith.constant 0.000000e+00 : f32
    %60 = vector.broadcast %cst_33 : f32 to vector<256x128xf32>
    %61 = arith.maximumf %59, %60 : vector<256x128xf32>
    %62 = math.absf %59 : vector<256x128xf32>
    %cst_34 = arith.constant 0.000000e+00 : f32
    %63 = vector.broadcast %cst_34 : f32 to vector<256x128xf32>
    %64 = arith.subf %63, %62 : vector<256x128xf32>
    %65 = math.exp %64 : vector<256x128xf32>
    %cst_35 = arith.constant 1.000000e+00 : f32
    %66 = vector.broadcast %cst_35 : f32 to vector<256x128xf32>
    %67 = arith.addf %66, %65 : vector<256x128xf32>
    %68 = math.log %67 : vector<256x128xf32>
    %69 = arith.addf %61, %68 : vector<256x128xf32>
    %70 = math.tanh %69 : vector<256x128xf32>
    %71 = arith.mulf %59, %70 : vector<256x128xf32>
    %c0_36 = arith.constant 0 : index
    %c0_37 = arith.constant 0 : index
    %72 = vector.load %arg5[%c0_36, %c0_37] : memref<1x128xf32, #tpu.memory_space<vmem>>, vector<1x128xf32>
    %73 = vector.broadcast %26 : vector<256x1xf32> to vector<256x128xf32>
    %74 = arith.mulf %71, %73 : vector<256x128xf32>
    %c17_38 = arith.constant 17 : index
    %c0_39 = arith.constant 0 : index
    %75 = vector.load %arg11[%c17_38, %c0_39] : memref<288x384xf32, #tpu.memory_space<vmem>>, vector<256x128xf32>
    tpu.vector_store %arg11[%c17_38, %c0_39], %74 {strides = array<i32>} : memref<288x384xf32, #tpu.memory_space<vmem>>, vector<256x128xf32>,
    %c16_40 = arith.constant 16 : index
    %c128_41 = arith.constant 128 : index
    %76 = vector.load %arg11[%c16_40, %c128_41] : memref<288x384xf32, #tpu.memory_space<vmem>>, vector<256x128xf32>
    tpu.vector_store %arg11[%c16_40, %c128_41], %71 {strides = array<i32>} : memref<288x384xf32, #tpu.memory_space<vmem>>, vector<256x128xf32>,
    %77 = vector.broadcast %30 : vector<256x1xf32> to vector<256x128xf32>
    %78 = arith.mulf %71, %77 : vector<256x128xf32>
    %c15_42 = arith.constant 15 : index
    %c256_43 = arith.constant 256 : index
    %79 = vector.load %arg11[%c15_42, %c256_43] : memref<288x384xf32, #tpu.memory_space<vmem>>, vector<256x128xf32>
    tpu.vector_store %arg11[%c15_42, %c256_43], %78 {strides = array<i32>} : memref<288x384xf32, #tpu.memory_space<vmem>>, vector<256x128xf32>,
    %c0_44 = arith.constant 0 : index
    %c0_45 = arith.constant 0 : index
    %80 = vector.load %arg11[%c0_44, %c0_45] : memref<288x384xf32, #tpu.memory_space<vmem>>, vector<256x384xf32>
    %81 = arith.truncf %80 : vector<256x384xf32> to vector<256x384xbf16>
    %c0_46 = arith.constant 0 : index
    %c0_47 = arith.constant 0 : index
    %c0_48 = arith.constant 0 : index
    %82 = vector.load %arg4[%c0_46, %c0_47, %c0_48] : memref<3x384x128xbf16, #tpu.memory_space<vmem>>, vector<1x384x128xbf16>
    %83 = vector.shape_cast %82 : vector<1x384x128xbf16> to vector<384x128xbf16>
    %cst_49 = arith.constant dense<0.000000e+00> : vector<256x128xf32>
    %84 = tpu.matmul %81, %83, %cst_49 {dimension_numbers = #tpu.dot_dimension_numbers<[1], [0], [0], [1], [0, 0, 1, 1], [], []>} : vector<256x384xbf16>, vector<384x128xbf16>, vector<256x128xf32> -> vector<256x128xf32>
    %85 = vector.broadcast %72 : vector<1x128xf32> to vector<256x128xf32>
    %86 = arith.addf %85, %84 : vector<256x128xf32>
    %c16_50 = arith.constant 16 : index
    %c0_51 = arith.constant 0 : index
    %87 = vector.load %arg11[%c16_50, %c0_51] : memref<288x384xf32, #tpu.memory_space<vmem>>, vector<256x384xf32>
    %88 = arith.truncf %87 : vector<256x384xf32> to vector<256x384xbf16>
    %c1_52 = arith.constant 1 : index
    %c0_53 = arith.constant 0 : index
    %c0_54 = arith.constant 0 : index
    %89 = vector.load %arg4[%c1_52, %c0_53, %c0_54] : memref<3x384x128xbf16, #tpu.memory_space<vmem>>, vector<1x384x128xbf16>
    %90 = vector.shape_cast %89 : vector<1x384x128xbf16> to vector<384x128xbf16>
    %cst_55 = arith.constant dense<0.000000e+00> : vector<256x128xf32>
    %91 = tpu.matmul %88, %90, %cst_55 {dimension_numbers = #tpu.dot_dimension_numbers<[1], [0], [0], [1], [0, 0, 1, 1], [], []>} : vector<256x384xbf16>, vector<384x128xbf16>, vector<256x128xf32> -> vector<256x128xf32>
    %92 = arith.addf %86, %91 : vector<256x128xf32>
    %c32_56 = arith.constant 32 : index
    %c0_57 = arith.constant 0 : index
    %93 = vector.load %arg11[%c32_56, %c0_57] : memref<288x384xf32, #tpu.memory_space<vmem>>, vector<256x384xf32>
    %94 = arith.truncf %93 : vector<256x384xf32> to vector<256x384xbf16>
    %c2_58 = arith.constant 2 : index
    %c0_59 = arith.constant 0 : index
    %c0_60 = arith.constant 0 : index
    %95 = vector.load %arg4[%c2_58, %c0_59, %c0_60] : memref<3x384x128xbf16, #tpu.memory_space<vmem>>, vector<1x384x128xbf16>
    %96 = vector.shape_cast %95 : vector<1x384x128xbf16> to vector<384x128xbf16>
    %cst_61 = arith.constant dense<0.000000e+00> : vector<256x128xf32>
    %97 = tpu.matmul %94, %96, %cst_61 {dimension_numbers = #tpu.dot_dimension_numbers<[1], [0], [0], [1], [0, 0, 1, 1], [], []>} : vector<256x384xbf16>, vector<384x128xbf16>, vector<256x128xf32> -> vector<256x128xf32>
    %98 = arith.addf %92, %97 : vector<256x128xf32>
    %cst_62 = arith.constant 0.000000e+00 : f32
    %99 = vector.broadcast %cst_62 : f32 to vector<256x128xf32>
    %100 = arith.maximumf %98, %99 : vector<256x128xf32>
    %101 = math.absf %98 : vector<256x128xf32>
    %cst_63 = arith.constant 0.000000e+00 : f32
    %102 = vector.broadcast %cst_63 : f32 to vector<256x128xf32>
    %103 = arith.subf %102, %101 : vector<256x128xf32>
    %104 = math.exp %103 : vector<256x128xf32>
    %cst_64 = arith.constant 1.000000e+00 : f32
    %105 = vector.broadcast %cst_64 : f32 to vector<256x128xf32>
    %106 = arith.addf %105, %104 : vector<256x128xf32>
    %107 = math.log %106 : vector<256x128xf32>
    %108 = arith.addf %100, %107 : vector<256x128xf32>
    %109 = math.tanh %108 : vector<256x128xf32>
    %110 = arith.mulf %98, %109 : vector<256x128xf32>
    %c0_65 = arith.constant 0 : index
    %c0_66 = arith.constant 0 : index
    %111 = vector.load %arg6[%c0_65, %c0_66] : memref<1x256xf32, #tpu.memory_space<vmem>>, vector<1x256xf32>
    %112 = arith.truncf %111 : vector<1x256xf32> to vector<1x256xbf16>
    %113 = arith.truncf %110 : vector<256x128xf32> to vector<256x128xbf16>
    %cst_67 = arith.constant dense<0.000000e+00> : vector<1x128xf32>
    %114 = tpu.matmul %112, %113, %cst_67 {dimension_numbers = #tpu.dot_dimension_numbers<[1], [0], [0], [1], [0, 0, 1, 1], [], []>} : vector<1x256xbf16>, vector<256x128xbf16>, vector<1x128xf32> -> vector<1x128xf32>
    %115 = arith.truncf %114 : vector<1x128xf32> to vector<1x128xbf16>
    %c0_68 = arith.constant 0 : index
    %c0_69 = arith.constant 0 : index
    %116 = vector.load %arg7[%c0_68, %c0_69] : memref<128x128xbf16, #tpu.memory_space<vmem>>, vector<128x128xbf16>
    %cst_70 = arith.constant dense<0.000000e+00> : vector<1x128xf32>
    %117 = tpu.matmul %115, %116, %cst_70 {dimension_numbers = #tpu.dot_dimension_numbers<[1], [0], [0], [1], [0, 0, 1, 1], [], []>} : vector<1x128xbf16>, vector<128x128xbf16>, vector<1x128xf32> -> vector<1x128xf32>
    %c0_71 = arith.constant 0 : index
    %c0_72 = arith.constant 0 : index
    %118 = vector.load %arg8[%c0_71, %c0_72] : memref<1x128xf32, #tpu.memory_space<vmem>>, vector<1x128xf32>
    %119 = arith.addf %117, %118 : vector<1x128xf32>
    %c0_73 = arith.constant 0 : index
    %c0_74 = arith.constant 0 : index
    %c0_75 = arith.constant 0 : index
    %120 = vector.load %arg9[%c0_73, %c0_74, %c0_75] : memref<1x1x128xf32, #tpu.memory_space<vmem>>, vector<1x1x128xf32>
    %121 = vector.shape_cast %120 : vector<1x1x128xf32> to vector<1x128xf32>
    %122 = vector.shape_cast %119 : vector<1x128xf32> to vector<1x1x128xf32>
    tpu.vector_store %arg9[%c0_73, %c0_74, %c0_75], %122 {strides = array<i32>} : memref<1x1x128xf32, #tpu.memory_space<vmem>>, vector<1x1x128xf32>,
    return
  }
  func.func @transform_0(%arg0: i32) -> (i32, i32, i32, i32) {
    %c0_i32 = arith.constant 0 : i32
    %c0_i32_0 = arith.constant 0 : i32
    %c0_i32_1 = arith.constant 0 : i32
    %c0_i32_2 = arith.constant 0 : i32
    return %arg0, %c0_i32, %c0_i32_0, %c0_i32_1 : i32, i32, i32, i32
  }
  func.func @transform_1(%arg0: i32) -> (i32, i32, i32) {
    %c0_i32 = arith.constant 0 : i32
    %c0_i32_0 = arith.constant 0 : i32
    %c0_i32_1 = arith.constant 0 : i32
    %c0_i32_2 = arith.constant 0 : i32
    return %c0_i32, %c0_i32_0, %c0_i32_1 : i32, i32, i32
  }
  func.func @transform_2(%arg0: i32) -> (i32, i32) {
    %c0_i32 = arith.constant 0 : i32
    %c0_i32_0 = arith.constant 0 : i32
    %c0_i32_1 = arith.constant 0 : i32
    return %c0_i32, %c0_i32_0 : i32, i32
  }
  func.func @transform_3(%arg0: i32) -> (i32, i32, i32) {
    %c0_i32 = arith.constant 0 : i32
    %c0_i32_0 = arith.constant 0 : i32
    %c0_i32_1 = arith.constant 0 : i32
    %c0_i32_2 = arith.constant 0 : i32
    return %c0_i32, %c0_i32_0, %c0_i32_1 : i32, i32, i32
  }
  func.func @transform_4(%arg0: i32) -> (i32, i32) {
    %c0_i32 = arith.constant 0 : i32
    %c0_i32_0 = arith.constant 0 : i32
    %c0_i32_1 = arith.constant 0 : i32
    return %c0_i32, %c0_i32_0 : i32, i32
  }
  func.func @transform_5(%arg0: i32) -> (i32, i32) {
    %c0_i32 = arith.constant 0 : i32
    %c0_i32_0 = arith.constant 0 : i32
    %c0_i32_1 = arith.constant 0 : i32
    return %c0_i32, %c0_i32_0 : i32, i32
  }
  func.func @transform_6(%arg0: i32) -> (i32, i32) {
    %c0_i32 = arith.constant 0 : i32
    %c0_i32_0 = arith.constant 0 : i32
    %c0_i32_1 = arith.constant 0 : i32
    return %c0_i32, %c0_i32_0 : i32, i32
  }
  func.func @transform_7(%arg0: i32) -> (i32, i32) {
    %c0_i32 = arith.constant 0 : i32
    %c0_i32_0 = arith.constant 0 : i32
    %c0_i32_1 = arith.constant 0 : i32
    return %c0_i32, %c0_i32_0 : i32, i32
  }
  func.func @transform_8(%arg0: i32) -> (i32, i32, i32) {
    %c0_i32 = arith.constant 0 : i32
    %c0_i32_0 = arith.constant 0 : i32
    %c0_i32_1 = arith.constant 0 : i32
    return %arg0, %c0_i32, %c0_i32_0 : i32, i32, i32
  }
}

</mosaic_0001>

<bundles_post_ra>
// kernel: tpu_custom_call.1
= control target key start
LH: loop header
LB: loop body
LE: loop exit
PB: predicated region body
PF: predicated region fallthrough
CT: control target
= control target key end

     0   :  { %13 = vsyncpa [#allocation5], 0  ;;  %s12601_s0 = inlined_call_operand.hbm [shape: f32[2,1,256,128], index: 0, kind: input, shape index: {}]   ;;  %s12602_s1 = inlined_call_operand.hbm [shape: bf16[3,384,128], index: 1, kind: input, shape index: {}]   ;;  %s12603_s2 = inlined_call_operand.vmem [shape: f32[1,128], index: 2, kind: input, shape index: {}]   ;;  %s12604_s3 = inlined_call_operand.hbm [shape: bf16[3,384,128], index: 3, kind: input, shape index: {}]   ;;  %s12605_s4 = inlined_call_operand.vmem [shape: f32[1,128], index: 4, kind: input, shape index: {}]   ;;  %s12606_s5 = inlined_call_operand.vmem [shape: f32[1,256], index: 5, kind: input, shape index: {}]   ;;  %s12607_s6 = inlined_call_operand.hbm [shape: bf16[128,128], index: 6, kind: input, shape index: {}]   ;;  %s12608_s7 = inlined_call_operand.vmem [shape: f32[1,128], index: 7, kind: input, shape index: {}]   ;;  %s12609_s8 = inlined_call_operand.hbm [shape: f32[2,1,128], index: 8, kind: output, shape index: {}]  }
   0x1   :  { %15 = vsyncpa [#allocation5 + $0x1], 0 }
   0x2   :  { %16 = vsyncpa [#allocation8], 0 }
   0x3   :  { %17 = vsyncpa [#allocation11], 0 }
   0x4   :  { %18 = vsyncpa [#allocation6], 0 }
   0x5   :  { %20 = vsyncpa [#allocation6 + $0x1], 0  ;;  %s9662_s27 = smov 0   ;;  %s9664_s28 = smov 0  }
   0x6   :  { %s9666_s29 = smov 0   ;;  %s9668_s30 = smov 0  }
   0x7 LB: > { %12650 = sst [smem:[#allocation17_spill]] %s9591_s27  ;;  %s9683_s9 = sadd.s32 4294967295, %s9603_s30   ;;  %s9603_s30 = sphi %s9668_s30, %s12818_s30   ;;  %s9599_s29 = sphi %s9666_s29, %s12817_s29   ;;  %s9595_s28 = sphi %s9664_s28, %s12816_s28   ;;  %s9591_s27 = sphi %s9662_s27, %s12815_s27  }
   0x8   : > { %s7030_s10 = sadd.s32 4294967294, %s9603_s30   ;;  %p46_p0 = scmp.ne.s32.totalorder %s9595_s28, %s9591_s27 }
   0x9   : > { %p12610_p1 = scmp.eq.s32.totalorder %s9683_s9, 0  ;;  %p223_p3 = scmp.eq.s32.totalorder %s7030_s10, 1 }
   0xa   : > { %p7031_p5 = scmp.ge.s32.totalorder %s9603_s30, 1  ;;  %p230_p7 = scmp.lt.s32.totalorder %s9603_s30, 3 }
   0xb   : > { %p9692_p4 = por %p12610_p1, %p46_p0  ;;  %p9697_p6 = por %p223_p3, %p46_p0 }
   0xc   : > { %p9702_p8 = pnand %p7031_p5, %p230_p7  ;;  %s9605_s14 = smov [#allocation7]  }
   0xd   : > { %s12651_s11 = scalar_select %p9692_p4, 1, 0 }
   0xe   : > { %s12652_s12 = scalar_select %p9697_p6, 1, 0 }
   0xf   : > { %s12654_s13 = scalar_select %p9702_p8, 1, 0 }
  0x10   : > { %12653 = sst [smem:[#allocation18_spill]] %s12652_s12  ;;  %s242_s15 = sshll.u32 %s9605_s14, 4  ;;  %s9706_s15 = int_to_ptr.vmem [resolvable:$true] %s242_s15 }
  0x11   : > { %p8805_p9 = pneg %p9702_p8  ;;  %s9606_s17 = smov [#allocation9]  }
  0x12   : > { %s258_s18 = sshll.u32 %s9606_s17, 4  ;;  %s9607_s19 = smov [#allocation10]   ;;  %s9717_s18 = int_to_ptr.vmem [resolvable:$true] %s258_s18 }
  0x13   : > { %p9713_p11 = pnand %p8805_p9, %p12610_p1  ;;  %s9719_s20 = sshll.u32 %s9607_s19, 4  ;;  %s278_s20 = int_to_ptr.vmem [resolvable:$true] %s9719_s20 }
  0x14   : > { %s9415_s23 = scalar_lea.hbm %s12602_s1, 9216 }
  0x15   : > { %p9416_p12 = scmp.ne.s32.totalorder %s12602_s1, %s9415_s23  ;;  %p9729_p13 = pneg %p9713_p11 }
  0x16   : > { %p9422_p5 = scmp.lt.u32.totalorder %s9415_s23, %s12602_s1 }
  0x17   : > { %p9418_p0 = pnand %p9729_p13, %p9416_p12 }
  0x19   : > { %p9419_p3 = pneg %p9418_p0 }
  0x1b   : > { %p9424_p7 = pnand %p9422_p5, %p9419_p3 }
  0x1d   : > { %9427 = shalt.err (!%p9424_p7)
}
  0x1e   : > { %s9428_s17 = scalar_lea.vmem %s9706_s15, 9216  ;;  %p9436_p2 = scmp.lt.s32.totalorder %s9706_s15, %s9706_s15 }
  0x1f   : > { %p9429_p9 = scmp.ne.s32.totalorder %s9706_s15, %s9428_s17  ;;  %p9437_p6 = scmp.lt.s32.totalorder %s9428_s17, %s9428_s17 }
  0x21   : > { %p9431_p10 = pnand %p9429_p9, %p9729_p13  ;;  %p9438_p12 = por %p9437_p6, %p9436_p2 }
  0x23   : > { %p9432_p1 = pneg %p9431_p10 }
  0x25   : > { %p9439_p0 = pnand %p9438_p12, %p9432_p1 }
  0x27   : > { %9442 = shalt.err (!%p9439_p0)
}
  0x28   : > { %s9608_s19 = smov 64   ;;  %s9609_s21 = smov 4  }
  0x29   : > { %8808 = dma.hbm_to_vmem [thread:$0]  (!%p9713_p11), %s12602_s1, 9216, %s9706_s15, [#allocation8], %s9608_s19, %s9608_s19, %s9609_s21  }
  0x2a   : > { %s9443_s10 = scalar_lea.hbm %s12604_s3, 9216 }
  0x2b   : > { %p9444_p1 = scmp.ne.s32.totalorder %s12604_s3, %s9443_s10  ;;  %p9450_p10 = scmp.lt.u32.totalorder %s9443_s10, %s12604_s3 }
  0x2d   : > { %p9446_p2 = pnand %p9444_p1, %p9729_p13 }
  0x2f   : > { %p9447_p6 = pneg %p9446_p2 }
  0x31   : > { %p9452_p3 = pnand %p9450_p10, %p9447_p6 }
  0x33   : > { %9455 = shalt.err (!%p9452_p3)
}
  0x34   : > { %s9456_s15 = scalar_lea.vmem %s9717_s18, 9216  ;;  %p9464_p12 = scmp.lt.s32.totalorder %s9717_s18, %s9717_s18 }
  0x35   : > { %p9457_p5 = scmp.ne.s32.totalorder %s9717_s18, %s9456_s15  ;;  %p9465_p0 = scmp.lt.s32.totalorder %s9456_s15, %s9456_s15 }
  0x37   : > { %p9459_p7 = pnand %p9457_p5, %p9729_p13  ;;  %p9466_p1 = por %p9465_p0, %p9464_p12 }
  0x39   : > { %p9460_p9 = pneg %p9459_p7 }
  0x3b   : > { %p9467_p2 = pnand %p9466_p1, %p9460_p9 }
  0x3d   : > { %9470 = shalt.err (!%p9467_p2)
}
  0x3e   : > { %8811 = dma.hbm_to_vmem [thread:$0]  (!%p9713_p11), %s12604_s3, 9216, %s9717_s18, [#allocation8], %s9608_s19, %s9608_s19, %s9609_s21  }
  0x3f   : > { %s9471_s24 = scalar_lea.hbm %s12607_s6, 1024 }
  0x40   : > { %p9472_p6 = scmp.ne.s32.totalorder %s12607_s6, %s9471_s24  ;;  %p9478_p5 = scmp.lt.u32.totalorder %s9471_s24, %s12607_s6 }
  0x42   : > { %p9474_p10 = pnand %p9472_p6, %p9729_p13 }
  0x44   : > { %p9475_p3 = pneg %p9474_p10 }
  0x46   : > { %p9480_p7 = pnand %p9478_p5, %p9475_p3 }
  0x48   : > { %9483 = shalt.err (!%p9480_p7)
}
  0x49   : > { %s9484_s15 = scalar_lea.vmem %s278_s20, 1024  ;;  %p9492_p1 = scmp.lt.s32.totalorder %s278_s20, %s278_s20 }
  0x4a   : > { %p9485_p9 = scmp.ne.s32.totalorder %s278_s20, %s9484_s15  ;;  %p9493_p2 = scmp.lt.s32.totalorder %s9484_s15, %s9484_s15 }
  0x4c   : > { %p9487_p12 = pnand %p9485_p9, %p9729_p13  ;;  %p9494_p4 = por %p9493_p2, %p9492_p1 }
  0x4e   : > { %p9488_p0 = pneg %p9487_p12 }
  0x50   : > { %p9495_p8 = pnand %p9494_p4, %p9488_p0 }
  0x52   : > { %9498 = shalt.err (!%p9495_p8)
}
  0x53   : > { %8814 = dma.hbm_to_vmem [thread:$0]  (!%p9713_p11), %s12607_s6, 1024, %s278_s20, [#allocation11], %s9608_s19, %s9608_s19, %s9609_s21  }
  0x54   : > { %s9802_s26 = sadd.s32 1, %s9603_s30   ;;  %s33_s12 = sadd.s32 1, %s9599_s29 }
  0x55   : > { %s30_s16 = ssub.s32 %s9603_s30, %s9802_s26  ;;  %p40_p8 = scmp.ne.s32.totalorder %s9599_s29, %s9595_s28 }
  0x56   : > { %p31_p4 = scmp.eq.s32.totalorder %s30_s16, 0  ;;  %p41_p13 = scmp.eq.s32.totalorder %s9603_s30, 0 }
  0x57   : > { %p8826_p6 = scmp.lt.s32.totalorder %s9603_s30, 2  ;;  %p12657_p3 = scmp.eq.s32.totalorder %s9683_s9, 1 }
  0x58   : > { %s9812_s22 = scalar_select %p31_p4, %s9599_s29, %s33_s12  }
  0x59   : > { %p42_p10 = por %p41_p13, %p40_p8  ;;  %p9816_p5 = por %p12657_p3, %p40_p8 }
  0x5a   : > { %s294_s24 = sand.u32 1, %s9599_s29   ;;  %s7233_s25 = sshll.u32 %s9603_s30, 12 }
  0x5b   : > { %s7036_s20 = sshll.u32 %s294_s24, 8  ;;  %s9825_s10 = scalar_lea.hbm %s12601_s0, %s7233_s25 }
  0x5c   : > { %s298_s14 = scalar_lea.vmem [#allocation4], %s7036_s20  ;;  %p9827_p11 = pnand %p8826_p6, %p42_p10 }
  0x5d   : > { %s305_s17 = sshll.u32 %s298_s14, 4  ;;  %s9833_s18 = scalar_lea.sflag [#allocation5], %s294_s24  ;;  %s9831_s17 = int_to_ptr.vmem [resolvable:$true] %s305_s17 }
  0x5e   : > { %s9499_s27 = scalar_lea.hbm %s9825_s10, 4096  ;;  %p9501_p9 = pneg %p9827_p11 }
  0x5f   : > { %p9500_p7 = scmp.ne.s32.totalorder %s9825_s10, %s9499_s27  ;;  %s9504_s25 = scalar_lea.hbm %s12601_s0, 8192 }
  0x60   : > { %p9505_p1 = scmp.lt.u32.totalorder %s9825_s10, %s12601_s0  ;;  %p9506_p2 = scmp.lt.u32.totalorder %s9504_s25, %s9499_s27 }
  0x61   : > { %p9502_p12 = pnand %p9501_p9, %p9500_p7  ;;  %p9508_p8 = scmp.lt.u32.totalorder %s9499_s27, %s9825_s10 }
  0x62   : > { %p9507_p4 = por %p9506_p2, %p9505_p1 }
  0x63   : > { %p9503_p0 = pneg %p9502_p12 }
  0x64   : > { %p9509_p13 = por %p9508_p8, %p9507_p4 }
  0x66   : > { %p9510_p6 = pnand %p9509_p13, %p9503_p0 }
  0x68   : > { %9513 = shalt.err (!%p9510_p6)
}
  0x69   : > { %s9514_s24 = scalar_lea.vmem %s9831_s17, 4096  ;;  %s9610_s21 = smov [#allocation4]  }
  0x6a   : > { %p9515_p10 = scmp.ne.s32.totalorder %s9831_s17, %s9514_s24  ;;  %s9519_s14 = sshll.u32 %s9610_s21, 4  ;;  %s9520_s14 = int_to_ptr.vmem [resolvable:$false] %s9519_s14 }
  0x6b   : > { %s9521_s16 = scalar_lea.vmem %s9520_s14, 8192  ;;  %p9522_p12 = scmp.lt.s32.totalorder %s9831_s17, %s9520_s14 }
  0x6c   : > { %p9517_p3 = pnand %p9515_p10, %p9501_p9  ;;  %p9523_p1 = scmp.lt.s32.totalorder %s9521_s16, %s9514_s24 }
  0x6e   : > { %p9518_p7 = pneg %p9517_p3  ;;  %p9524_p2 = por %p9523_p1, %p9522_p12 }
  0x70   : > { %p9525_p4 = pnand %p9524_p2, %p9518_p7 }
  0x72   : > { %9528 = shalt.err (!%p9525_p4)
}
  0x73   : > { %s9611_s27 = smov 128   ;;  %s9612_s12 = smov 8  }
  0x74   : > { %8818 = dma.hbm_to_vmem [thread:$0]  (!%p9827_p11), %s9825_s10, 4096, %s9831_s17, %s9833_s18, %s9611_s27, %s9611_s27, %s9612_s12  }
  0x75   : > { %p12660_p9 = scmp.ne.s32.totalorder %s12654_s13, 0 }
  0x77   : > { %317 = sbr.rel (%p12660_p9) target bundleno = 1793 (0x701), region = 52 }
  0x7e   : > { %s9864_s25 = sand.u32 1, %s9595_s28   ;;  %p12661_p0 = scmp.ne.s32.totalorder %s12651_s11, 0 }
  0x7f   : > { %s7040_s20 = sshll.u32 %s9864_s25, 8  ;;  %s320_s19 = scalar_lea.sflag [#allocation5], %s9864_s25 }
  0x80   : > { %s9868_s24 = scalar_lea.vmem [#allocation4], %s7040_s20 }
  0x81   : > { %9574 = dma.done.wait (%p12661_p0), %s320_s19, 4096  }
  0x82   : > { %9576 = vsyncadd (%p12661_p0), %s320_s19, 4294963200  ;;  %p12662_p11 = scmp.eq.s32.totalorder %s9683_s9, 0 }
  0x84   : > { %9578 = dma.done.wait (%p12662_p11), [#allocation8], 18432   ;;  %p12663_p8 = pmov %p12662_p11 }
  0x86   : > { %9580 = vsyncadd (%p12663_p8), [#allocation8], 4294948864  ;;  %p12664_p13 = pmov %p12663_p8 }
  0x87   : > { %p12665_p6 = pmov %p12663_p8 }
  0x88   : > { %9582 = dma.done.wait (%p12664_p13), [#allocation11], 1024  }
  0x89   : > { %9584 = vsyncadd (%p12665_p6), [#allocation11], 4294966272  ;;  %v404_v0 = vlaneseq  ;;  %v12615_v1 = vmov 0.0   ;;  %v9614_v3 = vmov 0.0|0.0   ;;  %v8872_v10 = vld [vmem:[#allocation7 + $0x40] sm:$0xff]   ;;  %v8875_v16 = vld [vmem:[#allocation7 + $0x48] sm:$0xff]  }
  0x8a   : > { %369 = vst [vmem:[#allocation2 + $0x8] sm:$0xff] %v12615_v1  ;;  %373 = vst [vmem:[#allocation2 + $0x28] sm:$0xff] %v12615_v1  ;;  %1834 = vmatprep.mubr.bf16.mxu0 %v9614_v3  ;;  %v8873_v12 = vld [vmem:[#allocation7 + $0x80] sm:$0xff]   ;;  %7234 = vmatprep.subr.bf16.mxu0 %v8872_v10  ;;  %v8876_v18 = vld [vmem:[#allocation7 + $0x88] sm:$0xff]   ;;  %vm1336_vm6 = vcmask 1046528   ;;  %vm1110_vm8 = vcmask 1040384  }
  0x8b   : > { %374 = vst [vmem:[#allocation2 + $0x30] sm:$0xff] %v12615_v1  ;;  %379 = vst [vmem:[#allocation2 + $0x328] sm:$0xff] %v12615_v1  ;;  %v9891_v2 = vshrl.u32 %v404_v0, 7  ;;  %v8874_v14 = vld [vmem:[#allocation7] sm:$0xff]   ;;  %8081 = vmatprep.subr.bf16.mxu1 %v8873_v12  ;;  %v8877_v19 = vld [vmem:[#allocation7 + $0x8] sm:$0xff]   ;;  %s7230_s16 = sshll.u32 %s9683_s9, 4 }
  0x8c   : > { %380 = vst [vmem:[#allocation2 + $0x330] sm:$0xff] %v12615_v1  ;;  %391 = vst [vmem:[#allocation3 + $0x28] sm:$0xff] %v12615_v1  ;;  %7235 = vmatpush3.bf16.msra.mxu0 %v8874_v14  ;;  %8082 = vmatpush3.bf16.msra.mxu1 %v8873_v12  ;;  %v8878_v21 = vld [vmem:[#allocation7 + $0x50] sm:$0xff]   ;;  %v8881_v25 = vld [vmem:[#allocation7 + $0x58] sm:$0xff]   ;;  %s366_s27 = scalar_lea.vmem [#allocation12], %s9864_s25  ;;  %s6923_s11 = scalar_lea.sflag [#allocation6], %s9864_s25 }
  0x8d   : > { %392 = vst [vmem:[#allocation3 + $0x30] sm:$0xff] %v12615_v1  ;;  %397 = vst [vmem:[#allocation3 + $0x328] sm:$0xff] %v12615_v1  ;;  %v441_v4 = vand.u32 15, %v9891_v2  ;;  %v407_v5 = vadd.s32 16, %v9891_v2  ;;  %v409_v6 = vadd.s32 32, %v9891_v2  ;;  %v406_v7 = vadd.s32 8, %v9891_v2  ;;  %7236 = vmatprep.subr.bf16.mxu0 %v8875_v16  ;;  %8083 = vmatprep.subr.bf16.mxu1 %v8876_v18 }
  0x8e   : > { %398 = vst [vmem:[#allocation3 + $0x330] sm:$0xff] %v12615_v1  ;;  %12666 = vst [vmem:[#allocation19_spill] sm:$0xff] %v9891_v2  ;;  %v411_v8 = vadd.s32 48, %v9891_v2  ;;  %v413_v9 = vadd.s32 64, %v9891_v2  ;;  %v408_v11 = vadd.s32 24, %v9891_v2  ;;  %v415_v13 = vadd.s32 80, %v9891_v2 }
  0x8f   : > { %v455_v15 = vand.u32 15, %v407_v5  ;;  %v469_v17 = vand.u32 15, %v409_v6  ;;  %vm917_vm0 = vcmp.ne.s32.totalorder %v441_v4, 0  ;;  %v448_v20 = vand.u32 15, %v406_v7  ;;  %v8879_v22 = vld [vmem:[#allocation7 + $0x90] sm:$0xff]   ;;  %v8882_v27 = vld [vmem:[#allocation7 + $0x98] sm:$0xff]  }
  0x90   : > { %7237 = vmatpush3.bf16.msra.mxu0 %v8877_v19  ;;  %8084 = vmatpush3.bf16.msra.mxu1 %v8876_v18  ;;  %v8880_v23 = vld [vmem:[#allocation7 + $0x10] sm:$0xff]   ;;  %v9903_v24 = vsel %vm917_vm0, 1.0, %v12615_v1  ;;  %v8883_v29 = vld [vmem:[#allocation7 + $0x18] sm:$0xff]   ;;  %v8884_v30 = vld [vmem:[#allocation7 + $0x60] sm:$0xff]   ;;  %v483_v31 = vand.u32 15, %v411_v8  ;;  %v497_v33 = vand.u32 15, %v413_v9 }
  0x91   : > { %vm919_vm1 = vcmp.ne.s32.totalorder %v455_v15, 0  ;;  %vm921_vm2 = vcmp.ne.s32.totalorder %v469_v17, 0  ;;  %7238 = vmatprep.subr.bf16.mxu0 %v8878_v21  ;;  %8085 = vmatprep.subr.bf16.mxu1 %v8879_v22  ;;  %vm822_vm3 = vcmp.ne.s32.totalorder %v448_v20, 15  ;;  %v8885_v32 = vld [vmem:[#allocation7 + $0xa0] sm:$0xff]   ;;  %v462_v35 = vand.u32 15, %v408_v11  ;;  %v8887_v38 = vld [vmem:[#allocation7 + $0x68] sm:$0xff]  }
  0x92   : > { %v9906_v26 = vsel %vm919_vm1, 1.0, %v12615_v1  ;;  %v9909_v28 = vsel %vm921_vm2, 1.0, %v12615_v1  ;;  %v9912_v34 = vsel %vm822_vm3, 1.0, %v12615_v1  ;;  %v8886_v36 = vld [vmem:[#allocation7 + $0x20] sm:$0xff]   ;;  %v511_v37 = vand.u32 15, %v415_v13  ;;  %v8888_v40 = vld [vmem:[#allocation7 + $0xa8] sm:$0xff]  }
  0x93   : > { %12667 = vst [vmem:[#allocation20_spill] sm:$0xff] %v9909_v28  ;;  %vm9914_vm4 = vcmp.ne.s32.totalorder %v483_v31, 0  ;;  %vm9918_vm5 = vcmp.ne.s32.totalorder %v497_v33, 0  ;;  %v8889_v42 = vld [vmem:[#allocation7 + $0x28] sm:$0xff]   ;;  %vm9922_vm7 = vcmp.ne.s32.totalorder %v462_v35, 15  ;;  %v417_v45 = vadd.s32 96, %v9891_v2 }
  0x94   : > { %7239 = vmatpush3.bf16.msra.mxu0 %v8880_v23  ;;  %8086 = vmatpush3.bf16.msra.mxu1 %v8879_v22  ;;  %vm9926_vm9 = vcmp.ne.s32.totalorder %v511_v37, 0  ;;  %v8890_v46 = vld [vmem:[#allocation7 + $0x70] sm:$0xff]   ;;  %v9932_v47 = vadd.s32 40, %v9891_v2  ;;  %v9937_v51 = vsel %vm9914_vm4, 1.0, %v12615_v1  ;;  %v8893_v52 = vld [vmem:[#allocation7 + $0x78] sm:$0xff]   ;;  %v9944_v54 = vsel %vm9918_vm5, 1.0, %v12615_v1 }
  0x95   : > { %7240 = vmatprep.subr.bf16.mxu0 %v8881_v25  ;;  %8087 = vmatprep.subr.bf16.mxu1 %v8882_v27  ;;  %v8891_v48 = vld [vmem:[#allocation7 + $0xb0] sm:$0xff]   ;;  %v525_v49 = vand.u32 15, %v417_v45  ;;  %12676 = vst [vmem:[#allocation21_spill] sm:$0xff] %v9937_v51  ;;  %v9939_v53 = vld [vmem:[#allocation7 + $0xb8] sm:$0xff]   ;;  %12677 = vst [vmem:[#allocation22_spill] sm:$0xff] %v9944_v54  ;;  %v9958_v58 = vsel %vm9922_vm7, 1.0, %v12615_v1 }
  0x96   : > { %v8892_v50 = vld [vmem:[#allocation7 + $0x30] sm:$0xff]   ;;  %v9947_v55 = vld [vmem:[%s9868_s24] sm:$0xff]  ;;  %v9950_v56 = vld [vmem:[%s9868_s24 + $0x8] sm:$0xff]  ;;  %v9963_v59 = vsel %vm9926_vm9, 1.0, %v12615_v1  ;;  %v476_v60 = vand.u32 15, %v9932_v47  ;;  %s6935_s12 = sshll.u32 %s366_s27, 4  ;;  %s12559_s12 = int_to_ptr.vmem [resolvable:$true] %s6935_s12 }
  0x97   : > { %v9953_v57 = vld [vmem:[%s9868_s24 + $0x10] sm:$0xff]  ;;  %12678 = vst [vmem:[#allocation23_spill] sm:$0xff] %v9963_v59  ;;  %v1272_v61 = vmul.f32 %v9903_v24, %v9947_v55  ;;  %1240 = vst [vmem:[#allocation2 + $0x38] sm:$0xff] %v9947_v55  ;;  %v1338_v63 = vrot.slane %v9950_v56, 1  ;;  %v9975_v0 = vld [vmem:[%s9868_s24 + $0x18] sm:$0xff]  ;;  %vm9983_vm10 = vcmp.ne.s32.totalorder %v525_v49, 0  ;;  %v9996_v10 = vmul.f32 %v9912_v34, %v9950_v56 }
  0x98   : > { %7241 = vmatpush3.bf16.msra.mxu0 %v8883_v29  ;;  %8088 = vmatpush3.bf16.msra.mxu1 %v8882_v27  ;;  %v1274_v62 = vmul.f32 %v9906_v26, %v9953_v57  ;;  %1241 = vst [vmem:[#allocation2 + $0x50] sm:$0xff] %v9950_v56  ;;  %1242 = vst [vmem:[#allocation2 + $0x68] sm:$0xff] %v9953_v57  ;;  %v9978_v4 = vld [vmem:[%s9868_s24 + $0x20] sm:$0xff]  ;;  %v9981_v5 = vld [vmem:[%s9868_s24 + $0x28] sm:$0xff]  ;;  %v1342_v9 = vrot.slane %v9975_v0, 1  ;;  %v1111_v11 = vrot.slane %v9947_v55, 7 }
  0x99   : > { %7242 = vmatprep.subr.bf16.mxu0 %v8884_v30  ;;  %8089 = vmatprep.subr.bf16.mxu1 %v8885_v32  ;;  %v9987_v7 = vld [vmem:[#allocation7 + $0x38] sm:$0xff]   ;;  %v1276_v8 = vmul.f32 %v9909_v28, %v9978_v4  ;;  %1243 = vst [vmem:[#allocation2 + $0x80] sm:$0xff] %v9975_v0  ;;  %1244 = vst [vmem:[#allocation2 + $0x98] sm:$0xff] %v9978_v4  ;;  %v10000_v12 = vld [vmem:[%s9868_s24 + $0x30] sm:$0xff]  ;;  %v1337_v15 = vrot.slane %v1272_v61, 1  ;;  %v1346_v18 = vrot.slane %v9981_v5, 1 }
  0x9a   : > { %1245 = vst [vmem:[#allocation2 + $0xb0] sm:$0xff] %v9981_v5  ;;  %v10004_v13 = vld [vmem:[%s9868_s24 + $0x38] sm:$0xff]  ;;  %v10007_v14 = vld [vmem:[%s9868_s24 + $0x40] sm:$0xff]  ;;  %v1340_v16 = vrot.slane %v1274_v62, 1  ;;  %v10011_v17 = vmul.f32 %v9937_v51, %v10000_v12  ;;  %1246 = vst [vmem:[#allocation2 + $0xc8] sm:$0xff] %v10000_v12  ;;  %v1112_v23 = vrot.slane %v9996_v10, 7 }
  0x9b   : > { %1247 = vst [vmem:[#allocation2 + $0xe0] sm:$0xff] %v10004_v13  ;;  %1248 = vst [vmem:[#allocation2 + $0xf8] sm:$0xff] %v10007_v14  ;;  %v10018_v19 = vld [vmem:[%s9868_s24 + $0x48] sm:$0xff]  ;;  %v10021_v20 = vld [vmem:[%s9868_s24 + $0x50] sm:$0xff]  ;;  %v1344_v22 = vrot.slane %v1276_v8, 1  ;;  %v10029_v25 = vmul.f32 %v9944_v54, %v10007_v14  ;;  %v10036_v27 = vsel %vm9983_vm10, 1.0, %v12615_v1 }
  0x9c   : > { %7243 = vmatpush3.bf16.msra.mxu0 %v8886_v36  ;;  %8090 = vmatpush3.bf16.msra.mxu1 %v8885_v32  ;;  %v10024_v21 = vld [vmem:[%s9868_s24 + $0x58] sm:$0xff]  ;;  %1207 = vst [vmem:[#allocation2 + $0x30] sm:$0xfe] %v1111_v11  ;;  %1249 = vst [vmem:[#allocation2 + $0x110] sm:$0xff] %v10018_v19  ;;  %v10039_v29 = vld [vmem:[%s9868_s24 + $0x60] sm:$0xff]  ;;  %v10050_v32 = vsel %vm1336_vm6, %v1337_v15, %v1338_v63  ;;  %v10053_v33 = vsel %vm1336_vm6, %v1338_v63, %v1340_v16  ;;  %v1348_v36 = vrot.slane %v10011_v17, 1 }
  0x9d   : > { %7244 = vmatprep.subr.bf16.mxu0 %v8887_v38  ;;  %8091 = vmatprep.subr.bf16.mxu1 %v8888_v40  ;;  %1250 = vst [vmem:[#allocation2 + $0x128] sm:$0xff] %v10021_v20  ;;  %12681 = vst [vmem:[#allocation24_spill] sm:$0xff] %v10036_v27  ;;  %v10043_v30 = vld [vmem:[%s9868_s24 + $0x68] sm:$0xff]  ;;  %v10046_v31 = vld [vmem:[%s9868_s24 + $0x70] sm:$0xff]  ;;  %v10056_v35 = vsel %vm1336_vm6, %v1340_v16, %v1342_v9  ;;  %v10078_v41 = vsel %vm1110_vm8, %v1111_v11, %v1112_v23  ;;  %vm10085_vm11 = vcmp.ne.s32.totalorder %v476_v60, 15  ;;  %s9529_s9 = scalar_lea.vmem %s12559_s12, 16 }
  0x9e   : > { %1251 = vst [vmem:[#allocation2 + $0x140] sm:$0xff] %v10024_v21  ;;  %1433 = vst [vmem:[#allocation2 + $0x28] sm:$0x80] %v1337_v15  ;;  %v10063_v37 = vld [vmem:[%s9868_s24 + $0x78] sm:$0xff]  ;;  %v10066_v38 = vld [vmem:[%s9868_s24 + $0x80] sm:$0xff]  ;;  %v10098_v45 = vsel %vm1336_vm6, %v1346_v18, %v1348_v36  ;;  %v1352_v47 = vrot.slane %v10029_v25, 1  ;;  %v1282_v61 = vmul.f32 %v9963_v59, %v10021_v20  ;;  %v1569_v63 = vpack.c.bf16 %v9975_v0, %v9953_v57  ;;  %p9530_p10 = scmp.ne.s32.totalorder %s12559_s12, %s9529_s9 }
  0x9f   : > { %1252 = vst [vmem:[#allocation2 + $0x158] sm:$0xff] %v10039_v29  ;;  %1253 = vst [vmem:[#allocation2 + $0x170] sm:$0xff] %v10043_v30  ;;  %v10069_v39 = vld [vmem:[%s9868_s24 + $0x88] sm:$0xff]  ;;  %v10092_v44 = vld [vmem:[%s9868_s24 + $0x90] sm:$0xff]  ;;  %v1114_v60 = vrot.slane %v9953_v57, 7  ;;  %v1284_v17 = vmul.f32 %v10036_v27, %v10039_v29  ;;  %s9616_s13 = smov [#allocation12]  }
  0xa0   : > { %7245 = vmatpush3.bf16.msra.mxu0 %v8889_v42  ;;  %8092 = vmatpush3.bf16.msra.mxu1 %v8888_v40  ;;  %1254 = vst [vmem:[#allocation2 + $0x188] sm:$0xff] %v10046_v31  ;;  %1434 = vst [vmem:[#allocation2 + $0x40] sm:$0xff] %v10050_v32  ;;  %v10074_v40 = vsel %vm1336_vm6, %v1342_v9, %v1344_v22  ;;  %v10081_v42 = vsel %vm1336_vm6, %v1344_v22, %v1346_v18  ;;  %v8896_v49 = vld [vmem:[#allocation7 + $0x100] sm:$0xff]   ;;  %v1356_v8 = vrot.slane %v1282_v61, 1  ;;  %v10133_v9 = vld [vmem:[#allocation7 + $0x108] sm:$0xff]   ;;  %p9531_p3 = pnand %p9530_p10, %p9816_p5  ;;  %s9533_s10 = sshll.u32 %s9616_s13, 4  ;;  %s9534_s10 = int_to_ptr.vmem [resolvable:$false] %s9533_s10 }
  0xa1   : > { %7246 = vmatprep.subr.bf16.mxu0 %v8890_v46  ;;  %8093 = vmatprep.subr.bf16.mxu1 %v8891_v48  ;;  %1435 = vst [vmem:[#allocation2 + $0x58] sm:$0xff] %v10053_v33  ;;  %1436 = vst [vmem:[#allocation2 + $0x70] sm:$0xff] %v10056_v35  ;;  %v1350_v46 = vrot.slane %v10004_v13, 1  ;;  %v10131_v6 = vsel %vm1110_vm8, %v1112_v23, %v1114_v60  ;;  %v10136_v10 = vld [vmem:[%s9868_s24 + $0x98] sm:$0xff]  ;;  %v10139_v11 = vld [vmem:[%s9868_s24 + $0xa0] sm:$0xff]  ;;  %v1358_v18 = vrot.slane %v10024_v21, 1  ;;  %p9536_p12 = scmp.lt.s32.totalorder %s12559_s12, %s9534_s10 }
  0xa2   : > { %1255 = vst [vmem:[#allocation2 + $0x1a0] sm:$0xff] %v10063_v37  ;;  %1256 = vst [vmem:[#allocation2 + $0x1b8] sm:$0xff] %v10066_v38  ;;  %v10154_v22 = vsel %vm10085_vm11, 1.0, %v12615_v1  ;;  %v10162_v23 = vld [vmem:[%s9868_s24 + $0xb0] sm:$0xff]  ;;  %v1370_v59 = vrot.slane %v10069_v39, 1  ;;  %p9532_p7 = pneg %p9531_p3  ;;  %s9535_s17 = scalar_lea.vmem %s9534_s10, 32 }
  0xa3   : > { %1257 = vst [vmem:[#allocation2 + $0x1d0] sm:$0xff] %v10069_v39  ;;  %1437 = vst [vmem:[#allocation2 + $0x88] sm:$0xff] %v10074_v40  ;;  %v10118_v62 = vsel %vm1336_vm6, %v1348_v36, %v1350_v46  ;;  %v10142_v15 = vld [vmem:[#allocation2 + $0x30] sm:$0xff]  ;;  %v1567_v36 = vpack.c.bf16 %v10053_v33, %v10050_v32  ;;  %v1570_v32 = vpack.c.bf16 %v10074_v40, %v10056_v35  ;;  %p9537_p1 = scmp.lt.s32.totalorder %s9535_s17, %s9529_s9 }
  0xa4   : > { %7247 = vmatpush3.bf16.msra.mxu0 %v8892_v50  ;;  %8094 = vmatpush3.bf16.msra.mxu1 %v8891_v48  ;;  %1208 = vst [vmem:[#allocation2 + $0x48] sm:$0xff] %v10078_v41  ;;  %1438 = vst [vmem:[#allocation2 + $0xa0] sm:$0xff] %v10081_v42  ;;  %v10104_v48 = vadd.s32 112, %v9891_v2  ;;  %v1566_v50 = vpack.c.bf16 %v9950_v56, %v9947_v55  ;;  %v1354_v55 = vrot.slane %v10018_v19, 1  ;;  %v10124_v56 = vld [vmem:[#allocation7 + $0xc0] sm:$0xff]   ;;  %v8900_v33 = vld [vmem:[#allocation7 + $0x110] sm:$0xff]  }
  0xa5   : > { %7248 = vmatprep.subr.bf16.mxu0 %v8893_v52  ;;  %8095 = vmatprep.subr.bf16.mxu1 %v9939_v53  ;;  %1258 = vst [vmem:[#allocation2 + $0x1e8] sm:$0xff] %v10092_v44  ;;  %1439 = vst [vmem:[#allocation2 + $0xb8] sm:$0xff] %v10098_v45  ;;  %v1049_v52 = vmul.f32 %v9958_v58, %v9975_v0  ;;  %v1471_v25 = vld [vmem:[#allocation2 + $0x28] sm:$0xff]  ;;  %v1565_v61 = vpack.c.bf16 %v10078_v41, %v10142_v15  ;;  %v10211_v15 = vld [vmem:[%s9868_s24 + $0xb8] sm:$0xff]  ;;  %p9538_p2 = por %p9537_p1, %p9536_p12 }
  0xa6   : > { %1440 = vst [vmem:[#allocation2 + $0xd0] sm:$0xff] %v10118_v62  ;;  %1209 = vst [vmem:[#allocation2 + $0x60] sm:$0xff] %v10131_v6  ;;  %v10146_v16 = vsel %vm1336_vm6, %v1352_v47, %v1354_v55  ;;  %v10170_v43 = vsel %vm1336_vm6, %v1354_v55, %v1356_v8  ;;  %v539_v40 = vand.u32 15, %v10104_v48 }
  0xa7   : > { %12684 = vst [vmem:[#allocation25_spill] sm:$0xff] %v10154_v22  ;;  %1259 = vst [vmem:[#allocation2 + $0x200] sm:$0xff] %v10136_v10  ;;  %p9539_p4 = pnand %p9538_p2, %p9532_p7 }
  0xa8   : > { %7249 = vmatpush3.bf16.msra.mxu0 %v9987_v7  ;;  %8096 = vmatpush3.bf16.msra.mxu1 %v9939_v53  ;;  %v10121_v53 = vsel %vm1336_vm6, %v1350_v46, %v1352_v47  ;;  %v1116_v7 = vrot.slane %v1049_v52, 7  ;;  %1260 = vst [vmem:[#allocation2 + $0x218] sm:$0xff] %v10139_v11  ;;  %1442 = vst [vmem:[#allocation2 + $0x100] sm:$0xff] %v10146_v16  ;;  %v10175_v47 = vmul.f32 %v10154_v22, %v9981_v5 }
  0xa9   : > { %8389 = vmatprep.subr.bf16.mxu1 %v8896_v49  ;;  %7370 = vmatprep.subr.bf16.mxu0 %v8896_v49  ;;  %1441 = vst [vmem:[#allocation2 + $0xe8] sm:$0xff] %v10121_v53  ;;  %1262 = vst [vmem:[#allocation2 + $0x248] sm:$0xff] %v10162_v23  ;;  %v1564_v49 = vpack.c.bf16 %v1471_v25, %v12615_v1  ;;  %v1360_v52 = vrot.slane %v1284_v17, 1  ;;  %v421_v17 = vadd.s32 128, %v9891_v2  ;;  %v8899_v25 = vld [vmem:[#allocation7 + $0xc8] sm:$0xff]   ;;  %vm931_vm12 = vcmp.ne.s32.totalorder %v539_v40, 0 }
  0xaa   : > { %v10167_v46 = vsel %vm1110_vm8, %v1114_v60, %v1116_v7  ;;  %1443 = vst [vmem:[#allocation2 + $0x118] sm:$0xff] %v10170_v43  ;;  %v1118_v60 = vrot.slane %v9978_v4, 7  ;;  %v1120_v35 = vrot.slane %v10175_v47, 7  ;;  %1263 = vst [vmem:[#allocation2 + $0x260] sm:$0xff] %v10211_v15  ;;  %v412_v40 = vadd.s32 56, %v9891_v2 }
  0xab   : > { %1835 = vmatmul.mubr.bf16.vlgmr.msra.gmra.mrb[0].mxu0 %v9614_v3  ;;  %v10159_v3 = vld [vmem:[%s9868_s24 + $0xa8] sm:$0xff]  ;;  %1210 = vst [vmem:[#allocation2 + $0x78] sm:$0xff] %v10167_v46  ;;  %8097 = vmatprep.mubr.bf16.mxu1 %v1564_v49  ;;  %v10202_v47 = vsel %vm1336_vm6, %v1358_v18, %v1360_v52  ;;  %v1576_v49 = vpack.c.bf16 %v10121_v53, %v10118_v62  ;;  %v12696_v22 = vrot.slane %v10000_v12, 7 }
  0xac   : > { %1842 = vmatprep.mubr.bf16.mxu0 %v1566_v50  ;;  %1261 = vst [vmem:[#allocation2 + $0x230] sm:$0xff] %v10159_v3  ;;  %v10187_v50 = vsel %vm1336_vm6, %v1356_v8, %v1358_v18  ;;  %7371 = vmatpush3.bf16.msra.mxu0 %v10124_v56  ;;  %v1362_v8 = vrot.slane %v10043_v30, 1  ;;  %v10205_v48 = vsel %vm1110_vm8, %v1116_v7, %v1118_v60  ;;  %1445 = vst [vmem:[#allocation2 + $0x148] sm:$0xff] %v10202_v47  ;;  %v10231_v62 = vld [vmem:[%s9868_s24 + $0xc8] sm:$0xff] }
  0xad   : > { %1444 = vst [vmem:[#allocation2 + $0x130] sm:$0xff] %v10187_v50  ;;  %7372 = vmatprep.subr.bf16.mxu0 %v10133_v9  ;;  %8098 = vmatmul.mubr.bf16.vlgmr.msra.gmra.mrb[0].mxu1 %v1567_v36  ;;  %v10208_v41 = vsel %vm1110_vm8, %v1118_v60, %v1120_v35  ;;  %1211 = vst [vmem:[#allocation2 + $0x90] sm:$0xff] %v10205_v48  ;;  %v10219_v7 = vsel %vm931_vm12, 1.0, %v12615_v1  ;;  %v553_v60 = vand.u32 15, %v421_v17  ;;  %v423_v36 = vadd.s32 144, %v9891_v2  ;;  %v8902_v17 = vld [vmem:[#allocation7 + $0x118] sm:$0xff]  }
  0xae   : > { %8101 = vmatprep.mubr.bf16.mxu1 %v1570_v32  ;;  %1212 = vst [vmem:[#allocation2 + $0xa8] sm:$0xff] %v10208_v41  ;;  %12685 = vst [vmem:[#allocation26_spill] sm:$0xff] %v10219_v7  ;;  %v10222_v18 = vsel %vm1336_vm6, %v1360_v52, %v1362_v8  ;;  %8397 = vmatpush3.bf16.msra.mxu1 %v10124_v56  ;;  %v10227_v32 = vld [vmem:[%s9868_s24 + $0xc0] sm:$0xff]  ;;  %v1286_v53 = vmul.f32 %v10219_v7, %v10046_v31  ;;  %v10241_v56 = vld [vmem:[%s9868_s24 + $0xd0] sm:$0xff]  ;;  %v425_v1 = vadd.s32 160, %v9891_v2  ;;  %v12687_v7 = vmov 0.0  }
  0xaf   : > { %1446 = vst [vmem:[#allocation2 + $0x160] sm:$0xff] %v10222_v18  ;;  %8390 = vmatprep.subr.bf16.mxu1 %v10133_v9  ;;  %1264 = vst [vmem:[#allocation2 + $0x278] sm:$0xff] %v10227_v32  ;;  %v1568_v55 = vpack.c.bf16 %v10167_v46, %v10131_v6  ;;  %v8901_v52 = vld [vmem:[#allocation7 + $0xd0] sm:$0xff]   ;;  %vm933_vm13 = vcmp.ne.s32.totalorder %v553_v60, 0  ;;  %v12686_v6 = vrot.slane %v10000_v12, 7  ;;  %v567_v54 = vand.u32 15, %v423_v36 }
  0xb0   : > { %1265 = vst [vmem:[#allocation2 + $0x290] sm:$0xff] %v10231_v62  ;;  %7373 = vmatpush3.bf16.msra.mxu0 %v8899_v25  ;;  %1266 = vst [vmem:[#allocation2 + $0x2a8] sm:$0xff] %v10241_v56  ;;  %v1364_v9 = vrot.slane %v1286_v53, 1  ;;  %v10260_v27 = vsel %vm933_vm13, 1.0, %v12687_v7  ;;  %v581_v57 = vand.u32 15, %v425_v1  ;;  %v8903_v60 = vld [vmem:[#allocation7 + $0xd8] sm:$0xff]   ;;  %v1582_v51 = vpack.c.bf16 %v10202_v47, %v10187_v50 }
  0xb1   : > { %7374 = vmatprep.subr.bf16.mxu0 %v8900_v33  ;;  %v10257_v46 = vsel %vm1110_vm8, %v1120_v35, %v12686_v6  ;;  %12688 = vst [vmem:[#allocation27_spill] sm:$0xff] %v10260_v27  ;;  %v12689_v35 = vrot.slane %v10063_v37, 1  ;;  %vm935_vm15 = vcmp.ne.s32.totalorder %v567_v54, 0  ;;  %v1378_v28 = vrot.slane %v10159_v3, 1 }
  0xb2   : > { %1213 = vst [vmem:[#allocation2 + $0xc0] sm:$0xff] %v10257_v46  ;;  %8398 = vmatpush3.bf16.msra.mxu1 %v8899_v25  ;;  %v10265_v0 = vsel %vm1336_vm6, %v1362_v8, %v1364_v9  ;;  %vm937_vm0 = vcmp.ne.s32.totalorder %v581_v57, 0  ;;  %v1374_v8 = vrot.slane %v10136_v10, 1  ;;  %v8904_v25 = vld [vmem:[#allocation7 + $0x120] sm:$0xff]   ;;  %v427_v57 = vadd.s32 176, %v9891_v2 }
  0xb3   : > { %1843 = vmatmul.mubr.bf16.gmra.mrb[4].mxu0 %v1565_v61  ;;  %v490_v61 = vand.u32 15, %v412_v40  ;;  %v10272_v53 = vsel %vm1336_vm6, %v1364_v9, %v12689_v35  ;;  %8391 = vmatprep.subr.bf16.mxu1 %v8900_v33  ;;  %1447 = vst [vmem:[#allocation2 + $0x178] sm:$0xff] %v10265_v0  ;;  %v12691_v33 = vpack.c.bf16 %v10098_v45, %v10081_v42  ;;  %v10286_v9 = vsel %vm935_vm15, 1.0, %v12687_v7  ;;  %v10305_v35 = vld [vmem:[%s9868_s24 + $0xe8] sm:$0xff] }
  0xb4   : > { %1850 = vmatprep.mubr.bf16.mxu0 %v1569_v63  ;;  %v1288_v63 = vmul.f32 %v10260_v27, %v10066_v38  ;;  %7375 = vmatpush3.bf16.msra.mxu0 %v8901_v52  ;;  %1448 = vst [vmem:[#allocation2 + $0x190] sm:$0xff] %v10272_v53  ;;  %12692 = vst [vmem:[#allocation29_spill] sm:$0xff] %v10286_v9  ;;  %v10289_v54 = vsel %vm937_vm0, 1.0, %v12687_v7  ;;  %v1290_v6 = vmul.f32 %v10286_v9, %v10092_v44 }
  0xb5   : > { %vm828_vm14 = vcmp.ne.s32.totalorder %v490_v61, 15  ;;  %7376 = vmatprep.subr.bf16.mxu0 %v8902_v17  ;;  %8102 = vmatmul.mubr.bf16.gmra.mrb[4].mxu1 %v12691_v33  ;;  %12693 = vst [vmem:[#allocation30_spill] sm:$0xff] %v10289_v54  ;;  %v10292_v61 = vld [vmem:[%s9868_s24 + $0xd8] sm:$0xff]  ;;  %v1292_v42 = vmul.f32 %v10289_v54, %v10139_v11  ;;  %v414_v45 = vadd.s32 72, %v9891_v2  ;;  %v10308_v33 = vld [vmem:[%s9868_s24 + $0xf0] sm:$0xff]  ;;  %1269 = vst [vmem:[#allocation2 + $0x2f0] sm:$0xff] %v10305_v35 }
  0xb6   : > { %v10277_v1 = vsel %vm828_vm14, 1.0, %v12687_v7  ;;  %v1368_v36 = vrot.slane %v1288_v63, 1  ;;  %8105 = vmatprep.mubr.bf16.mxu1 %v1576_v49  ;;  %8399 = vmatpush3.bf16.msra.mxu1 %v8901_v52  ;;  %v10301_v63 = vld [vmem:[%s9868_s24 + $0xe0] sm:$0xff]  ;;  %1267 = vst [vmem:[#allocation2 + $0x2c0] sm:$0xff] %v10292_v61  ;;  %v12694_v49 = vrot.slane %v10063_v37, 1  ;;  %1270 = vst [vmem:[#allocation2 + $0x308] sm:$0xff] %v10308_v33  ;;  %v1575_v52 = vpack.c.bf16 %v10004_v13, %v10000_v12 }
  0xb7   : > { %12690 = vst [vmem:[#allocation28_spill] sm:$0xff] %v10277_v1  ;;  %v1053_v40 = vmul.f32 %v10277_v1, %v10004_v13  ;;  %8392 = vmatprep.subr.bf16.mxu1 %v8902_v17  ;;  %1268 = vst [vmem:[#allocation2 + $0x2d8] sm:$0xff] %v10301_v63  ;;  %v12695_v17 = vpack.c.bf16 %v9981_v5, %v9978_v4  ;;  %v1585_v47 = vpack.c.bf16 %v10265_v0, %v10222_v18 }
  0xb8   : > { %v10313_v27 = vsel %vm1336_vm6, %v12694_v49, %v1368_v36  ;;  %v10316_v54 = vsel %vm1336_vm6, %v1368_v36, %v1370_v59  ;;  %7377 = vmatpush3.bf16.msra.mxu0 %v8903_v60  ;;  %v1376_v36 = vrot.slane %v1292_v42, 1  ;;  %v504_v49 = vand.u32 15, %v414_v45  ;;  %v8905_v42 = vld [vmem:[#allocation7 + $0xe0] sm:$0xff]   ;;  %v8906_v45 = vld [vmem:[#allocation7 + $0x128] sm:$0xff]  }
  0xb9   : > { %v1124_v9 = vrot.slane %v1053_v40, 7  ;;  %1449 = vst [vmem:[#allocation2 + $0x1a8] sm:$0xff] %v10313_v27  ;;  %v1372_v40 = vrot.slane %v1290_v6, 1  ;;  %1450 = vst [vmem:[#allocation2 + $0x1c0] sm:$0xff] %v10316_v54  ;;  %7378 = vmatprep.subr.bf16.mxu0 %v8904_v25  ;;  %v595_v6 = vand.u32 15, %v427_v57  ;;  %v429_v0 = vadd.s32 192, %v9891_v2 }
  0xba   : > { %v10350_v12 = vsel %vm1336_vm6, %v1374_v8, %v1376_v36  ;;  %8400 = vmatpush3.bf16.msra.mxu1 %v8903_v60  ;;  %vm830_vm1 = vcmp.ne.s32.totalorder %v504_v49, 15  ;;  %v1588_v57 = vpack.c.bf16 %v10313_v27, %v10272_v53 }
  0xbb   : > { %1851 = vmatmul.mubr.bf16.gmra.mrb[8].mxu0 %v1568_v55  ;;  %v10332_v1 = vsel %vm1110_vm8, %v12696_v22, %v1124_v9  ;;  %v12697_v55 = vrot.slane %v10007_v14, 7  ;;  %v10344_v4 = vsel %vm1336_vm6, %v1370_v59, %v1372_v40  ;;  %v10347_v5 = vsel %vm1336_vm6, %v1372_v40, %v1374_v8  ;;  %1453 = vst [vmem:[#allocation2 + $0x208] sm:$0xff] %v10350_v12  ;;  %v8907_v59 = vld [vmem:[#allocation7 + $0xe8] sm:$0xff]  }
  0xbc   : > { %1858 = vmatprep.mubr.bf16.mxu0 %v12695_v17  ;;  %1214 = vst [vmem:[#allocation2 + $0xd8] sm:$0xff] %v10332_v1  ;;  %v1571_v22 = vpack.c.bf16 %v10208_v41, %v10205_v48  ;;  %1451 = vst [vmem:[#allocation2 + $0x1d8] sm:$0xff] %v10344_v4  ;;  %vm939_vm2 = vcmp.ne.s32.totalorder %v595_v6, 0  ;;  %8393 = vmatprep.subr.bf16.mxu1 %v8904_v25  ;;  %v10363_v60 = vsel %vm830_vm1, 1.0, %v12687_v7  ;;  %v431_v40 = vadd.s32 208, %v9891_v2 }
  0xbd   : > { %v10337_v13 = vsel %vm1110_vm8, %v1124_v9, %v12697_v55  ;;  %1452 = vst [vmem:[#allocation2 + $0x1f0] sm:$0xff] %v10347_v5  ;;  %7379 = vmatpush3.bf16.msra.mxu0 %v8905_v42  ;;  %12698 = vst [vmem:[#allocation31_spill] sm:$0xff] %v10363_v60  ;;  %v10366_v48 = vsel %vm939_vm2, 1.0, %v12687_v7  ;;  %v10369_v41 = vsel %vm1336_vm6, %v1376_v36, %v1378_v28  ;;  %v12628_v9 = vrot.slane %v10211_v15, 1  ;;  %v8908_v36 = vld [vmem:[#allocation7 + $0x130] sm:$0xff]  }
  0xbe   : > { %1215 = vst [vmem:[#allocation2 + $0xf0] sm:$0xff] %v10337_v13  ;;  %12699 = vst [vmem:[#allocation32_spill] sm:$0xff] %v10366_v48  ;;  %7380 = vmatprep.subr.bf16.mxu0 %v8906_v45  ;;  %v12700_v8 = vpack.c.bf16 %v10170_v43, %v10146_v16  ;;  %v1055_v25 = vmul.f32 %v10363_v60, %v10018_v19  ;;  %v1294_v18 = vmul.f32 %v10366_v48, %v10162_v23  ;;  %v10434_v16 = vld [vmem:[#allocation7 + $0x140] sm:$0xff]  }
  0xbf   : > { %1454 = vst [vmem:[#allocation2 + $0x220] sm:$0xff] %v10369_v41  ;;  %v416_v43 = vadd.s32 88, %v9891_v2  ;;  %8401 = vmatpush3.bf16.msra.mxu1 %v8905_v42  ;;  %v609_v55 = vand.u32 15, %v429_v0  ;;  %v1130_v6 = vrot.slane %v10021_v20, 7  ;;  %v623_v53 = vand.u32 15, %v431_v40 }
  0xc0   : > { %8106 = vmatmul.mubr.bf16.gmra.mrb[8].mxu1 %v12700_v8  ;;  %v1128_v49 = vrot.slane %v1055_v25, 7  ;;  %v1380_v17 = vrot.slane %v1294_v18, 1  ;;  %8394 = vmatprep.subr.bf16.mxu1 %v8906_v45  ;;  %v433_v8 = vadd.s32 224, %v9891_v2  ;;  %v12701_v42 = vrot.slane %v10007_v14, 7 }
  0xc1   : > { %8109 = vmatprep.mubr.bf16.mxu1 %v1582_v51  ;;  %7381 = vmatpush3.bf16.msra.mxu0 %v8907_v59  ;;  %v518_v27 = vand.u32 15, %v416_v43  ;;  %vm941_vm3 = vcmp.ne.s32.totalorder %v609_v55, 0  ;;  %v8910_v43 = vld [vmem:[#allocation7 + $0x138] sm:$0xff]   ;;  %vm943_vm5 = vcmp.ne.s32.totalorder %v623_v53, 0  ;;  %v418_v0 = vadd.s32 104, %v9891_v2 }
  0xc2   : > { %7382 = vmatprep.subr.bf16.mxu0 %v8908_v36  ;;  %v10394_v25 = vsel %vm1110_vm8, %v12701_v42, %v1128_v49  ;;  %v10397_v18 = vsel %vm1336_vm6, %v1378_v28, %v1380_v17  ;;  %v10402_v45 = vsel %vm1336_vm6, %v1380_v17, %v12628_v9  ;;  %v1386_v28 = vrot.slane %v10231_v62, 1  ;;  %v10415_v17 = vld [vmem:[#allocation2 + $0x8] sm:$0xff]  ;;  %v8911_v51 = vld [vmem:[#allocation7 + $0xf8] sm:$0xff]   ;;  %v8917_v9 = vld [vmem:[#allocation7 + $0x1c0] sm:$0xff]  }
  0xc3   : > { %1859 = vmatmul.mubr.bf16.gmra.mrb[12].mxu0 %v1571_v22  ;;  %v8909_v22 = vld [vmem:[#allocation7 + $0xf0] sm:$0xff]   ;;  %1216 = vst [vmem:[#allocation2 + $0x108] sm:$0xff] %v10394_v25  ;;  %1455 = vst [vmem:[#allocation2 + $0x238] sm:$0xff] %v10397_v18  ;;  %vm832_vm4 = vcmp.ne.s32.totalorder %v518_v27, 15  ;;  %8402 = vmatpush3.bf16.msra.mxu1 %v8907_v59  ;;  %v10421_v42 = vsel %vm1110_vm8, %v1128_v49, %v1130_v6  ;;  %v10427_v59 = vsel %vm943_vm5, 1.0, %v10415_v17  ;;  %v637_v27 = vand.u32 15, %v433_v8 }
  0xc4   : > { %1866 = vmatprep.mubr.bf16.mxu0 %v1575_v52  ;;  %v10409_v52 = vsel %vm941_vm3, 1.0, %v12687_v7  ;;  %1456 = vst [vmem:[#allocation2 + $0x250] sm:$0xff] %v10402_v45  ;;  %v10418_v55 = vsel %vm832_vm4, 1.0, %v10415_v17  ;;  %8395 = vmatprep.subr.bf16.mxu1 %v8908_v36  ;;  %1217 = vst [vmem:[#allocation2 + $0x120] sm:$0xff] %v10421_v42  ;;  %v1298_v49 = vmul.f32 %v10427_v59, %v10241_v56  ;;  %v1390_v36 = vrot.slane %v10292_v61, 1 }
  0xc5   : > { %12702 = vst [vmem:[#allocation33_spill] sm:$0xff] %v10409_v52  ;;  %v1296_v40 = vmul.f32 %v10409_v52, %v10227_v32  ;;  %12703 = vst [vmem:[#allocation34_spill] sm:$0xff] %v10418_v55  ;;  %7383 = vmatpush3.bf16.msra.mxu0 %v8909_v22  ;;  %v1057_v7 = vmul.f32 %v10418_v55, %v10024_v21  ;;  %v1134_v53 = vrot.slane %v10039_v29, 7  ;;  %vm945_vm7 = vcmp.ne.s32.totalorder %v637_v27, 0 }
  0xc6   : > { %12704 = vst [vmem:[#allocation35_spill] sm:$0xff] %v10427_v59  ;;  %7384 = vmatprep.subr.bf16.mxu0 %v8910_v43  ;;  %v532_v8 = vand.u32 15, %v418_v0  ;;  %v435_v48 = vadd.s32 240, %v9891_v2  ;;  %v1388_v60 = vrot.slane %v1298_v49, 1  ;;  %v10446_v55 = vsel %vm945_vm7, 1.0, %v10415_v17 }
  0xc7   : > { %v1384_v50 = vrot.slane %v1296_v40, 1  ;;  %v1132_v52 = vrot.slane %v1057_v7, 7  ;;  %8403 = vmatpush3.bf16.msra.mxu1 %v8909_v22  ;;  %12706 = vst [vmem:[#allocation36_spill] sm:$0xff] %v10446_v55  ;;  %v1394_v0 = vrot.slane %v10305_v35, 1 }
  0xc8   : > { %8110 = vmatmul.mubr.bf16.gmra.mrb[12].mxu1 %v1585_v47  ;;  %v12705_v47 = vrot.slane %v10211_v15, 1  ;;  %8396 = vmatprep.subr.bf16.mxu1 %v8910_v43  ;;  %vm834_vm9 = vcmp.ne.s32.totalorder %v532_v8, 15  ;;  %v12708_v43 = vpack.c.bf16 %v10018_v19, %v10007_v14  ;;  %v10476_v14 = vpack.c.bf16 %v10043_v30, %v10039_v29 }
  0xc9   : > { %8113 = vmatprep.mubr.bf16.mxu1 %v1588_v57  ;;  %v10443_v59 = vsel %vm1336_vm6, %v1384_v50, %v1386_v28  ;;  %7385 = vmatpush3.bf16.msra.mxu0 %v8911_v51  ;;  %v12707_v57 = vpack.c.bf16 %v10332_v1, %v10257_v46  ;;  %v1133_v22 = vsel %vm1110_vm8, %v1130_v6, %v1132_v52  ;;  %v10471_v7 = vsel %vm834_vm9, 1.0, %v10415_v17 }
  0xca   : > { %v10440_v40 = vsel %vm1336_vm6, %v12705_v47, %v1384_v50  ;;  %1458 = vst [vmem:[#allocation2 + $0x280] sm:$0xff] %v10443_v59  ;;  %v1300_v50 = vmul.f32 %v10446_v55, %v10301_v63  ;;  %7506 = vmatprep.subr.bf16.mxu0 %v8917_v9  ;;  %v10462_v46 = vpack.c.bf16 %v10024_v21, %v10021_v20  ;;  %1218 = vst [vmem:[#allocation2 + $0x138] sm:$0xff] %v1133_v22 }
  0xcb   : > { %1867 = vmatmul.mubr.bf16.gmra.mrb[16].mxu0 %v12707_v57  ;;  %1457 = vst [vmem:[#allocation2 + $0x268] sm:$0xff] %v10440_v40  ;;  %v10465_v1 = vsel %vm1336_vm6, %v1386_v28, %v1388_v60  ;;  %v10468_v6 = vsel %vm1336_vm6, %v1388_v60, %v1390_v36  ;;  %12709 = vst [vmem:[#allocation37_spill] sm:$0xff] %v10471_v7  ;;  %v1059_v20 = vmul.f32 %v10471_v7, %v10043_v30 }
  0xcc   : > { %1874 = vmatprep.mubr.bf16.mxu0 %v12708_v43  ;;  %1459 = vst [vmem:[#allocation2 + $0x298] sm:$0xff] %v10465_v1  ;;  %v1392_v19 = vrot.slane %v1300_v50, 1  ;;  %1460 = vst [vmem:[#allocation2 + $0x2b0] sm:$0xff] %v10468_v6  ;;  %v10482_v21 = vsel %vm1110_vm8, %v1132_v52, %v1134_v53  ;;  %8404 = vmatpush3.bf16.msra.mxu1 %v8911_v51  ;;  %v1577_v60 = vpack.c.bf16 %v10394_v25, %v10337_v13  ;;  %v10501_v13 = vld [vmem:[%s9868_s24 + $0xf8] sm:$0xff]  ;;  %s12557_s24 = scalar_lea.hbm %s12609_s8, %s7230_s16 }
  0xcd   : > { %1219 = vst [vmem:[#allocation2 + $0x150] sm:$0xff] %v10482_v21  ;;  %v651_v9 = vand.u32 15, %v435_v48  ;;  %v420_v29 = vadd.s32 120, %v9891_v2  ;;  %v1138_v28 = vrot.slane %v10046_v31, 7  ;;  %8129 = vmatprep.subr.bf16.mxu1 %v10434_v16  ;;  %v1136_v30 = vrot.slane %v1059_v20, 7  ;;  %1271 = vst [vmem:[#allocation2 + $0x320] sm:$0xff] %v10501_v13 }
  0xce   : > { %v10491_v27 = vsel %vm1336_vm6, %v1390_v36, %v1392_v19  ;;  %v10494_v52 = vsel %vm1336_vm6, %v1392_v19, %v1394_v0  ;;  %v10498_v51 = vpack.c.bf16 %v10069_v39, %v10066_v38  ;;  %v12710_v48 = vpack.c.bf16 %v10344_v4, %v10316_v54 }
  0xcf   : > { %v1597_v25 = vpack.c.bf16 %v10397_v18, %v10369_v41  ;;  %1461 = vst [vmem:[#allocation2 + $0x2c8] sm:$0xff] %v10491_v27  ;;  %vm947_vm10 = vcmp.ne.s32.totalorder %v651_v9, 0  ;;  %1462 = vst [vmem:[#allocation2 + $0x2e0] sm:$0xff] %v10494_v52  ;;  %v546_v49 = vand.u32 15, %v420_v29  ;;  %v422_v36 = vadd.s32 136, %v9891_v2 }
  0xd0   : > { %8114 = vmatmul.mubr.bf16.gmra.mrb[16].mxu1 %v12710_v48  ;;  %v12711_v8 = vpack.c.bf16 %v10350_v12, %v10347_v5  ;;  %v1600_v54 = vpack.c.bf16 %v10440_v40, %v10402_v45  ;;  %v10518_v4 = vsel %vm1110_vm8, %v1134_v53, %v1136_v30  ;;  %v10521_v41 = vsel %vm947_vm10, 1.0, %v10415_v17 }
  0xd1   : > { %12712 = vst [vmem:[#allocation38_spill] sm:$0xff] %v10521_v41  ;;  %v10524_v18 = vsel %vm1110_vm8, %v1136_v30, %v1138_v28  ;;  %v10527_v47 = vpack.c.bf16 %v1133_v22, %v10421_v42  ;;  %1220 = vst [vmem:[#allocation2 + $0x168] sm:$0xff] %v10518_v4  ;;  %v10532_v5 = vmul.f32 %v10521_v41, %v10308_v33  ;;  %vm836_vm11 = vcmp.ne.s32.totalorder %v546_v49, 15 }
  0xd2   : > { %8117 = vmatprep.mubr.bf16.mxu1 %v12711_v8  ;;  %1221 = vst [vmem:[#allocation2 + $0x180] sm:$0xff] %v10524_v18  ;;  %v560_v12 = vand.u32 15, %v422_v36  ;;  %v10536_v45 = vsel %vm836_vm11, 1.0, %v10415_v17  ;;  %v1142_v53 = vrot.slane %v10066_v38, 7  ;;  %v10541_v42 = vpack.c.bf16 %v10136_v10, %v10092_v44 }
  0xd3   : > { %1875 = vmatmul.mubr.bf16.gmra.mrb[20].mxu0 %v1577_v60  ;;  %12713 = vst [vmem:[#allocation39_spill] sm:$0xff] %v10536_v45  ;;  %v424_v40 = vadd.s32 152, %v9891_v2  ;;  %v1396_v57 = vrot.slane %v10532_v5, 1  ;;  %v1061_v22 = vmul.f32 %v10536_v45, %v10063_v37  ;;  %v10550_v50 = vpack.c.bf16 %v10159_v3, %v10139_v11  ;;  %v8925_v5 = vld [vmem:[#allocation7 + $0x178] sm:$0xff]  }
  0xd4   : > { %1882 = vmatprep.mubr.bf16.mxu0 %v10462_v46  ;;  %vm838_vm12 = vcmp.ne.s32.totalorder %v560_v12, 15  ;;  %v1146_v19 = vrot.slane %v10092_v44, 7  ;;  %v426_v20 = vadd.s32 168, %v9891_v2  ;;  %v10566_v30 = vpack.c.bf16 %v10211_v15, %v10162_v23 }
  0xd5   : > { %v10553_v38 = vsel %vm838_vm12, 1.0, %v10415_v17  ;;  %v574_v43 = vand.u32 15, %v424_v40  ;;  %v10560_v60 = vsel %vm1336_vm6, %v1394_v0, %v1396_v57  ;;  %v1140_v9 = vrot.slane %v1061_v22, 7 }
  0xd6   : > { %12714 = vst [vmem:[#allocation40_spill] sm:$0xff] %v10553_v38  ;;  %v1063_v29 = vmul.f32 %v10553_v38, %v10069_v39  ;;  %v1603_v48 = vpack.c.bf16 %v10465_v1, %v10443_v59  ;;  %1463 = vst [vmem:[#allocation2 + $0x2f8] sm:$0xff] %v10560_v60  ;;  %v588_v44 = vand.u32 15, %v426_v20  ;;  %v428_v49 = vadd.s32 184, %v9891_v2 }
  0xd7   : > { %vm840_vm13 = vcmp.ne.s32.totalorder %v574_v43, 15  ;;  %v10573_v0 = vsel %vm1110_vm8, %v1138_v28, %v1140_v9  ;;  %v10576_v36 = vsel %vm1110_vm8, %v1140_v9, %v1142_v53  ;;  %v1150_v1 = vrot.slane %v10139_v11, 7 }
  0xd8   : > { %8118 = vmatmul.mubr.bf16.gmra.mrb[20].mxu1 %v1597_v25  ;;  %v1144_v39 = vrot.slane %v1063_v29, 7  ;;  %v10579_v8 = vsel %vm840_vm13, 1.0, %v10415_v17  ;;  %1222 = vst [vmem:[#allocation2 + $0x198] sm:$0xff] %v10573_v0  ;;  %1223 = vst [vmem:[#allocation2 + $0x1b0] sm:$0xff] %v10576_v36  ;;  %vm842_vm14 = vcmp.ne.s32.totalorder %v588_v44, 15  ;;  %v602_v28 = vand.u32 15, %v428_v49 }
  0xd9   : > { %12715 = vst [vmem:[#allocation41_spill] sm:$0xff] %v10579_v8  ;;  %8121 = vmatprep.mubr.bf16.mxu1 %v1600_v54  ;;  %v1065_v59 = vmul.f32 %v10579_v8, %v10136_v10  ;;  %v1606_v25 = vpack.c.bf16 %v10491_v27, %v10468_v6  ;;  %v10595_v54 = vsel %vm842_vm14, 1.0, %v10415_v17  ;;  %v1154_v6 = vrot.slane %v10162_v23, 7 }
  0xda   : > { %v10589_v12 = vsel %vm1110_vm8, %v1142_v53, %v1144_v39  ;;  %v10592_v40 = vsel %vm1110_vm8, %v1144_v39, %v1146_v19  ;;  %12716 = vst [vmem:[#allocation42_spill] sm:$0xff] %v10595_v54  ;;  %v1067_v11 = vmul.f32 %v10595_v54, %v10159_v3  ;;  %vm844_vm15 = vcmp.ne.s32.totalorder %v602_v28, 15 }
  0xdb   : > { %1883 = vmatmul.mubr.bf16.gmra.mrb[24].mxu0 %v10527_v47  ;;  %1224 = vst [vmem:[#allocation2 + $0x1c8] sm:$0xff] %v10589_v12  ;;  %v1148_v10 = vrot.slane %v1065_v59, 7  ;;  %1225 = vst [vmem:[#allocation2 + $0x1e0] sm:$0xff] %v10592_v40  ;;  %v10605_v27 = vsel %vm844_vm15, 1.0, %v10415_v17  ;;  %v10609_v53 = vpack.c.bf16 %v10231_v62, %v10227_v32  ;;  %v430_v22 = vadd.s32 200, %v9891_v2 }
  0xdc   : > { %1890 = vmatprep.mubr.bf16.mxu0 %v10476_v14  ;;  %12717 = vst [vmem:[#allocation43_spill] sm:$0xff] %v10605_v27  ;;  %v1158_v43 = vrot.slane %v10227_v32, 7  ;;  %v1152_v23 = vrot.slane %v1067_v11, 7  ;;  %v1069_v9 = vmul.f32 %v10605_v27, %v10211_v15  ;;  %v10625_v44 = vpack.c.bf16 %v10292_v61, %v10241_v56 }
  0xdd   : > { %v10614_v20 = vsel %vm1110_vm8, %v1146_v19, %v1148_v10  ;;  %v10617_v3 = vsel %vm1110_vm8, %v1148_v10, %v1150_v1  ;;  %v616_v29 = vand.u32 15, %v430_v22  ;;  %v432_v32 = vadd.s32 216, %v9891_v2 }
  0xde   : > { %1226 = vst [vmem:[#allocation2 + $0x1f8] sm:$0xff] %v10614_v20  ;;  %1227 = vst [vmem:[#allocation2 + $0x210] sm:$0xff] %v10617_v3  ;;  %v10630_v19 = vpack.c.bf16 %v10518_v4, %v10482_v21  ;;  %v10633_v49 = vsel %vm1110_vm8, %v1150_v1, %v1152_v23  ;;  %v10636_v15 = vsel %vm1110_vm8, %v1152_v23, %v1154_v6  ;;  %v1156_v39 = vrot.slane %v1069_v9, 7 }
  0xdf   : > { %v10640_v59 = vpack.c.bf16 %v10063_v37, %v10046_v31  ;;  %1228 = vst [vmem:[#allocation2 + $0x228] sm:$0xff] %v10633_v49  ;;  %1229 = vst [vmem:[#allocation2 + $0x240] sm:$0xff] %v10636_v15  ;;  %vm846_vm0 = vcmp.ne.s32.totalorder %v616_v29, 15  ;;  %v630_v28 = vand.u32 15, %v432_v32  ;;  %v10646_v21 = vpack.c.bf16 %v10305_v35, %v10301_v63 }
  0xe0   : > { %8122 = vmatmul.mubr.bf16.gmra.mrb[24].mxu1 %v1603_v48  ;;  %v10649_v4 = vsel %vm1110_vm8, %v1154_v6, %v1156_v39  ;;  %v10652_v48 = vsel %vm846_vm0, 1.0, %v10415_v17  ;;  %v10655_v31 = vsel %vm1110_vm8, %v1156_v39, %v1158_v43  ;;  %v434_v37 = vadd.s32 232, %v9891_v2 }
  0xe1   : > { %8125 = vmatprep.mubr.bf16.mxu1 %v1606_v25  ;;  %12718 = vst [vmem:[#allocation44_spill] sm:$0xff] %v10652_v48  ;;  %1230 = vst [vmem:[#allocation2 + $0x258] sm:$0xff] %v10649_v4  ;;  %v1071_v1 = vmul.f32 %v10652_v48, %v10231_v62  ;;  %vm848_vm1 = vcmp.ne.s32.totalorder %v630_v28, 15  ;;  %v1162_v25 = vrot.slane %v10241_v56, 7  ;;  %v1609_v6 = vpack.c.bf16 %v10560_v60, %v10494_v52 }
  0xe2   : > { %1231 = vst [vmem:[#allocation2 + $0x270] sm:$0xff] %v10655_v31  ;;  %v10665_v10 = vsel %vm848_vm1, 1.0, %v10415_v17  ;;  %v644_v11 = vand.u32 15, %v434_v37  ;;  %v1166_v23 = vrot.slane %v10301_v63, 7  ;;  %v436_v56 = vadd.s32 248, %v9891_v2 }
  0xe3   : > { %1891 = vmatmul.mubr.bf16.gmra.mrb[28].mxu0 %v10630_v19  ;;  %12719 = vst [vmem:[#allocation45_spill] sm:$0xff] %v10665_v10  ;;  %v1160_v22 = vrot.slane %v1071_v1, 7  ;;  %v1073_v62 = vmul.f32 %v10665_v10, %v10292_v61  ;;  %v1586_v60 = vpack.c.bf16 %v10573_v0, %v10524_v18  ;;  %v1170_v28 = vrot.slane %v10308_v33, 7  ;;  %v8913_v1 = vld [vmem:[#allocation7 + $0x148] sm:$0xff]  }
  0xe4   : > { %1898 = vmatprep.mubr.bf16.mxu0 %v10640_v59  ;;  %vm850_vm2 = vcmp.ne.s32.totalorder %v644_v11, 15  ;;  %v658_v63 = vand.u32 15, %v436_v56  ;;  %v8920_v56 = vld [vmem:[#allocation7 + $0x1c8] sm:$0xff]  }
  0xe5   : > { %v10675_v9 = vsel %vm1110_vm8, %v1158_v43, %v1160_v22  ;;  %v10678_v29 = vsel %vm1110_vm8, %v1160_v22, %v1162_v25  ;;  %v1164_v32 = vrot.slane %v1073_v62, 7  ;;  %v10681_v52 = vsel %vm850_vm2, 1.0, %v10415_v17  ;;  %v2172_v62 = vld [vmem:[#allocation2 + $0x80] sm:$0xff] }
  0xe6   : > { %12720 = vst [vmem:[#allocation46_spill] sm:$0xff] %v10681_v52  ;;  %1232 = vst [vmem:[#allocation2 + $0x288] sm:$0xff] %v10675_v9  ;;  %v1075_v61 = vmul.f32 %v10681_v52, %v10305_v35  ;;  %vm852_vm3 = vcmp.ne.s32.totalorder %v658_v63, 15  ;;  %v1398_v22 = vrot.slane %v10501_v13, 1  ;;  %v8923_v63 = vld [vmem:[#allocation7 + $0x1d0] sm:$0xff]  }
  0xe7   : > { %1233 = vst [vmem:[#allocation2 + $0x2a0] sm:$0xff] %v10678_v29  ;;  %v10690_v43 = vsel %vm1110_vm8, %v1162_v25, %v1164_v32  ;;  %v10693_v39 = vsel %vm1110_vm8, %v1164_v32, %v1166_v23  ;;  %v10700_v35 = vsel %vm852_vm3, 1.0, %v10415_v17  ;;  %v1589_v25 = vpack.c.bf16 %v10589_v12, %v10576_v36  ;;  %v8915_v36 = vld [vmem:[#allocation7 + $0x158] sm:$0xff]   ;;  %v8919_v12 = vld [vmem:[#allocation7 + $0x168] sm:$0xff]  }
  0xe8   : > { %8126 = vmatmul.mubr.bf16.gmra.mrb[28].mxu1 %v1609_v6  ;;  %1234 = vst [vmem:[#allocation2 + $0x2b8] sm:$0xff] %v10690_v43  ;;  %v1168_v18 = vrot.slane %v1075_v61, 7  ;;  %1235 = vst [vmem:[#allocation2 + $0x2d0] sm:$0xff] %v10693_v39  ;;  %v1077_v37 = vmul.f32 %v10700_v35, %v10501_v13  ;;  %v8914_v6 = vld [vmem:[#allocation7 + $0x150] sm:$0xff]   ;;  %v2171_v32 = vld [vmem:[#allocation2 + $0x78] sm:$0xff] }
  0xe9   : > { %2571 = vmatprep.mubr.bf16.mxu1 %v10462_v46  ;;  %12721 = vst [vmem:[#allocation47_spill] sm:$0xff] %v10700_v35  ;;  %1465 = vst [vmem:[#allocation2 + $0x328] sm:$0x7f] %v1398_v22  ;;  %v2175_v61 = vld [vmem:[#allocation2 + $0x98] sm:$0xff] }
  0xea   : > { %v10703_v0 = vsel %vm1110_vm8, %v1166_v23, %v1168_v18  ;;  %v1171_v33 = vsel %vm1110_vm8, %v1168_v18, %v1170_v28  ;;  %v1172_v46 = vrot.slane %v1077_v37, 7  ;;  %v8918_v23 = vld [vmem:[#allocation7 + $0x180] sm:$0xff]   ;;  %v8927_v37 = vld [vmem:[#allocation7 + $0x198] sm:$0xff]  }
  0xeb   : > { %1899 = vmatmul.mubr.bf16.gmra.mrb[32].mxu0 %v1586_v60  ;;  %1236 = vst [vmem:[#allocation2 + $0x2e8] sm:$0xff] %v10703_v0 }
  0xec   : > { %1906 = vmatprep.mubr.bf16.mxu0 %v10498_v51  ;;  %1239 = vst [vmem:[#allocation2 + $0x330] sm:$0x1] %v1172_v46  ;;  %v1173_v17 = vsel %vm1110_vm8, %v1170_v28, %v1172_v46  ;;  %v8926_v28 = vld [vmem:[#allocation7 + $0x1d8] sm:$0xff]   ;;  %v2184_v46 = vld [vmem:[#allocation2 + $0xe0] sm:$0xff] }
  0xed   : > { %v10714_v11 = vpack.c.bf16 %v1173_v17, %v1171_v33  ;;  %v2181_v33 = vld [vmem:[#allocation2 + $0xc8] sm:$0xff] }
  0xf0   : > { %2572 = vmatmul.mubr.bf16.vlgmr.msra.gmra.mrb[32].mxu1 %v10527_v47  ;;  %v1592_v47 = vpack.c.bf16 %v10614_v20, %v10592_v40  ;;  %v1595_v40 = vpack.c.bf16 %v10633_v49, %v10617_v3  ;;  %v8922_v20 = vld [vmem:[#allocation7 + $0x170] sm:$0xff]   ;;  %v10737_v3 = vld [vmem:[#allocation7 + $0x200] sm:$0xff]  }
  0xf1   : > { %2579 = vmatprep.mubr.bf16.mxu1 %v10476_v14  ;;  %8130 = vmatpush3.bf16.msra.mxu1 %v10434_v16  ;;  %v8916_v16 = vld [vmem:[#allocation7 + $0x160] sm:$0xff]   ;;  %v10727_v14 = vsel %vm1336_vm6, %v1396_v57, %v1398_v22  ;;  %v1598_v57 = vpack.c.bf16 %v10649_v4, %v10636_v15  ;;  %v2166_v49 = vld [vmem:[#allocation2 + $0x50] sm:$0xff]  ;;  %v1607_v15 = vpack.c.bf16 %v10703_v0, %v10693_v39  ;;  %v2165_v4 = vld [vmem:[#allocation2 + $0x48] sm:$0xff] }
  0xf2   : > { %8131 = vmatprep.subr.bf16.mxu1 %v8913_v1  ;;  %v2177_v0 = vld [vmem:[#allocation2 + $0xa8] sm:$0xff] }
  0xf3   : > { %1907 = vmatmul.mubr.bf16.gmra.mrb[36].mxu0 %v1589_v25 }
  0xf4   : > { %1914 = vmatprep.mubr.bf16.mxu0 %v10541_v42 }
  0xf5   : > { %8132 = vmatpush3.bf16.msra.mxu1 %v8913_v1  ;;  %v8928_v1 = vld [vmem:[#allocation7 + $0x1e0] sm:$0xff]  }
  0xf6   : > { %8133 = vmatprep.subr.bf16.mxu1 %v8914_v6 }
  0xf8   : > { %2580 = vmatmul.mubr.bf16.gmra.mrb[36].mxu1 %v10630_v19  ;;  %v2163_v19 = vld [vmem:[#allocation2 + $0x38] sm:$0xff] }
  0xf9   : > { %2587 = vmatprep.mubr.bf16.mxu1 %v10640_v59  ;;  %8134 = vmatpush3.bf16.msra.mxu1 %v8914_v6  ;;  %v2259_v59 = vpack.c.bf16 %v2166_v49, %v2163_v19  ;;  %v8929_v6 = vld [vmem:[#allocation7 + $0x1a0] sm:$0xff]   ;;  %v8933_v49 = vld [vmem:[#allocation7 + $0x1b0] sm:$0xff]  }
  0xfa   : > { %8135 = vmatprep.subr.bf16.mxu1 %v8915_v36 }
  0xfb   : > { %1915 = vmatmul.mubr.bf16.gmra.mrb[40].mxu0 %v1592_v47 }
  0xfc   : > { %1922 = vmatprep.mubr.bf16.mxu0 %v10550_v50 }
  0xfd   : > { %8136 = vmatpush3.bf16.msra.mxu1 %v8915_v36  ;;  %v8930_v36 = vld [vmem:[#allocation7 + $0x1e8] sm:$0xff]  }
  0xfe   : > { %8137 = vmatprep.subr.bf16.mxu1 %v8916_v16 }
 0x100   : > { %2588 = vmatmul.mubr.bf16.gmra.mrb[40].mxu1 %v1586_v60  ;;  %v8921_v60 = vld [vmem:[#allocation7 + $0x188] sm:$0xff]  }
 0x101   : > { %2595 = vmatprep.mubr.bf16.mxu1 %v10498_v51  ;;  %8138 = vmatpush3.bf16.msra.mxu1 %v8916_v16  ;;  %v1601_v51 = vpack.c.bf16 %v10675_v9, %v10655_v31  ;;  %v2169_v31 = vld [vmem:[#allocation2 + $0x68] sm:$0xff]  ;;  %v2167_v16 = vld [vmem:[#allocation2 + $0x58] sm:$0xff] }
 0x102   : > { %8139 = vmatprep.subr.bf16.mxu1 %v8919_v12  ;;  %v10752_v9 = vpack.c.bf16 %v2172_v62, %v2169_v31  ;;  %v2179_v31 = vld [vmem:[#allocation2 + $0xb8] sm:$0xff] }
 0x103   : > { %1923 = vmatmul.mubr.bf16.gmra.mrb[44].mxu0 %v1595_v40 }
 0x104   : > { %1930 = vmatprep.mubr.bf16.mxu0 %v10566_v30 }
 0x105   : > { %8140 = vmatpush3.bf16.msra.mxu1 %v8919_v12  ;;  %v2180_v12 = vld [vmem:[#allocation2 + $0xc0] sm:$0xff] }
 0x106   : > { %8141 = vmatprep.subr.bf16.mxu1 %v8922_v20 }
 0x108   : > { %2596 = vmatmul.mubr.bf16.gmra.mrb[44].mxu1 %v1589_v25  ;;  %v9409_v25 = vld [vmem:[#allocation2 + $0x308] sm:$0xff] }
 0x109   : > { %2603 = vmatprep.mubr.bf16.mxu1 %v10541_v42  ;;  %8142 = vmatpush3.bf16.msra.mxu1 %v8922_v20  ;;  %v1604_v42 = vpack.c.bf16 %v10690_v43, %v10678_v29  ;;  %v2168_v29 = vld [vmem:[#allocation2 + $0x60] sm:$0xff]  ;;  %v8924_v43 = vld [vmem:[#allocation7 + $0x190] sm:$0xff]   ;;  %v2304_v17 = vpack.c.bf16 %v10501_v13, %v9409_v25  ;;  %v8931_v13 = vld [vmem:[#allocation7 + $0x1a8] sm:$0xff]  }
 0x10a   : > { %8143 = vmatprep.subr.bf16.mxu1 %v8925_v5  ;;  %v10756_v39 = vpack.c.bf16 %v2171_v32, %v2168_v29  ;;  %v8937_v32 = vld [vmem:[#allocation7 + $0x208] sm:$0xff]   ;;  %v8940_v25 = vld [vmem:[#allocation7 + $0x220] sm:$0xff]  }
 0x10b   : > { %1931 = vmatmul.mubr.bf16.gmra.mrb[48].mxu0 %v1598_v57 }
 0x10c   : > { %1938 = vmatprep.mubr.bf16.mxu0 %v10609_v53 }
 0x10d   : > { %8144 = vmatpush3.bf16.msra.mxu1 %v8925_v5  ;;  %v2187_v5 = vld [vmem:[#allocation2 + $0xf8] sm:$0xff] }
 0x10e   : > { %8177 = vmatprep.subr.bf16.mxu1 %v10737_v3 }
 0x110   : > { %2604 = vmatmul.mubr.bf16.gmra.mrb[48].mxu1 %v1592_v47  ;;  %v2164_v47 = vld [vmem:[#allocation2 + $0x40] sm:$0xff] }
 0x111   : > { %2611 = vmatprep.mubr.bf16.mxu1 %v10550_v50  ;;  %v2162_v50 = vld [vmem:[#allocation2 + $0x30] sm:$0xff]  ;;  %v2260_v20 = vpack.c.bf16 %v2167_v16, %v2164_v47  ;;  %v2209_v47 = vld [vmem:[#allocation2 + $0x1a8] sm:$0xff]  ;;  %v2212_v16 = vld [vmem:[#allocation2 + $0x1c0] sm:$0xff] }
 0x113   : > { %1939 = vmatmul.mubr.bf16.gmra.mrb[52].mxu0 %v1601_v51 }
 0x114   : > { %1946 = vmatprep.mubr.bf16.mxu0 %v10625_v44 }
 0x118   : > { %2612 = vmatmul.mubr.bf16.gmra.mrb[52].mxu1 %v1595_v40  ;;  %v2183_v40 = vld [vmem:[#allocation2 + $0xd8] sm:$0xff] }
 0x119   : > { %2619 = vmatprep.mubr.bf16.mxu1 %v10566_v30  ;;  %v2258_v30 = vpack.c.bf16 %v2165_v4, %v2162_v50  ;;  %v8934_v50 = vld [vmem:[#allocation7 + $0x1f8] sm:$0xff]   ;;  %v2176_v4 = vld [vmem:[#allocation2 + $0xa0] sm:$0xff] }
 0x11a   : > { %v10779_v29 = vpack.c.bf16 %v2179_v31, %v2176_v4  ;;  %v2233_v4 = vld [vmem:[#allocation2 + $0x268] sm:$0xff]  ;;  %v2236_v31 = vld [vmem:[#allocation2 + $0x280] sm:$0xff] }
 0x11b   : > { %1947 = vmatmul.mubr.bf16.gmra.mrb[56].mxu0 %v1604_v42 }
 0x11c   : > { %1954 = vmatprep.mubr.bf16.mxu0 %v10646_v21 }
 0x120   : > { %2620 = vmatmul.mubr.bf16.gmra.mrb[56].mxu1 %v1598_v57  ;;  %v2190_v57 = vld [vmem:[#allocation2 + $0x110] sm:$0xff] }
 0x121   : > { %2627 = vmatprep.mubr.bf16.mxu1 %v10609_v53  ;;  %v2178_v53 = vld [vmem:[#allocation2 + $0xb0] sm:$0xff]  ;;  %v10773_v19 = vpack.c.bf16 %v2190_v57, %v2187_v5  ;;  %v2221_v5 = vld [vmem:[#allocation2 + $0x208] sm:$0xff]  ;;  %v2224_v57 = vld [vmem:[#allocation2 + $0x220] sm:$0xff] }
 0x122   : > { %v10758_v18 = vpack.c.bf16 %v2178_v53, %v2175_v61  ;;  %v2182_v61 = vld [vmem:[#allocation2 + $0xd0] sm:$0xff]  ;;  %v2185_v53 = vld [vmem:[#allocation2 + $0xe8] sm:$0xff] }
 0x123   : > { %1955 = vmatmul.mubr.bf16.gmra.mrb[60].mxu0 %v1607_v15 }
 0x124   : > { %2531 = vmatprep.mubr.bf16.mxu0 %v2259_v59  ;;  %v2173_v59 = vld [vmem:[#allocation2 + $0x88] sm:$0xff] }
 0x128   : > { %2628 = vmatmul.mubr.bf16.gmra.mrb[60].mxu1 %v1601_v51  ;;  %v8932_v51 = vld [vmem:[#allocation7 + $0x1f0] sm:$0xff]  }
 0x129   : > { %2635 = vmatprep.mubr.bf16.mxu1 %v10625_v44  ;;  %v2174_v44 = vld [vmem:[#allocation2 + $0x90] sm:$0xff] }
 0x12a   : > { %v10764_v22 = vpack.c.bf16 %v2177_v0, %v2174_v44  ;;  %v10787_v44 = vpack.c.bf16 %v2185_v53, %v2182_v61  ;;  %v2887_v61 = vld [vmem:[#allocation2 + $0x170] sm:$0xff] }
 0x12b   : > { %2532 = vmatmul.mubr.bf16.vlgmr.msra.gmra.mrb[64].mxu0 %v2258_v30  ;;  %v2189_v30 = vld [vmem:[#allocation2 + $0x108] sm:$0xff] }
 0x12c   : > { %2539 = vmatprep.mubr.bf16.mxu0 %v10752_v9  ;;  %7507 = vmatpush3.bf16.msra.mxu0 %v8918_v23  ;;  %v2186_v23 = vld [vmem:[#allocation2 + $0xf0] sm:$0xff] }
 0x12d   : > { %7508 = vmatprep.subr.bf16.mxu0 %v8920_v56  ;;  %v8935_v56 = vld [vmem:[#allocation7 + $0x1b8] sm:$0xff]  }
 0x130   : > { %2636 = vmatmul.mubr.bf16.gmra.mrb[64].mxu1 %v1604_v42  ;;  %7509 = vmatpush3.bf16.msra.mxu0 %v8921_v60  ;;  %v10770_v42 = vpack.c.bf16 %v2183_v40, %v2180_v12  ;;  %v10781_v60 = vpack.c.bf16 %v2189_v30, %v2186_v23  ;;  %v2215_v12 = vld [vmem:[#allocation2 + $0x1d8] sm:$0xff] }
 0x131   : > { %2643 = vmatprep.mubr.bf16.mxu1 %v10646_v21  ;;  %7510 = vmatprep.subr.bf16.mxu0 %v8923_v63  ;;  %v10766_v21 = vpack.c.bf16 %v2184_v46, %v2181_v33  ;;  %v2188_v63 = vld [vmem:[#allocation2 + $0x100] sm:$0xff]  ;;  %v2197_v33 = vld [vmem:[#allocation2 + $0x148] sm:$0xff]  ;;  %v2239_v23 = vld [vmem:[#allocation2 + $0x298] sm:$0xff] }
 0x132   : > { %v2200_v46 = vld [vmem:[#allocation2 + $0x160] sm:$0xff]  ;;  %v2880_v30 = vld [vmem:[#allocation2 + $0x138] sm:$0xff] }
 0x133   : > { %2540 = vmatmul.mubr.bf16.gmra.mrb[68].mxu0 %v10756_v39 }
 0x134   : > { %2547 = vmatprep.mubr.bf16.mxu0 %v10758_v18  ;;  %7511 = vmatpush3.bf16.msra.mxu0 %v8924_v43  ;;  %v2191_v43 = vld [vmem:[#allocation2 + $0x118] sm:$0xff] }
 0x135   : > { %7512 = vmatprep.subr.bf16.mxu0 %v8926_v28  ;;  %v8938_v28 = vld [vmem:[#allocation7 + $0x210] sm:$0xff]   ;;  %v10790_v0 = vpack.c.bf16 %v2191_v43, %v2188_v63 }
 0x136   : > { %v2242_v43 = vld [vmem:[#allocation2 + $0x2b0] sm:$0xff] }
 0x138   : > { %2644 = vmatmul.mubr.bf16.gmra.mrb[68].mxu1 %v1607_v15  ;;  %7513 = vmatpush3.bf16.msra.mxu0 %v8927_v37  ;;  %v2170_v15 = vld [vmem:[#allocation2 + $0x70] sm:$0xff]  ;;  %v8939_v37 = vld [vmem:[#allocation7 + $0x218] sm:$0xff]  }
 0x139   : > { %2651 = vmatprep.mubr.bf16.mxu1 %v2304_v17  ;;  %7514 = vmatprep.subr.bf16.mxu0 %v8928_v1  ;;  %v10776_v62 = vpack.c.bf16 %v2173_v59, %v2170_v15  ;;  %v2203_v1 = vld [vmem:[#allocation2 + $0x178] sm:$0xff]  ;;  %v2881_v15 = vld [vmem:[#allocation2 + $0x140] sm:$0xff] }
 0x13b   : > { %2548 = vmatmul.mubr.bf16.gmra.mrb[72].mxu0 %v10764_v22 }
 0x13c   : > { %2555 = vmatprep.mubr.bf16.mxu0 %v10766_v21  ;;  %7515 = vmatpush3.bf16.msra.mxu0 %v8929_v6  ;;  %v8941_v6 = vld [vmem:[#allocation7 + $0x228] sm:$0xff]  }
 0x13d   : > { %7516 = vmatprep.subr.bf16.mxu0 %v8930_v36  ;;  %v2206_v36 = vld [vmem:[#allocation2 + $0x190] sm:$0xff] }
 0x13e   : > { %v10803_v40 = vpack.c.bf16 %v2209_v47, %v2206_v36 }
 0x140   : > { %2652 = vmatmul.mubr.bf16.gmra.mrb[72].mxu1 %v10714_v11  ;;  %7517 = vmatpush3.bf16.msra.mxu0 %v8931_v13  ;;  %v8943_v13 = vld [vmem:[#allocation7 + $0x238] sm:$0xff]  }
 0x141   : > { %8145 = vmatprep.mubr.bf16.mxu1 %v2260_v20  ;;  %7518 = vmatprep.subr.bf16.mxu0 %v8932_v51  ;;  %v2218_v20 = vld [vmem:[#allocation2 + $0x1f0] sm:$0xff]  ;;  %v2227_v51 = vld [vmem:[#allocation2 + $0x238] sm:$0xff] }
 0x143   : > { %2556 = vmatmul.mubr.bf16.gmra.mrb[76].mxu0 %v10770_v42 }
 0x144   : > { %2563 = vmatprep.mubr.bf16.mxu0 %v10773_v19  ;;  %7519 = vmatpush3.bf16.msra.mxu0 %v8933_v49  ;;  %v2878_v49 = vld [vmem:[#allocation2 + $0x128] sm:$0xff] }
 0x145   : > { %7520 = vmatprep.subr.bf16.mxu0 %v8934_v50  ;;  %v2962_v59 = vpack.c.bf16 %v2881_v15, %v2878_v49  ;;  %v2230_v50 = vld [vmem:[#allocation2 + $0x250] sm:$0xff] }
 0x148   : > { %8146 = vmatmul.mubr.bf16.vlgmr.msra.gmra.mrb[0].mxu1 %v10776_v62  ;;  %7521 = vmatpush3.bf16.msra.mxu0 %v8935_v56  ;;  %v10821_v56 = vpack.c.bf16 %v2239_v23, %v2236_v31  ;;  %v2898_v23 = vld [vmem:[#allocation2 + $0x1c8] sm:$0xff] }
 0x149   : > { %8149 = vmatprep.mubr.bf16.mxu1 %v10779_v29  ;;  %8178 = vmatpush3.bf16.msra.mxu1 %v10737_v3  ;;  %v2194_v3 = vld [vmem:[#allocation2 + $0x130] sm:$0xff] }
 0x14a   : > { %8179 = vmatprep.subr.bf16.mxu1 %v8937_v32  ;;  %v10795_v17 = vpack.c.bf16 %v2197_v33, %v2194_v3  ;;  %v2251_v3 = vld [vmem:[#allocation2 + $0x2f8] sm:$0xff]  ;;  %v2883_v33 = vld [vmem:[#allocation2 + $0x150] sm:$0xff] }
 0x14b   : > { %2564 = vmatmul.mubr.bf16.gmra.mrb[80].mxu0 %v10781_v60 }
 0x14c   : > { %3222 = vmatprep.mubr.bf16.mxu0 %v10752_v9  ;;  %v10798_v9 = vpack.c.bf16 %v2203_v1, %v2200_v46  ;;  %v2886_v46 = vld [vmem:[#allocation2 + $0x168] sm:$0xff] }
 0x14d   : > { %8180 = vmatpush3.bf16.msra.mxu1 %v8937_v32  ;;  %v2884_v32 = vld [vmem:[#allocation2 + $0x158] sm:$0xff]  ;;  %v2964_v36 = vpack.c.bf16 %v2886_v46, %v2883_v33 }
 0x14e   : > { %8181 = vmatprep.subr.bf16.mxu1 %v8938_v28  ;;  %v2965_v63 = vpack.c.bf16 %v2887_v61, %v2884_v32  ;;  %v2904_v33 = vld [vmem:[#allocation2 + $0x1f8] sm:$0xff] }
 0x14f   : > { %v2908_v46 = vld [vmem:[#allocation2 + $0x218] sm:$0xff] }
 0x150   : > { %8150 = vmatmul.mubr.bf16.gmra.mrb[4].mxu1 %v10787_v44 }
 0x151   : > { %8153 = vmatprep.mubr.bf16.mxu1 %v10790_v0  ;;  %8182 = vmatpush3.bf16.msra.mxu1 %v8938_v28  ;;  %v2245_v28 = vld [vmem:[#allocation2 + $0x2c8] sm:$0xff] }
 0x152   : > { %8183 = vmatprep.subr.bf16.mxu1 %v8939_v37 }
 0x153   : > { %3223 = vmatmul.mubr.bf16.vlgmr.msra.gmra.mrb[84].mxu0 %v10756_v39  ;;  %v8942_v39 = vld [vmem:[#allocation7 + $0x230] sm:$0xff]  }
 0x154   : > { %3230 = vmatprep.mubr.bf16.mxu0 %v10758_v18  ;;  %v10806_v18 = vpack.c.bf16 %v2215_v12, %v2212_v16  ;;  %v2257_v16 = vld [vmem:[#allocation2 + $0x328] sm:$0xff] }
 0x155   : > { %8184 = vmatpush3.bf16.msra.mxu1 %v8939_v37  ;;  %v2248_v37 = vld [vmem:[#allocation2 + $0x2e0] sm:$0xff]  ;;  %v10832_v12 = vpack.c.bf16 %v2257_v16, %v10727_v14  ;;  %v2895_v14 = vld [vmem:[#allocation2 + $0x1b0] sm:$0xff] }
 0x156   : > { %8185 = vmatprep.subr.bf16.mxu1 %v8940_v25  ;;  %v10827_v1 = vpack.c.bf16 %v2251_v3, %v2248_v37  ;;  %v2901_v3 = vld [vmem:[#allocation2 + $0x1e0] sm:$0xff] }
 0x158   : > { %8154 = vmatmul.mubr.bf16.gmra.mrb[8].mxu1 %v10795_v17 }
 0x159   : > { %8157 = vmatprep.mubr.bf16.mxu1 %v10798_v9  ;;  %8186 = vmatpush3.bf16.msra.mxu1 %v8940_v25  ;;  %v2890_v25 = vld [vmem:[#allocation2 + $0x188] sm:$0xff] }
 0x15a   : > { %8187 = vmatprep.subr.bf16.mxu1 %v8941_v6 }
 0x15b   : > { %3231 = vmatmul.mubr.bf16.gmra.mrb[88].mxu0 %v10764_v22  ;;  %v10811_v22 = vpack.c.bf16 %v2221_v5, %v2218_v20  ;;  %v2896_v20 = vld [vmem:[#allocation2 + $0x1b8] sm:$0xff]  ;;  %v2899_v5 = vld [vmem:[#allocation2 + $0x1d0] sm:$0xff] }
 0x15c   : > { %3238 = vmatprep.mubr.bf16.mxu0 %v10766_v21  ;;  %v10814_v21 = vpack.c.bf16 %v2227_v51, %v2224_v57 }
 0x15d   : > { %8188 = vmatpush3.bf16.msra.mxu1 %v8941_v6  ;;  %v2893_v6 = vld [vmem:[#allocation2 + $0x1a0] sm:$0xff] }
 0x15e   : > { %8189 = vmatprep.subr.bf16.mxu1 %v8942_v39  ;;  %v2968_v47 = vpack.c.bf16 %v2893_v6, %v2890_v25  ;;  %v2911_v25 = vld [vmem:[#allocation2 + $0x230] sm:$0xff] }
 0x160   : > { %8158 = vmatmul.mubr.bf16.gmra.mrb[12].mxu1 %v10803_v40 }
 0x161   : > { %8161 = vmatprep.mubr.bf16.mxu1 %v10806_v18  ;;  %8190 = vmatpush3.bf16.msra.mxu1 %v8942_v39  ;;  %v2889_v39 = vld [vmem:[#allocation2 + $0x180] sm:$0xff] }
 0x162   : > { %8191 = vmatprep.subr.bf16.mxu1 %v8943_v13 }
 0x163   : > { %3239 = vmatmul.mubr.bf16.gmra.mrb[92].mxu0 %v10770_v42  ;;  %v10819_v42 = vpack.c.bf16 %v2233_v4, %v2230_v50  ;;  %v2971_v50 = vpack.c.bf16 %v2899_v5, %v2896_v20  ;;  %v2907_v20 = vld [vmem:[#allocation2 + $0x210] sm:$0xff]  ;;  %v2910_v5 = vld [vmem:[#allocation2 + $0x228] sm:$0xff] }
 0x164   : > { %3246 = vmatprep.mubr.bf16.mxu0 %v10773_v19  ;;  %v2877_v19 = vld [vmem:[#allocation2 + $0x120] sm:$0xff] }
 0x165   : > { %8192 = vmatpush3.bf16.msra.mxu1 %v8943_v13  ;;  %v2961_v53 = vpack.c.bf16 %v2880_v30, %v2877_v19  ;;  %v2892_v13 = vld [vmem:[#allocation2 + $0x198] sm:$0xff]  ;;  %v2902_v19 = vld [vmem:[#allocation2 + $0x1e8] sm:$0xff]  ;;  %v2905_v30 = vld [vmem:[#allocation2 + $0x200] sm:$0xff] }
 0x166   : > { %v2967_v49 = vpack.c.bf16 %v2892_v13, %v2889_v39  ;;  %v2977_v39 = vpack.c.bf16 %v2911_v25, %v2908_v46  ;;  %v2919_v46 = vld [vmem:[#allocation2 + $0x270] sm:$0xff]  ;;  %v2922_v25 = vld [vmem:[#allocation2 + $0x288] sm:$0xff] }
 0x168   : > { %8162 = vmatmul.mubr.bf16.gmra.mrb[16].mxu1 %v10811_v22 }
 0x169   : > { %8165 = vmatprep.mubr.bf16.mxu1 %v10814_v21 }
 0x16b   : > { %3247 = vmatmul.mubr.bf16.gmra.mrb[96].mxu0 %v10781_v60  ;;  %v10825_v60 = vpack.c.bf16 %v2245_v28, %v2242_v43  ;;  %v2974_v28 = vpack.c.bf16 %v2905_v30, %v2902_v19  ;;  %v2913_v19 = vld [vmem:[#allocation2 + $0x240] sm:$0xff]  ;;  %v2916_v30 = vld [vmem:[#allocation2 + $0x258] sm:$0xff] }
 0x16c   : > { %3254 = vmatprep.mubr.bf16.mxu0 %v2962_v59 }
 0x170   : > { %8166 = vmatmul.mubr.bf16.gmra.mrb[20].mxu1 %v10819_v42 }
 0x171   : > { %8169 = vmatprep.mubr.bf16.mxu1 %v10821_v56 }
 0x173   : > { %3255 = vmatmul.mubr.bf16.gmra.mrb[100].mxu0 %v2961_v53  ;;  %v2970_v53 = vpack.c.bf16 %v2898_v23, %v2895_v14 }
 0x174   : > { %3262 = vmatprep.mubr.bf16.mxu0 %v2965_v63 }
 0x178   : > { %8170 = vmatmul.mubr.bf16.gmra.mrb[24].mxu1 %v10825_v60 }
 0x179   : > { %8173 = vmatprep.mubr.bf16.mxu1 %v10827_v1 }
 0x17b   : > { %3263 = vmatmul.mubr.bf16.gmra.mrb[104].mxu0 %v2964_v36 }
 0x17c   : > { %3270 = vmatprep.mubr.bf16.mxu0 %v2968_v47  ;;  %v2973_v47 = vpack.c.bf16 %v2904_v33, %v2901_v3 }
 0x17e   : > { %v7250_v57 = vpop.f32.mrb[0].mxu0 }
 0x17f   : > { %v7251_v51 = vpop.f32.mrb[1].mxu0 }
 0x180   : > { %8174 = vmatmul.mubr.bf16.gmra.mrb[28].mxu1 %v10832_v12  ;;  %v10835_v15 = vadd.f32 %v7251_v51, %v7250_v57  ;;  %v7253_v59 = vpop.f32.mrb[2].mxu0  ;;  %v2914_v57 = vld [vmem:[#allocation2 + $0x248] sm:$0xff]  ;;  %v2917_v51 = vld [vmem:[#allocation2 + $0x260] sm:$0xff] }
 0x181   : > { %v7254_v4 = vpop.f32.mrb[3].mxu0  ;;  %8193 = vmatprep.mubr.bf16.mxu1 %v10776_v62  ;;  %v2980_v14 = vpack.c.bf16 %v2917_v51, %v2914_v57  ;;  %v2925_v57 = vld [vmem:[#allocation2 + $0x2a0] sm:$0xff]  ;;  %v2928_v51 = vld [vmem:[#allocation2 + $0x2b8] sm:$0xff] }
 0x182   : > { %v10838_v31 = vadd.f32 %v7254_v4, %v7253_v59 }
 0x183   : > { %3271 = vmatmul.mubr.bf16.gmra.mrb[108].mxu0 %v2967_v49 }
 0x184   : > { %3278 = vmatprep.mubr.bf16.mxu0 %v2971_v50  ;;  %v2976_v50 = vpack.c.bf16 %v2910_v5, %v2907_v20 }
 0x186   : > { %v7256_v32 = vpop.f32.mrb[4].mxu0 }
 0x187   : > { %v7257_v61 = vpop.f32.mrb[5].mxu0 }
 0x188   : > { %8194 = vmatmul.mubr.bf16.vlgmr.msra.gmra.mrb[0].mxu1 %v10779_v29  ;;  %v10841_v63 = vadd.f32 %v7257_v61, %v7256_v32  ;;  %v7259_v43 = vpop.f32.mrb[6].mxu0  ;;  %v2920_v32 = vld [vmem:[#allocation2 + $0x278] sm:$0xff]  ;;  %v2923_v61 = vld [vmem:[#allocation2 + $0x290] sm:$0xff] }
 0x189   : > { %v7260_v37 = vpop.f32.mrb[7].mxu0  ;;  %8197 = vmatprep.mubr.bf16.mxu1 %v10787_v44  ;;  %v2983_v3 = vpack.c.bf16 %v2923_v61, %v2920_v32  ;;  %v2934_v61 = vld [vmem:[#allocation2 + $0x2e8] sm:$0xff] }
 0x18a   : > { %v10844_v62 = vadd.f32 %v7260_v37, %v7259_v43 }
 0x18b   : > { %3279 = vmatmul.mubr.bf16.gmra.mrb[112].mxu0 %v2970_v53 }
 0x18c   : > { %3286 = vmatprep.mubr.bf16.mxu0 %v2974_v28  ;;  %v2979_v28 = vpack.c.bf16 %v2916_v30, %v2913_v19 }
 0x18e   : > { %v7262_v6 = vpop.f32.mrb[8].mxu0 }
 0x18f   : > { %v7263_v36 = vpop.f32.mrb[9].mxu0 }
 0x190   : > { %8198 = vmatmul.mubr.bf16.gmra.mrb[4].mxu1 %v10790_v0  ;;  %v10847_v29 = vadd.f32 %v7263_v36, %v7262_v6  ;;  %v7265_v16 = vpop.f32.mrb[10].mxu0  ;;  %v2926_v6 = vld [vmem:[#allocation2 + $0x2a8] sm:$0xff]  ;;  %v2929_v36 = vld [vmem:[#allocation2 + $0x2c0] sm:$0xff] }
 0x191   : > { %v7266_v13 = vpop.f32.mrb[11].mxu0  ;;  %8201 = vmatprep.mubr.bf16.mxu1 %v10795_v17  ;;  %v2986_v20 = vpack.c.bf16 %v2929_v36, %v2926_v6 }
 0x192   : > { %v10850_v44 = vadd.f32 %v7266_v13, %v7265_v16 }
 0x193   : > { %3287 = vmatmul.mubr.bf16.gmra.mrb[116].mxu0 %v2973_v47 }
 0x194   : > { %3294 = vmatprep.mubr.bf16.mxu0 %v2977_v39  ;;  %v2982_v39 = vpack.c.bf16 %v2922_v25, %v2919_v46 }
 0x196   : > { %v7268_v49 = vpop.f32.mrb[12].mxu0 }
 0x197   : > { %v7269_v59 = vpop.f32.mrb[13].mxu0 }
 0x198   : > { %8202 = vmatmul.mubr.bf16.gmra.mrb[8].mxu1 %v10798_v9  ;;  %v10853_v0 = vadd.f32 %v7269_v59, %v7268_v49  ;;  %v7271_v4 = vpop.f32.mrb[14].mxu0  ;;  %v2932_v49 = vld [vmem:[#allocation2 + $0x2d8] sm:$0xff]  ;;  %v2935_v59 = vld [vmem:[#allocation2 + $0x2f0] sm:$0xff] }
 0x199   : > { %v7272_v23 = vpop.f32.mrb[15].mxu0  ;;  %8205 = vmatprep.mubr.bf16.mxu1 %v10803_v40  ;;  %v2989_v19 = vpack.c.bf16 %v2935_v59, %v2932_v49 }
 0x19a   : > { %v10856_v17 = vadd.f32 %v7272_v23, %v7271_v4 }
 0x19b   : > { %3295 = vmatmul.mubr.bf16.gmra.mrb[120].mxu0 %v2976_v50 }
 0x19c   : > { %3302 = vmatprep.mubr.bf16.mxu0 %v2980_v14  ;;  %v2985_v14 = vpack.c.bf16 %v2928_v51, %v2925_v57  ;;  %v2943_v51 = vld [vmem:[#allocation2 + $0x330] sm:$0xff] }
 0x19e   : > { %v7274_v53 = vpop.f32.mrb[16].mxu0 }
 0x19f   : > { %v7275_v43 = vpop.f32.mrb[17].mxu0 }
 0x1a0   : > { %8206 = vmatmul.mubr.bf16.gmra.mrb[12].mxu1 %v10806_v18  ;;  %v10859_v9 = vadd.f32 %v7275_v43, %v7274_v53  ;;  %v7277_v37 = vpop.f32.mrb[18].mxu0  ;;  %v2938_v53 = vld [vmem:[#allocation2 + $0x308] sm:$0xff] }
 0x1a1   : > { %v7278_v33 = vpop.f32.mrb[19].mxu0  ;;  %8209 = vmatprep.mubr.bf16.mxu1 %v10811_v22 }
 0x1a2   : > { %v10862_v40 = vadd.f32 %v7278_v33, %v7277_v37 }
 0x1a3   : > { %3303 = vmatmul.mubr.bf16.gmra.mrb[124].mxu0 %v2979_v28 }
 0x1a4   : > { %3310 = vmatprep.mubr.bf16.mxu0 %v2983_v3 }
 0x1a6   : > { %v7280_v47 = vpop.f32.mrb[20].mxu0 }
 0x1a7   : > { %v7281_v16 = vpop.f32.mrb[21].mxu0 }
 0x1a8   : > { %8210 = vmatmul.mubr.bf16.gmra.mrb[16].mxu1 %v10814_v21  ;;  %v7282_v18 = vadd.f32 %v7281_v16, %v7280_v47  ;;  %v7283_v13 = vpop.f32.mrb[22].mxu0 }
 0x1a9   : > { %v7284_v5 = vpop.f32.mrb[23].mxu0  ;;  %8213 = vmatprep.mubr.bf16.mxu1 %v10819_v42  ;;  %v2931_v42 = vld [vmem:[#allocation2 + $0x2d0] sm:$0xff] }
 0x1aa   : > { %v7285_v22 = vadd.f32 %v7284_v5, %v7283_v13  ;;  %v2988_v37 = vpack.c.bf16 %v2934_v61, %v2931_v42 }
 0x1ab   : > { %3311 = vmatmul.mubr.bf16.gmra.mrb[128].mxu0 %v2982_v39 }
 0x1ac   : > { %3318 = vmatprep.mubr.bf16.mxu0 %v2986_v20 }
 0x1ae   : > { %v7286_v50 = vpop.f32.mrb[24].mxu0 }
 0x1af   : > { %v7287_v4 = vpop.f32.mrb[25].mxu0 }
 0x1b0   : > { %8214 = vmatmul.mubr.bf16.gmra.mrb[20].mxu1 %v10821_v56  ;;  %v7288_v23 = vadd.f32 %v7287_v4, %v7286_v50  ;;  %v7289_v21 = vpop.f32.mrb[26].mxu0  ;;  %v9410_v56 = vld [vmem:[#allocation2 + $0x320] sm:$0xff] }
 0x1b1   : > { %v7290_v30 = vpop.f32.mrb[27].mxu0  ;;  %8217 = vmatprep.mubr.bf16.mxu1 %v10825_v60  ;;  %v2992_v46 = vpack.c.bf16 %v9410_v56, %v2938_v53  ;;  %v9411_v60 = vld [vmem:[#allocation2 + $0x8] sm:$0xff] }
 0x1b2   : > { %v7291_v32 = vadd.f32 %v7290_v30, %v7289_v21  ;;  %v10870_v36 = vpack.c.bf16 %v9411_v60, %v9411_v60  ;;  %v2994_v42 = vpack.c.bf16 %v9411_v60, %v2943_v51 }
 0x1b3   : > { %3319 = vmatmul.mubr.bf16.gmra.mrb[132].mxu0 %v2985_v14 }
 0x1b4   : > { %3326 = vmatprep.mubr.bf16.mxu0 %v2989_v19 }
 0x1b6   : > { %v7292_v43 = vpop.f32.mrb[28].mxu0 }
 0x1b7   : > { %v7293_v28 = vpop.f32.mrb[29].mxu0 }
 0x1b8   : > { %8218 = vmatmul.mubr.bf16.gmra.mrb[24].mxu1 %v10827_v1  ;;  %v7294_v3 = vadd.f32 %v7293_v28, %v7292_v43  ;;  %v7295_v33 = vpop.f32.mrb[30].mxu0 }
 0x1b9   : > { %v7296_v25 = vpop.f32.mrb[31].mxu0  ;;  %8221 = vmatprep.mubr.bf16.mxu1 %v10832_v12  ;;  %v10877_v12 = vld [vmem:[%s12603_s2] ss:$0 sm:$0xff] }
 0x1ba   : > { %v7297_v6 = vadd.f32 %v7296_v25, %v7295_v33  ;;  %v8437_v59 = vadd.f32 %v7282_v18, %v10877_v12  ;;  %v8465_v60 = vadd.f32 %v7291_v32, %v10877_v12 }
 0x1bb   : > { %3327 = vmatmul.mubr.bf16.gmra.mrb[136].mxu0 %v2988_v37 }
 0x1bc   : > { %3334 = vmatprep.mubr.bf16.mxu0 %v2992_v46  ;;  %v8457_v46 = vadd.f32 %v7288_v23, %v10877_v12 }
 0x1be   : > { %v7298_v47 = vpop.f32.mrb[32].mxu0 }
 0x1bf   : > { %v7299_v16 = vpop.f32.mrb[33].mxu0 }
 0x1c0   : > { %8222 = vmatmul.mubr.bf16.gmra.mrb[28].mxu1 %v10870_v36  ;;  %v7300_v39 = vadd.f32 %v7299_v16, %v7298_v47  ;;  %v7301_v13 = vpop.f32.mrb[34].mxu0 }
 0x1c1   : > { %v7302_v1 = vpop.f32.mrb[35].mxu0 }
 0x1c2   : > { %v7303_v20 = vadd.f32 %v7302_v1, %v7301_v13 }
 0x1c3   : > { %v7416_v5 = vpop.f32.mrb[32].mxu1  ;;  %3335 = vmatmul.mubr.bf16.gmra.mrb[140].mxu0 %v10714_v11  ;;  %v8445_v11 = vadd.f32 %v7285_v22, %v10877_v12 }
 0x1c4   : > { %v7417_v57 = vpop.f32.mrb[33].mxu1  ;;  %3342 = vmatprep.mubr.bf16.mxu0 %v10870_v36 }
 0x1c5   : > { %v7418_v49 = vadd.f32 %v7417_v57, %v7416_v5  ;;  %v7419_v50 = vpop.f32.mrb[34].mxu1 }
 0x1c6   : > { %v7420_v4 = vpop.f32.mrb[35].mxu1  ;;  %v7304_v14 = vpop.f32.mrb[36].mxu0 }
 0x1c7   : > { %v10881_v21 = vadd.f32 %v8437_v59, %v7418_v49  ;;  %v7421_v19 = vadd.f32 %v7420_v4, %v7419_v50  ;;  %v7305_v30 = vpop.f32.mrb[37].mxu0 }
 0x1c8   : > { %v7306_v61 = vadd.f32 %v7305_v30, %v7304_v14  ;;  %v7307_v53 = vpop.f32.mrb[38].mxu0  ;;  %v8453_v14 = vadd.f32 %v7294_v3, %v10877_v12  ;;  %v8473_v3 = vadd.f32 %v7300_v39, %v10877_v12 }
 0x1c9   : > { %v10884_v43 = vadd.f32 %v8445_v11, %v7421_v19  ;;  %v7308_v28 = vpop.f32.mrb[39].mxu0 }
 0x1ca   : > { %v7309_v37 = vadd.f32 %v7308_v28, %v7307_v53  ;;  %v8469_v39 = vadd.f32 %v7306_v61, %v10877_v12 }
 0x1cb   : > { %v7422_v33 = vpop.f32.mrb[36].mxu1  ;;  %3343 = vmatmul.mubr.bf16.gmra.mrb[144].mxu0 %v2994_v42  ;;  %v8461_v42 = vadd.f32 %v7297_v6, %v10877_v12  ;;  %v8481_v6 = vadd.f32 %v7303_v20, %v10877_v12 }
 0x1cc   : > { %v7423_v56 = vpop.f32.mrb[37].mxu1  ;;  %v8477_v20 = vadd.f32 %v7309_v37, %v10877_v12  ;;  %4683 = vmatprep.mubr.bf16.mxu0 %v10870_v36 }
 0x1cd   : > { %v7424_v18 = vadd.f32 %v7423_v56, %v7422_v33  ;;  %v7425_v25 = vpop.f32.mrb[38].mxu1 }
 0x1ce   : > { %v7426_v47 = vpop.f32.mrb[39].mxu1  ;;  %v7310_v16 = vpop.f32.mrb[40].mxu0 }
 0x1cf   : > { %v10887_v13 = vadd.f32 %v8457_v46, %v7424_v18  ;;  %v7427_v22 = vadd.f32 %v7426_v47, %v7425_v25  ;;  %v7311_v1 = vpop.f32.mrb[41].mxu0 }
 0x1d0   : > { %v7312_v5 = vadd.f32 %v7311_v1, %v7310_v16  ;;  %v7313_v57 = vpop.f32.mrb[42].mxu0 }
 0x1d1   : > { %v10890_v51 = vadd.f32 %v8465_v60, %v7427_v22  ;;  %v7314_v49 = vpop.f32.mrb[43].mxu0 }
 0x1d2   : > { %v7315_v59 = vadd.f32 %v7314_v49, %v7313_v57  ;;  %v8489_v61 = vadd.f32 %v7312_v5, %v10877_v12 }
 0x1d3   : > { %v7428_v50 = vpop.f32.mrb[40].mxu1 }
 0x1d4   : > { %v7429_v4 = vpop.f32.mrb[41].mxu1  ;;  %v8497_v37 = vadd.f32 %v7315_v59, %v10877_v12 }
 0x1d5   : > { %v7430_v23 = vadd.f32 %v7429_v4, %v7428_v50  ;;  %v7431_v19 = vpop.f32.mrb[42].mxu1 }
 0x1d6   : > { %v7432_v11 = vpop.f32.mrb[43].mxu1  ;;  %v7316_v30 = vpop.f32.mrb[44].mxu0 }
 0x1d7   : > { %v10894_v53 = vadd.f32 %v8453_v14, %v7430_v23  ;;  %v7433_v32 = vadd.f32 %v7432_v11, %v7431_v19  ;;  %v7317_v28 = vpop.f32.mrb[45].mxu0 }
 0x1d8   : > { %v7318_v33 = vadd.f32 %v7317_v28, %v7316_v30  ;;  %v7319_v56 = vpop.f32.mrb[46].mxu0 }
 0x1d9   : > { %v10896_v18 = vadd.f32 %v8461_v42, %v7433_v32  ;;  %v7320_v46 = vpop.f32.mrb[47].mxu0 }
 0x1da   : > { %v7321_v25 = vadd.f32 %v7320_v46, %v7319_v56 }
 0x1db   : > { %v7434_v47 = vpop.f32.mrb[44].mxu1 }
 0x1dc   : > { %v7435_v16 = vpop.f32.mrb[45].mxu1 }
 0x1dd   : > { %v7436_v22 = vadd.f32 %v7435_v16, %v7434_v47  ;;  %v7437_v60 = vpop.f32.mrb[46].mxu1 }
 0x1de   : > { %v7438_v1 = vpop.f32.mrb[47].mxu1  ;;  %v7322_v57 = vpop.f32.mrb[48].mxu0 }
 0x1df   : > { %v10900_v49 = vadd.f32 %v8473_v3, %v7436_v22  ;;  %v7439_v50 = vadd.f32 %v7438_v1, %v7437_v60  ;;  %v7323_v4 = vpop.f32.mrb[49].mxu0 }
 0x1e0   : > { %v7324_v14 = vadd.f32 %v7323_v4, %v7322_v57  ;;  %v7325_v23 = vpop.f32.mrb[50].mxu0 }
 0x1e1   : > { %v10902_v19 = vadd.f32 %v8481_v6, %v7439_v50  ;;  %v7326_v11 = vpop.f32.mrb[51].mxu0 }
 0x1e2   : > { %v7327_v30 = vadd.f32 %v7326_v11, %v7325_v23 }
 0x1e3   : > { %v7440_v42 = vpop.f32.mrb[48].mxu1 }
 0x1e4   : > { %v7441_v32 = vpop.f32.mrb[49].mxu1 }
 0x1e5   : > { %v7442_v28 = vadd.f32 %v7441_v32, %v7440_v42  ;;  %v7443_v56 = vpop.f32.mrb[50].mxu1 }
 0x1e6   : > { %v7444_v46 = vpop.f32.mrb[51].mxu1  ;;  %v7328_v47 = vpop.f32.mrb[52].mxu0 }
 0x1e7   : > { %v10906_v16 = vadd.f32 %v8469_v39, %v7442_v28  ;;  %v7445_v3 = vadd.f32 %v7444_v46, %v7443_v56  ;;  %v7329_v22 = vpop.f32.mrb[53].mxu0 }
 0x1e8   : > { %v7330_v60 = vadd.f32 %v7329_v22, %v7328_v47  ;;  %v7331_v1 = vpop.f32.mrb[54].mxu0 }
 0x1e9   : > { %v10908_v57 = vadd.f32 %v8477_v20, %v7445_v3  ;;  %v7332_v6 = vpop.f32.mrb[55].mxu0 }
 0x1ea   : > { %v7333_v50 = vadd.f32 %v7332_v6, %v7331_v1  ;;  %v8485_v6 = vadd.f32 %v7318_v33, %v10877_v12 }
 0x1eb   : > { %v7446_v4 = vpop.f32.mrb[52].mxu1 }
 0x1ec   : > { %v7447_v23 = vpop.f32.mrb[53].mxu1 }
 0x1ed   : > { %v7448_v11 = vadd.f32 %v7447_v23, %v7446_v4  ;;  %v7449_v42 = vpop.f32.mrb[54].mxu1 }
 0x1ee   : > { %v7450_v32 = vpop.f32.mrb[55].mxu1  ;;  %v7334_v2 = vpop.f32.mrb[56].mxu0 }
 0x1ef   : > { %v10912_v39 = vadd.f32 %v8489_v61, %v7448_v11  ;;  %v7451_v28 = vadd.f32 %v7450_v32, %v7449_v42  ;;  %v7335_v56 = vpop.f32.mrb[57].mxu0  ;;  %v8493_v61 = vadd.f32 %v7321_v25, %v10877_v12 }
 0x1f0   : > { %v10914_v46 = vadd.f32 %v7335_v56, %v7334_v2  ;;  %v7337_v47 = vpop.f32.mrb[58].mxu0 }
 0x1f1   : > { %v10916_v20 = vadd.f32 %v8497_v37, %v7451_v28  ;;  %v7338_v3 = vpop.f32.mrb[59].mxu0 }
 0x1f2   : > { %v10918_v22 = vadd.f32 %v7338_v3, %v7337_v47 }
 0x1f3   : > { %v7452_v1 = vpop.f32.mrb[56].mxu1 }
 0x1f4   : > { %v7453_v5 = vpop.f32.mrb[57].mxu1 }
 0x1f5   : > { %v7454_v4 = vadd.f32 %v7453_v5, %v7452_v1  ;;  %v7455_v23 = vpop.f32.mrb[58].mxu1  ;;  %v8505_v1 = vadd.f32 %v7324_v14, %v10877_v12 }
 0x1f6   : > { %v7456_v35 = vpop.f32.mrb[59].mxu1  ;;  %v7340_v59 = vpop.f32.mrb[60].mxu0 }
 0x1f7   : > { %v10922_v11 = vadd.f32 %v8485_v6, %v7454_v4  ;;  %v7457_v2 = vadd.f32 %v7456_v35, %v7455_v23  ;;  %v7341_v42 = vpop.f32.mrb[61].mxu0  ;;  %v8513_v6 = vadd.f32 %v7327_v30, %v10877_v12 }
 0x1f8   : > { %v10924_v32 = vadd.f32 %v7341_v42, %v7340_v59  ;;  %v7343_v37 = vpop.f32.mrb[62].mxu0 }
 0x1f9   : > { %v10926_v28 = vadd.f32 %v8493_v61, %v7457_v2  ;;  %v7344_v56 = vpop.f32.mrb[63].mxu0  ;;  %v8409_v61 = vadd.f32 %v10835_v15, %v10877_v12 }
 0x1fa   : > { %v10928_v47 = vadd.f32 %v7344_v56, %v7343_v37 }
 0x1fb   : > { %v7458_v3 = vpop.f32.mrb[60].mxu1 }
 0x1fc   : > { %v7459_v33 = vpop.f32.mrb[61].mxu1 }
 0x1fd   : > { %v7460_v5 = vadd.f32 %v7459_v33, %v7458_v3  ;;  %v7461_v41 = vpop.f32.mrb[62].mxu1  ;;  %v8417_v3 = vadd.f32 %v10838_v31, %v10877_v12  ;;  %v8405_v31 = vadd.f32 %v10841_v63, %v10877_v12 }
 0x1fe   : > { %v7462_v52 = vpop.f32.mrb[63].mxu1  ;;  %v7386_v25 = vpop.f32.mrb[64].mxu0 }
 0x1ff   : > { %v10932_v35 = vadd.f32 %v8505_v1, %v7460_v5  ;;  %v7463_v4 = vadd.f32 %v7462_v52, %v7461_v41  ;;  %v7387_v23 = vpop.f32.mrb[65].mxu0  ;;  %v8501_v41 = vadd.f32 %v7330_v60, %v10877_v12 }
 0x200   : > { %v7388_v59 = vadd.f32 %v7387_v23, %v7386_v25  ;;  %v7389_v2 = vpop.f32.mrb[66].mxu0 }
 0x201   : > { %v10936_v42 = vadd.f32 %v8513_v6, %v7463_v4  ;;  %v7390_v37 = vpop.f32.mrb[67].mxu0  ;;  %v8509_v6 = vadd.f32 %v7333_v50, %v10877_v12 }
 0x202   : > { %v10938_v56 = vadd.f32 %v8409_v61, %v7388_v59  ;;  %v7391_v14 = vadd.f32 %v7390_v37, %v7389_v2 }
 0x203   : > { %12722 = vst [vmem:[#allocation48_spill] sm:$0xff] %v10936_v42  ;;  %v7464_v33 = vpop.f32.mrb[64].mxu1 }
 0x204   : > { %v7465_v30 = vpop.f32.mrb[65].mxu1  ;;  %v10942_v1 = vadd.f32 %v8417_v3, %v7391_v14 }
 0x205   : > { %v7466_v52 = vadd.f32 %v7465_v30, %v7464_v33  ;;  %v7467_v5 = vpop.f32.mrb[66].mxu1  ;;  %v8413_v33 = vadd.f32 %v10844_v62, %v10877_v12  ;;  %v8425_v62 = vadd.f32 %v10847_v29, %v10877_v12  ;;  %v8944_v29 = vld [vmem:[#allocation9 + $0x40] sm:$0xff]  }
 0x206   : > { %v7468_v25 = vpop.f32.mrb[67].mxu1  ;;  %v7392_v15 = vpop.f32.mrb[68].mxu0  ;;  %7642 = vmatprep.subr.bf16.mxu0 %v8944_v29 }
 0x207   : > { %v10946_v4 = vadd.f32 %v8501_v41, %v7466_v52  ;;  %v7469_v23 = vadd.f32 %v7468_v25, %v7467_v5  ;;  %v7393_v59 = vpop.f32.mrb[69].mxu0  ;;  %v8521_v52 = vadd.f32 %v10914_v46, %v10877_v12 }
 0x208   : > { %v7394_v61 = vadd.f32 %v7393_v59, %v7392_v15  ;;  %v7395_v2 = vpop.f32.mrb[70].mxu0 }
 0x209   : > { %12723 = vst [vmem:[#allocation49_spill] sm:$0xff] %v10946_v4  ;;  %v10950_v37 = vadd.f32 %v8509_v6, %v7469_v23  ;;  %v7396_v14 = vpop.f32.mrb[71].mxu0  ;;  %v8529_v6 = vadd.f32 %v10918_v22, %v10877_v12 }
 0x20a   : > { %v10952_v3 = vadd.f32 %v8405_v31, %v7394_v61  ;;  %v7397_v60 = vadd.f32 %v7396_v14, %v7395_v2 }
 0x20b   : > { %12724 = vst [vmem:[#allocation50_spill] sm:$0xff] %v10950_v37  ;;  %v7470_v30 = vpop.f32.mrb[68].mxu1 }
 0x20c   : > { %v7471_v50 = vpop.f32.mrb[69].mxu1  ;;  %v10956_v41 = vadd.f32 %v8413_v33, %v7397_v60 }
 0x20d   : > { %v7472_v5 = vadd.f32 %v7471_v50, %v7470_v30  ;;  %v7473_v25 = vpop.f32.mrb[70].mxu1  ;;  %v8433_v30 = vadd.f32 %v10850_v44, %v10877_v12 }
 0x20e   : > { %v7474_v63 = vpop.f32.mrb[71].mxu1  ;;  %v7398_v15 = vpop.f32.mrb[72].mxu0 }
 0x20f   : > { %v10962_v23 = vadd.f32 %v8521_v52, %v7472_v5  ;;  %v7475_v59 = vadd.f32 %v7474_v63, %v7473_v25  ;;  %v7399_v61 = vpop.f32.mrb[73].mxu0  ;;  %v8517_v5 = vadd.f32 %v10924_v32, %v10877_v12 }
 0x210   : > { %v7400_v31 = vadd.f32 %v7399_v61, %v7398_v15  ;;  %v7401_v2 = vpop.f32.mrb[74].mxu0  ;;  %v8525_v61 = vadd.f32 %v10928_v47, %v10877_v12  ;;  %v8429_v47 = vadd.f32 %v10856_v17, %v10877_v12 }
 0x211   : > { %12725 = vst [vmem:[#allocation51_spill] sm:$0xff] %v10962_v23  ;;  %v10966_v14 = vadd.f32 %v8529_v6, %v7475_v59  ;;  %v7402_v60 = vpop.f32.mrb[75].mxu0  ;;  %v8945_v59 = vld [vmem:[#allocation9] sm:$0xff]  }
 0x212   : > { %v10968_v46 = vadd.f32 %v8425_v62, %v7400_v31  ;;  %v7403_v33 = vadd.f32 %v7402_v60, %v7401_v2  ;;  %v8421_v60 = vadd.f32 %v10853_v0, %v10877_v12  ;;  %7643 = vmatpush3.bf16.msra.mxu0 %v8945_v59  ;;  %v8949_v0 = vld [vmem:[#allocation9 + $0x50] sm:$0xff]   ;;  %v8951_v59 = vld [vmem:[#allocation9 + $0x88] sm:$0xff]  }
 0x213   : > { %12726 = vst [vmem:[#allocation52_spill] sm:$0xff] %v10966_v14  ;;  %v7476_v50 = vpop.f32.mrb[72].mxu1 }
 0x214   : > { %v7477_v22 = vpop.f32.mrb[73].mxu1  ;;  %v10972_v52 = vadd.f32 %v8433_v30, %v7403_v33 }
 0x215   : > { %v7478_v25 = vadd.f32 %v7477_v22, %v7476_v50  ;;  %v7479_v63 = vpop.f32.mrb[74].mxu1  ;;  %v8946_v50 = vld [vmem:[#allocation9 + $0x48] sm:$0xff]  }
 0x216   : > { %v7480_v15 = vpop.f32.mrb[75].mxu1  ;;  %v7404_v6 = vpop.f32.mrb[76].mxu0  ;;  %7644 = vmatprep.subr.bf16.mxu0 %v8946_v50 }
 0x217   : > { %v10978_v31 = vadd.f32 %v8517_v5, %v7478_v25  ;;  %v7481_v62 = vadd.f32 %v7480_v15, %v7479_v63  ;;  %v7405_v44 = vpop.f32.mrb[77].mxu0  ;;  %v8947_v5 = vld [vmem:[#allocation9 + $0x8] sm:$0xff]   ;;  %v8948_v25 = vld [vmem:[#allocation9 + $0x80] sm:$0xff]   ;;  %v8950_v15 = vld [vmem:[#allocation9 + $0x10] sm:$0xff]  }
 0x218   : > { %v7406_v2 = vadd.f32 %v7405_v44, %v7404_v6  ;;  %v7407_v33 = vpop.f32.mrb[78].mxu0  ;;  %7645 = vmatpush3.bf16.msra.mxu0 %v8947_v5  ;;  %8225 = vmatprep.subr.bf16.mxu1 %v8948_v25  ;;  %v8953_v5 = vld [vmem:[#allocation9 + $0x18] sm:$0xff]  }
 0x219   : > { %12727 = vst [vmem:[#allocation53_spill] sm:$0xff] %v10978_v31  ;;  %v10982_v32 = vadd.f32 %v8525_v61, %v7481_v62  ;;  %v7408_v30 = vpop.f32.mrb[79].mxu0  ;;  %8226 = vmatpush3.bf16.msra.mxu1 %v8948_v25  ;;  %7646 = vmatprep.subr.bf16.mxu0 %v8949_v0  ;;  %v8441_v62 = vadd.f32 %v10859_v9, %v10877_v12  ;;  %v8954_v0 = vld [vmem:[#allocation9 + $0x90] sm:$0xff]  }
 0x21a   : > { %v10984_v22 = vadd.f32 %v8421_v60, %v7406_v2  ;;  %v7409_v55 = vadd.f32 %v7408_v30, %v7407_v33  ;;  %8227 = vmatprep.subr.bf16.mxu1 %v8951_v59  ;;  %v8952_v2 = vld [vmem:[#allocation9 + $0x58] sm:$0xff]   ;;  %v8449_v33 = vadd.f32 %v10862_v40, %v10877_v12 }
 0x21b   : > { %12728 = vst [vmem:[#allocation54_spill] sm:$0xff] %v10982_v32 }
 0x21c   : > { %v10988_v63 = vadd.f32 %v8429_v47, %v7409_v55  ;;  %7647 = vmatpush3.bf16.msra.mxu0 %v8950_v15 }
 0x21d   : > { %8228 = vmatpush3.bf16.msra.mxu1 %v8951_v59  ;;  %7648 = vmatprep.subr.bf16.mxu0 %v8952_v2 }
 0x21e   : > { %v7410_v29 = vpop.f32.mrb[80].mxu0  ;;  %8229 = vmatprep.subr.bf16.mxu1 %v8954_v0 }
 0x21f   : > { %v7411_v6 = vpop.f32.mrb[81].mxu0 }
 0x220   : > { %v7412_v61 = vadd.f32 %v7411_v6, %v7410_v29  ;;  %v7413_v44 = vpop.f32.mrb[82].mxu0  ;;  %7649 = vmatpush3.bf16.msra.mxu0 %v8953_v5 }
 0x221   : > { %v7414_v17 = vpop.f32.mrb[83].mxu0  ;;  %8230 = vmatpush3.bf16.msra.mxu1 %v8954_v0 }
 0x222   : > { %v10992_v55 = vadd.f32 %v8441_v62, %v7412_v61  ;;  %v7415_v60 = vadd.f32 %v7414_v17, %v7413_v44  ;;  %v8955_v61 = vld [vmem:[#allocation9 + $0x60] sm:$0xff]  }
 0x223   : > { %v8956_v17 = vld [vmem:[#allocation9 + $0x20] sm:$0xff]   ;;  %7650 = vmatprep.subr.bf16.mxu0 %v8955_v61  ;;  %v8962_v61 = vld [vmem:[#allocation9 + $0x30] sm:$0xff]  }
 0x224   : > { %v10996_v30 = vadd.f32 %v8449_v33, %v7415_v60  ;;  %v8957_v60 = vld [vmem:[#allocation9 + $0x98] sm:$0xff]   ;;  %7651 = vmatpush3.bf16.msra.mxu0 %v8956_v17 }
 0x225   : > { %8231 = vmatprep.subr.bf16.mxu1 %v8957_v60  ;;  %v8964_v17 = vld [vmem:[#allocation9 + $0x78] sm:$0xff]  }
 0x226   : > { %v7522_v50 = vpop.f32.mrb[84].mxu0  ;;  %8232 = vmatpush3.bf16.msra.mxu1 %v8957_v60  ;;  %v8965_v60 = vld [vmem:[#allocation9 + $0x38] sm:$0xff]  }
 0x227   : > { %v7523_v47 = vpop.f32.mrb[85].mxu0 }
 0x228   : > { %v7524_v25 = vadd.f32 %v7523_v47, %v7522_v50  ;;  %v7525_v9 = vpop.f32.mrb[86].mxu0 }
 0x229   : > { %v7526_v29 = vpop.f32.mrb[87].mxu0 }
 0x22a   : > { %v7527_v15 = vadd.f32 %v7526_v29, %v7525_v9  ;;  %v10999_v6 = vadd.f32 %v10938_v56, %v7524_v25  ;;  %v8958_v56 = vld [vmem:[#allocation9 + $0x68] sm:$0xff]   ;;  %v8960_v29 = vld [vmem:[#allocation9 + $0xa0] sm:$0xff]  }
 0x22b   : > { %7652 = vmatprep.subr.bf16.mxu0 %v8958_v56  ;;  %v8959_v25 = vld [vmem:[#allocation9 + $0x28] sm:$0xff]   ;;  %8233 = vmatprep.subr.bf16.mxu1 %v8960_v29 }
 0x22c   : > { %v11002_v40 = vadd.f32 %v10942_v1, %v7527_v15  ;;  %7653 = vmatpush3.bf16.msra.mxu0 %v8959_v25  ;;  %8234 = vmatpush3.bf16.msra.mxu1 %v8960_v29 }
 0x22e   : > { %v7528_v12 = vpop.f32.mrb[88].mxu0 }
 0x22f   : > { %v7529_v59 = vpop.f32.mrb[89].mxu0 }
 0x230   : > { %v7530_v62 = vadd.f32 %v7529_v59, %v7528_v12  ;;  %v7531_v44 = vpop.f32.mrb[90].mxu0  ;;  %v8961_v59 = vld [vmem:[#allocation9 + $0x70] sm:$0xff]  }
 0x231   : > { %v7532_v2 = vpop.f32.mrb[91].mxu0  ;;  %7654 = vmatprep.subr.bf16.mxu0 %v8961_v59 }
 0x232   : > { %v7533_v33 = vadd.f32 %v7532_v2, %v7531_v44  ;;  %v11005_v50 = vadd.f32 %v10952_v3, %v7530_v62  ;;  %v8963_v62 = vld [vmem:[#allocation9 + $0xa8] sm:$0xff]   ;;  %7655 = vmatpush3.bf16.msra.mxu0 %v8962_v61 }
 0x233   : > { %8235 = vmatprep.subr.bf16.mxu1 %v8963_v62  ;;  %7656 = vmatprep.subr.bf16.mxu0 %v8964_v17 }
 0x234   : > { %v11008_v47 = vadd.f32 %v10956_v41, %v7533_v33  ;;  %8236 = vmatpush3.bf16.msra.mxu1 %v8963_v62 }
 0x236   : > { %v7534_v1 = vpop.f32.mrb[92].mxu0  ;;  %7657 = vmatpush3.bf16.msra.mxu0 %v8965_v60 }
 0x237   : > { %v7535_v5 = vpop.f32.mrb[93].mxu0 }
 0x238   : > { %v7536_v9 = vadd.f32 %v7535_v5, %v7534_v1  ;;  %v7537_v0 = vpop.f32.mrb[94].mxu0 }
 0x239   : > { %v7538_v15 = vpop.f32.mrb[95].mxu0  ;;  %4684 = vmatmul.mubr.bf16.vlgmr.msra.gmra.mrb[148].mxu0 %v10870_v36 }
 0x23a   : > { %v7539_v12 = vadd.f32 %v7538_v15, %v7537_v0  ;;  %v11011_v3 = vadd.f32 %v10968_v46, %v7536_v9  ;;  %v8966_v46 = vld [vmem:[#allocation9 + $0xb0] sm:$0xff]   ;;  %v8967_v9 = vld [vmem:[#allocation9 + $0xb8] sm:$0xff]  }
 0x23b   : > { %8237 = vmatprep.subr.bf16.mxu1 %v8966_v46 }
 0x23c   : > { %v11014_v41 = vadd.f32 %v10972_v52, %v7539_v12  ;;  %8238 = vmatpush3.bf16.msra.mxu1 %v8966_v46 }
 0x23d   : > { %8239 = vmatprep.subr.bf16.mxu1 %v8967_v9 }
 0x23e   : > { %v7540_v44 = vpop.f32.mrb[96].mxu0 }
 0x23f   : > { %v7541_v2 = vpop.f32.mrb[97].mxu0 }
 0x240   : > { %v7542_v33 = vadd.f32 %v7541_v2, %v7540_v44  ;;  %v7543_v56 = vpop.f32.mrb[98].mxu0  ;;  %8240 = vmatpush3.bf16.msra.mxu1 %v8967_v9 }
 0x241   : > { %v7544_v1 = vpop.f32.mrb[99].mxu0 }
 0x242   : > { %v7545_v5 = vadd.f32 %v7544_v1, %v7543_v56  ;;  %v8423_v25 = vadd.f32 %v10984_v22, %v7542_v33 }
 0x244   : > { %v11019_v52 = vadd.f32 %v10988_v63, %v7545_v5 }
 0x246   : > { %v7546_v0 = vpop.f32.mrb[100].mxu0 }
 0x247   : > { %v7547_v29 = vpop.f32.mrb[101].mxu0 }
 0x248   : > { %v7548_v15 = vadd.f32 %v7547_v29, %v7546_v0  ;;  %v7549_v12 = vpop.f32.mrb[102].mxu0 }
 0x249   : > { %v7550_v59 = vpop.f32.mrb[103].mxu0 }
 0x24a   : > { %v7551_v61 = vadd.f32 %v7550_v59, %v7549_v12  ;;  %v11023_v22 = vadd.f32 %v10992_v55, %v7548_v15 }
 0x24c   : > { %v11026_v62 = vadd.f32 %v10996_v30, %v7551_v61 }
 0x24e   : > { %v7552_v44 = vpop.f32.mrb[104].mxu0 }
 0x24f   : > { %v7553_v63 = vpop.f32.mrb[105].mxu0 }
 0x250   : > { %v7554_v17 = vadd.f32 %v7553_v63, %v7552_v44  ;;  %v7555_v2 = vpop.f32.mrb[106].mxu0 }
 0x251   : > { %v7556_v36 = vpop.f32.mrb[107].mxu0 }
 0x252   : > { %v7557_v60 = vadd.f32 %v7556_v36, %v7555_v2  ;;  %v11029_v33 = vadd.f32 %v10881_v21, %v7554_v17 }
 0x254   : > { %v11032_v56 = vadd.f32 %v10884_v43, %v7557_v60 }
 0x256   : > { %v7558_v46 = vpop.f32.mrb[108].mxu0 }
 0x257   : > { %v7559_v1 = vpop.f32.mrb[109].mxu0 }
 0x258   : > { %v7560_v5 = vadd.f32 %v7559_v1, %v7558_v46  ;;  %v7561_v55 = vpop.f32.mrb[110].mxu0 }
 0x259   : > { %v7562_v9 = vpop.f32.mrb[111].mxu0 }
 0x25a   : > { %v7563_v0 = vadd.f32 %v7562_v9, %v7561_v55  ;;  %v11035_v30 = vadd.f32 %v10887_v13, %v7560_v5 }
 0x25b   : > { %v8195_v29 = vpop.f32.mrb[0].mxu1 }
 0x25c   : > { %v11038_v15 = vadd.f32 %v11005_v50, %v8195_v29  ;;  %v3385_v12 = vpop.f32.mrb[1].mxu1  ;;  %v11041_v21 = vadd.f32 %v10890_v51, %v7563_v0 }
 0x25d   : > { %v11044_v43 = vadd.f32 %v10999_v6, %v3385_v12  ;;  %v8196_v59 = vpop.f32.mrb[2].mxu1 }
 0x25e   : > { %v3578_v61 = vand.u32 2147483647, %v11038_v15  ;;  %v11048_v44 = vadd.f32 %v11008_v47, %v8196_v59  ;;  %v3388_v63 = vpop.f32.mrb[3].mxu1  ;;  %v7564_v13 = vpop.f32.mrb[112].mxu0  ;;  %v12729_v8 = vmax.f32 %v11038_v15, 0.0 }
 0x25f   : > { %v3576_v17 = vand.u32 2147483647, %v11044_v43  ;;  %v11052_v50 = vadd.f32 %v11002_v40, %v3388_v63  ;;  %v7565_v2 = vpop.f32.mrb[113].mxu0 }
 0x260   : > { %v3610_v36 = vsub.f32 0.0, %v3578_v61  ;;  %v3579_v51 = vand.u32 2147483647, %v11048_v44  ;;  %v7566_v60 = vadd.f32 %v7565_v2, %v7564_v13  ;;  %v7567_v6 = vpop.f32.mrb[114].mxu0 }
 0x261   : > { %v3608_v46 = vsub.f32 0.0, %v3576_v17  ;;  %v3577_v1 = vand.u32 2147483647, %v11052_v50  ;;  %v7568_v5 = vpop.f32.mrb[115].mxu0  ;;  %v12732_v14 = vmax.f32 %v11052_v50, 0.0 }
 0x262   : > { %v3644_v55 = vmul.f32 1.442695, %v3610_v36  ;;  %v3611_v47 = vsub.f32 0.0, %v3579_v51  ;;  %v7569_v9 = vadd.f32 %v7568_v5, %v7567_v6  ;;  %v11057_v0 = vadd.f32 %v10894_v53, %v7566_v60 }
 0x263   : > { %v3640_v29 = vmul.f32 1.442695, %v3608_v46  ;;  %v3609_v12 = vsub.f32 0.0, %v3577_v1  ;;  %v8199_v40 = vpop.f32.mrb[4].mxu1 }
 0x264   : > { %9024 = vpow2.f32 %v3644_v55  ;;  %v3646_v59 = vmul.f32 1.442695, %v3611_v47  ;;  %v11059_v61 = vadd.f32 %v8423_v25, %v8199_v40  ;;  %v3401_v63 = vpop.f32.mrb[5].mxu1  ;;  %v11062_v13 = vadd.f32 %v10896_v18, %v7569_v9 }
 0x265   : > { %9026 = vpow2.f32 %v3640_v29  ;;  %v3642_v17 = vmul.f32 1.442695, %v3609_v12  ;;  %v11065_v2 = vadd.f32 %v11011_v3, %v3401_v63  ;;  %v8200_v36 = vpop.f32.mrb[6].mxu1 }
 0x266   : > { %9028 = vpow2.f32 %v3646_v59  ;;  %v3582_v53 = vand.u32 2147483647, %v11059_v61  ;;  %v11069_v51 = vadd.f32 %v11019_v52, %v8200_v36  ;;  %v3404_v60 = vpop.f32.mrb[7].mxu1  ;;  %v7570_v6 = vpop.f32.mrb[116].mxu0 }
 0x267   : > { %9030 = vpow2.f32 %v3642_v17  ;;  %v3580_v25 = vand.u32 2147483647, %v11065_v2  ;;  %v11073_v18 = vadd.f32 %v11014_v41, %v3404_v60  ;;  %v7571_v46 = vpop.f32.mrb[117].mxu0 }
 0x268   : > { %v3614_v1 = vsub.f32 0.0, %v3582_v53  ;;  %v3583_v3 = vand.u32 2147483647, %v11069_v51  ;;  %v7572_v5 = vadd.f32 %v7571_v46, %v7570_v6  ;;  %v7573_v55 = vpop.f32.mrb[118].mxu0 }
 0x269   : > { %v3612_v47 = vsub.f32 0.0, %v3580_v25  ;;  %v3581_v9 = vand.u32 2147483647, %v11073_v18  ;;  %v7574_v29 = vpop.f32.mrb[119].mxu0  ;;  %v12737_v4 = vmax.f32 %v11073_v18, 0.0 }
 0x26a   : > { %v3652_v52 = vmul.f32 1.442695, %v3614_v1  ;;  %v3615_v12 = vsub.f32 0.0, %v3583_v3  ;;  %v7575_v40 = vadd.f32 %v7574_v29, %v7573_v55  ;;  %v11078_v59 = vadd.f32 %v10900_v49, %v7572_v5 }
 0x26b   : > { %v3648_v41 = vmul.f32 1.442695, %v3612_v47  ;;  %v3613_v17 = vsub.f32 0.0, %v3581_v9  ;;  %v8203_v36 = vpop.f32.mrb[8].mxu1 }
 0x26c   : > { %9032 = vpow2.f32 %v3652_v52  ;;  %v3654_v53 = vmul.f32 1.442695, %v3615_v12  ;;  %v11082_v60 = vadd.f32 %v11029_v33, %v8203_v36  ;;  %v3417_v6 = vpop.f32.mrb[9].mxu1  ;;  %v11085_v25 = vadd.f32 %v10902_v19, %v7575_v40 }
 0x26d   : > { %9034 = vpow2.f32 %v3648_v41  ;;  %v3650_v1 = vmul.f32 1.442695, %v3613_v17  ;;  %v11089_v49 = vadd.f32 %v11023_v22, %v3417_v6  ;;  %v8204_v3 = vpop.f32.mrb[10].mxu1 }
 0x26e   : > { %v9025_v5 = vpop.eup %9024  ;;  %9036 = vpow2.f32 %v3654_v53  ;;  %v3586_v47 = vand.u32 2147483647, %v11082_v60  ;;  %v11094_v33 = vadd.f32 %v11032_v56, %v8204_v3  ;;  %v3420_v9 = vpop.f32.mrb[11].mxu1 }
 0x26f   : > { %v7576_v19 = vpop.f32.mrb[120].mxu0  ;;  %v9027_v29 = vpop.eup %9026  ;;  %v3706_v52 = vadd.f32 1.0, %v9025_v5  ;;  %9038 = vpow2.f32 %v3650_v1  ;;  %v3584_v22 = vand.u32 2147483647, %v11089_v49  ;;  %v11101_v5 = vadd.f32 %v11026_v62, %v3420_v9 }
 0x270   : > { %v7577_v40 = vpop.f32.mrb[121].mxu0  ;;  %v9029_v41 = vpop.eup %9028  ;;  %v3704_v17 = vadd.f32 1.0, %v9027_v29  ;;  %v3618_v53 = vsub.f32 0.0, %v3586_v47  ;;  %v3587_v6 = vand.u32 2147483647, %v11094_v33 }
 0x271   : > { %v7579_v55 = vpop.f32.mrb[122].mxu0  ;;  %v9031_v56 = vpop.eup %9030  ;;  %9040 = vlog2.f32 %v3706_v52  ;;  %v3707_v3 = vadd.f32 1.0, %v9029_v41  ;;  %v3616_v46 = vsub.f32 0.0, %v3584_v22  ;;  %v3585_v47 = vand.u32 2147483647, %v11101_v5 }
 0x272   : > { %v7580_v12 = vpop.f32.mrb[123].mxu0  ;;  %9042 = vlog2.f32 %v3704_v17  ;;  %v3705_v1 = vadd.f32 1.0, %v9031_v56  ;;  %v3660_v63 = vmul.f32 1.442695, %v3618_v53  ;;  %v3619_v10 = vsub.f32 0.0, %v3587_v6 }
 0x273   : > { %9044 = vlog2.f32 %v3707_v3  ;;  %v3656_v36 = vmul.f32 1.442695, %v3616_v46  ;;  %v8207_v48 = vpop.f32.mrb[12].mxu1  ;;  %v7578_v22 = vadd.f32 %v7577_v40, %v7576_v19  ;;  %v3617_v9 = vsub.f32 0.0, %v3585_v47 }
 0x274   : > { %9046 = vlog2.f32 %v3705_v1  ;;  %v3662_v54 = vmul.f32 1.442695, %v3619_v10  ;;  %v11106_v52 = vadd.f32 %v11057_v0, %v8207_v48  ;;  %v3433_v62 = vpop.f32.mrb[13].mxu1  ;;  %v11111_v53 = vadd.f32 %v7580_v12, %v7579_v55 }
 0x275   : > { %9048 = vpow2.f32 %v3660_v63  ;;  %v11109_v41 = vadd.f32 %v11035_v30, %v3433_v62  ;;  %v8208_v17 = vpop.f32.mrb[14].mxu1 }
 0x276   : > { %v9033_v6 = vpop.eup %9032  ;;  %9050 = vpow2.f32 %v3656_v36  ;;  %v3590_v56 = vand.u32 2147483647, %v11106_v52  ;;  %v11116_v10 = vadd.f32 %v11062_v13, %v8208_v17  ;;  %v3436_v48 = vpop.f32.mrb[15].mxu1 }
 0x277   : > { %v11118_v0 = vpop.f32.mrb[124].mxu0  ;;  %v9035_v63 = vpop.eup %9034  ;;  %v3710_v19 = vadd.f32 1.0, %v9033_v6  ;;  %9052 = vpow2.f32 %v3662_v54  ;;  %v3588_v13 = vand.u32 2147483647, %v11109_v41  ;;  %v3658_v6 = vmul.f32 1.442695, %v3617_v9 }
 0x278   : > { %v11122_v55 = vpop.f32.mrb[125].mxu0  ;;  %v9037_v12 = vpop.eup %9036  ;;  %v3708_v3 = vadd.f32 1.0, %v9035_v63  ;;  %v3622_v1 = vsub.f32 0.0, %v3590_v56  ;;  %v11129_v30 = vadd.f32 %v11041_v21, %v3436_v48  ;;  %v3591_v36 = vand.u32 2147483647, %v11116_v10 }
 0x279   : > { %v11126_v47 = vpop.f32.mrb[126].mxu0  ;;  %v9039_v62 = vpop.eup %9038  ;;  %9054 = vlog2.f32 %v3710_v19  ;;  %v3711_v17 = vadd.f32 1.0, %v9037_v12  ;;  %v3620_v29 = vsub.f32 0.0, %v3588_v13  ;;  %v8471_v21 = vadd.f32 %v10906_v16, %v7578_v22 }
 0x27a   : > { %v7586_v40 = vpop.f32.mrb[127].mxu0  ;;  %9056 = vlog2.f32 %v3708_v3  ;;  %v3709_v54 = vadd.f32 1.0, %v9039_v62  ;;  %v3668_v46 = vmul.f32 1.442695, %v3622_v1  ;;  %v3589_v27 = vand.u32 2147483647, %v11129_v30 }
 0x27b   : > { %v9041_v63 = vpop.eup %9040  ;;  %9058 = vlog2.f32 %v3711_v17  ;;  %v8211_v38 = vpop.f32.mrb[16].mxu1  ;;  %v3664_v9 = vmul.f32 1.442695, %v3620_v29  ;;  %v3623_v13 = vsub.f32 0.0, %v3591_v36 }
 0x27c   : > { %v9043_v19 = vpop.eup %9042  ;;  %v3741_v12 = vmul.f32 0.6931472, %v9041_v63  ;;  %9060 = vlog2.f32 %v3709_v54  ;;  %v3449_v48 = vpop.f32.mrb[17].mxu1  ;;  %v11139_v63 = vadd.f32 %v8471_v21, %v8211_v38  ;;  %v12730_v54 = vmax.f32 %v11044_v43, 0.0 }
 0x27d   : > { %v9045_v3 = vpop.eup %9044  ;;  %v3737_v62 = vmul.f32 0.6931472, %v9043_v19  ;;  %9062 = vpow2.f32 %v3658_v6  ;;  %v8212_v17 = vpop.f32.mrb[18].mxu1 }
 0x27e   : > { %v9047_v56 = vpop.eup %9046  ;;  %v3802_v7 = vadd.f32 %v3741_v12, %v12729_v8  ;;  %v3743_v32 = vmul.f32 0.6931472, %v9045_v3  ;;  %9064 = vpow2.f32 %v3668_v46  ;;  %v11141_v29 = vpop.f32.mrb[19].mxu1  ;;  %v12731_v8 = vmax.f32 %v11048_v44, 0.0 }
 0x27f   : > { %v11143_v16 = vpop.f32.mrb[128].mxu0  ;;  %v9049_v22 = vpop.eup %9048  ;;  %v3800_v19 = vadd.f32 %v3737_v62, %v12730_v54  ;;  %v3739_v6 = vmul.f32 0.6931472, %v9047_v56  ;;  %9066 = vpow2.f32 %v3664_v9  ;;  %v3621_v12 = vsub.f32 0.0, %v3589_v27  ;;  %v11158_v9 = vld [vmem:[#allocation9 + $0x140] sm:$0xff]  }
 0x280   : > { %v11147_v1 = vpop.f32.mrb[129].mxu0  ;;  %v9051_v31 = vpop.eup %9050  ;;  %9068 = vtanh.f32 %v3802_v7  ;;  %v3803_v46 = vadd.f32 %v3743_v32, %v12731_v8  ;;  %v3714_v38 = vadd.f32 1.0, %v9049_v22  ;;  %v3594_v56 = vand.u32 2147483647, %v11139_v63  ;;  %12733 = vst [vmem:[#allocation55_spill] sm:$0xff] %v11158_v9  ;;  %8273 = vmatprep.subr.bf16.mxu1 %v11158_v9 }
 0x281   : > { %v11151_v21 = vpop.f32.mrb[130].mxu0  ;;  %v9053_v3 = vpop.eup %9052  ;;  %9070 = vtanh.f32 %v3800_v19  ;;  %v3801_v45 = vadd.f32 %v3739_v6, %v12732_v14  ;;  %v3712_v62 = vadd.f32 1.0, %v9051_v31  ;;  %v7584_v32 = vadd.f32 %v11122_v55, %v11118_v0 }
 0x282   : > { %v11156_v36 = vpop.f32.mrb[131].mxu0  ;;  %9072 = vtanh.f32 %v3803_v46  ;;  %v3715_v7 = vadd.f32 1.0, %v9053_v3  ;;  %v11163_v27 = vadd.f32 %v11078_v59, %v3449_v48  ;;  %v3670_v54 = vmul.f32 1.442695, %v3623_v13 }
 0x283   : > { %v9055_v22 = vpop.eup %9054  ;;  %9074 = vtanh.f32 %v3801_v45  ;;  %v8479_v14 = vadd.f32 %v10908_v57, %v11111_v53  ;;  %v11168_v31 = vadd.f32 %v7586_v40, %v11126_v47  ;;  %v11170_v19 = vpop.f32.mrb[20].mxu1  ;;  %v3626_v0 = vsub.f32 0.0, %v3594_v56 }
 0x284   : > { %v9057_v6 = vpop.eup %9056  ;;  %v3749_v8 = vmul.f32 0.6931472, %v9055_v22  ;;  %9076 = vlog2.f32 %v3714_v38  ;;  %v3592_v59 = vand.u32 2147483647, %v11163_v27  ;;  %v11174_v55 = vpop.f32.mrb[21].mxu1  ;;  %v12734_v13 = vmax.f32 %v11059_v61, 0.0 }
 0x285   : > { %v9059_v45 = vpop.eup %9058  ;;  %v3745_v48 = vmul.f32 0.6931472, %v9057_v6  ;;  %9078 = vlog2.f32 %v3712_v62  ;;  %v11177_v53 = vadd.f32 %v8479_v14, %v8212_v17  ;;  %v11179_v40 = vpop.f32.mrb[22].mxu1  ;;  %v11183_v38 = vmul.f32 1.442695, %v3621_v12 }
 0x286   : > { %v9061_v47 = vpop.eup %9060  ;;  %v3806_v46 = vadd.f32 %v3749_v8, %v12734_v13  ;;  %v3751_v3 = vmul.f32 0.6931472, %v9059_v45  ;;  %9080 = vlog2.f32 %v3715_v7  ;;  %v11185_v56 = vpop.f32.mrb[23].mxu1  ;;  %v12735_v62 = vmax.f32 %v11065_v2, 0.0 }
 0x287   : > { %v11187_v22 = vpop.f32.mrb[132].mxu0  ;;  %v9063_v6 = vpop.eup %9062  ;;  %v3747_v17 = vmul.f32 0.6931472, %v9061_v47  ;;  %9082 = vpow2.f32 %v3670_v54  ;;  %v3624_v14 = vsub.f32 0.0, %v3592_v59  ;;  %v12736_v8 = vmax.f32 %v11069_v51, 0.0 }
 0x288   : > { %v3804_v57 = vadd.f32 %v3745_v48, %v12735_v62  ;;  %v11191_v9 = vpop.f32.mrb[133].mxu0  ;;  %v9065_v23 = vpop.eup %9064  ;;  %9084 = vtanh.f32 %v3806_v46  ;;  %v3713_v12 = vadd.f32 1.0, %v9063_v6  ;;  %v11195_v45 = vmul.f32 1.442695, %v3626_v0 }
 0x289   : > { %v3807_v7 = vadd.f32 %v3751_v3, %v12736_v8  ;;  %v11197_v13 = vpop.f32.mrb[134].mxu0  ;;  %v9067_v37 = vpop.eup %9066  ;;  %v3805_v48 = vadd.f32 %v3747_v17, %v12737_v4  ;;  %v3718_v47 = vadd.f32 1.0, %v9065_v23  ;;  %v3595_v54 = vand.u32 2147483647, %v11177_v53 }
 0x28a   : > { %9086 = vtanh.f32 %v3804_v57  ;;  %v11202_v59 = vpop.f32.mrb[135].mxu0  ;;  %v9069_v62 = vpop.eup %9068  ;;  %v3716_v46 = vadd.f32 1.0, %v9067_v37  ;;  %v11206_v3 = vadd.f32 %v11085_v25, %v11141_v29  ;;  %v11210_v0 = vadd.f32 %v11147_v1, %v11143_v16 }
 0x28b   : > { %9088 = vtanh.f32 %v3807_v7  ;;  %v9071_v57 = vpop.eup %9070  ;;  %v11213_v6 = vmul.f32 %v9069_v62, %v11038_v15  ;;  %v11215_v4 = vmul.f32 1.442695, %v3624_v14  ;;  %v11218_v23 = vadd.f32 %v10912_v39, %v7584_v32  ;;  %v11220_v17 = vpop.f32.mrb[24].mxu1 }
 0x28c   : > { %9090 = vtanh.f32 %v3805_v48  ;;  %12738 = vst [vmem:[#allocation56_spill] sm:$0xff] %v11220_v17  ;;  %v9073_v37 = vpop.eup %9072  ;;  %v3864_v25 = vmul.f32 %v9071_v57, %v11044_v43  ;;  %v11223_v29 = vsub.f32 0.0, %v3595_v54  ;;  %v11226_v16 = vpop.f32.mrb[25].mxu1 }
 0x28d   : > { %9092 = vlog2.f32 %v3713_v12  ;;  %12739 = vst [vmem:[#allocation57_spill] sm:$0xff] %v11226_v16  ;;  %v9075_v15 = vpop.eup %9074  ;;  %v3964_v8 = vrot.slane %v11213_v6, 7  ;;  %4092 = vst [vmem:[#allocation3 + $0x68] sm:$0xff] %v11213_v6  ;;  %v4124_v39 = vmul.f32 %v9906_v26, %v11213_v6  ;;  %v11233_v32 = vmul.f32 %v9073_v37, %v11048_v44  ;;  %v11235_v43 = vpop.f32.mrb[26].mxu1 }
 0x28e   : > { %9094 = vlog2.f32 %v3718_v47  ;;  %12740 = vst [vmem:[#allocation58_spill] sm:$0xff] %v11235_v43  ;;  %v9077_v14 = vpop.eup %9076  ;;  %v3961_v7 = vrot.slane %v3864_v25, 7  ;;  %4090 = vst [vmem:[#allocation3 + $0x38] sm:$0xff] %v3864_v25  ;;  %v4122_v12 = vmul.f32 %v9903_v24, %v3864_v25  ;;  %v3865_v48 = vmul.f32 %v9075_v15, %v11052_v50  ;;  %v11239_v54 = vpop.f32.mrb[27].mxu1 }
 0x28f   : > { %9096 = vlog2.f32 %v3716_v46  ;;  %12741 = vst [vmem:[#allocation59_spill] sm:$0xff] %v11239_v54  ;;  %v11241_v62 = vpop.f32.mrb[136].mxu0  ;;  %v9079_v57 = vpop.eup %9078  ;;  %v4189_v26 = vrot.slane %v4124_v39, 1  ;;  %v11245_v44 = vmul.f32 %v9958_v58, %v11233_v32  ;;  %4093 = vst [vmem:[#allocation3 + $0x80] sm:$0xff] %v11233_v32  ;;  %v12649_v47 = vrot.slane %v11233_v32, 1 }
 0x290   : > { %v3757_v6 = vmul.f32 0.6931472, %v9077_v14  ;;  %v11249_v37 = vpop.f32.mrb[137].mxu0  ;;  %v9081_v24 = vpop.eup %9080  ;;  %4057 = vst [vmem:[#allocation3 + $0x30] sm:$0xfe] %v3961_v7  ;;  %v4186_v50 = vrot.slane %v4122_v12, 1  ;;  %v3898_v46 = vmul.f32 %v9912_v34, %v3865_v48 }
 0x291   : > { %4091 = vst [vmem:[#allocation3 + $0x50] sm:$0xff] %v3865_v48  ;;  %v4187_v25 = vrot.slane %v3865_v48, 1  ;;  %v3753_v15 = vmul.f32 0.6931472, %v9079_v57  ;;  %v11252_v39 = vpop.f32.mrb[138].mxu0  ;;  %v9083_v1 = vpop.eup %9082  ;;  %v3966_v58 = vrot.slane %v11245_v44, 7  ;;  %v4192_v43 = vsel %vm1336_vm6, %v4189_v26, %v12649_v47 }
 0x292   : > { %12742 = vst [vmem:[#allocation60_spill] sm:$0xff] %v11252_v39  ;;  %v12743_v14 = vmax.f32 %v11082_v60, 0.0  ;;  %v3759_v54 = vmul.f32 0.6931472, %v9081_v24  ;;  %v11260_v42 = vpop.f32.mrb[139].mxu0  ;;  %v9085_v12 = vpop.eup %9084  ;;  %4285 = vst [vmem:[#allocation3 + $0x70] sm:$0xff] %v4192_v43 }
 0x293   : > { %4282 = vst [vmem:[#allocation3 + $0x28] sm:$0x80] %v4186_v50  ;;  %v3962_v34 = vrot.slane %v3898_v46, 7  ;;  %v4188_v48 = vsel %vm1336_vm6, %v4186_v50, %v4187_v25  ;;  %v4190_v57 = vsel %vm1336_vm6, %v4187_v25, %v4189_v26  ;;  %v12744_v44 = vmax.f32 %v11089_v49, 0.0  ;;  %v11272_v46 = vpop.f32.mrb[28].mxu1 }
 0x294   : > { %v3810_v17 = vadd.f32 %v3757_v6, %v12743_v14  ;;  %v9087_v16 = vpop.eup %9086  ;;  %v3967_v47 = vsel %vm1110_vm8, %v3964_v8, %v3966_v58  ;;  %4283 = vst [vmem:[#allocation3 + $0x40] sm:$0xff] %v4188_v48  ;;  %4284 = vst [vmem:[#allocation3 + $0x58] sm:$0xff] %v4190_v57  ;;  %v11268_v6 = vmul.f32 %v9085_v12, %v11059_v61  ;;  %v12745_v24 = vmax.f32 %v11094_v33, 0.0  ;;  %v11277_v14 = vpop.f32.mrb[29].mxu1 }
 0x295   : > { %v3808_v39 = vadd.f32 %v3753_v15, %v12744_v44  ;;  %12746 = vst [vmem:[#allocation61_spill] sm:$0xff] %v11272_v46  ;;  %v9089_v50 = vpop.eup %9088  ;;  %4060 = vst [vmem:[#allocation3 + $0x78] sm:$0xff] %v3967_v47  ;;  %v3963_v26 = vsel %vm1110_vm8, %v3961_v7, %v3962_v34  ;;  %v3965_v25 = vsel %vm1110_vm8, %v3962_v34, %v3964_v8  ;;  %v11286_v8 = vpop.f32.mrb[30].mxu1  ;;  %v12750_v7 = vld [vmem:[#allocation20_spill] sm:$0xff]  ;;  %v3719_v34 = vadd.f32 1.0, %v9083_v1 }
 0x296   : > { %9098 = vtanh.f32 %v3810_v17  ;;  %v3811_v43 = vadd.f32 %v3759_v54, %v12745_v24  ;;  %v3868_v15 = vmul.f32 %v9087_v16, %v11065_v2  ;;  %12747 = vst [vmem:[#allocation62_spill] sm:$0xff] %v11277_v14  ;;  %v9091_v48 = vpop.eup %9090  ;;  %4058 = vst [vmem:[#allocation3 + $0x48] sm:$0xff] %v3963_v26  ;;  %v3972_v61 = vrot.slane %v11268_v6, 7  ;;  %v12748_v17 = vld [vmem:[#allocation21_spill] sm:$0xff]  ;;  %v11290_v57 = vpop.f32.mrb[31].mxu1 }
 0x297   : > { %9100 = vtanh.f32 %v3808_v39  ;;  %4059 = vst [vmem:[#allocation3 + $0x60] sm:$0xff] %v3965_v25  ;;  %4096 = vst [vmem:[#allocation3 + $0xc8] sm:$0xff] %v11268_v6  ;;  %v4128_v54 = vmul.f32 %v12748_v17, %v11268_v6  ;;  %v11284_v47 = vmul.f32 %v9089_v50, %v11069_v51  ;;  %v9093_v2 = vpop.eup %9092  ;;  %v3869_v12 = vmul.f32 %v9091_v48, %v11073_v18  ;;  %v11292_v44 = vpop.f32.mrb[140].mxu0  ;;  %v12752_v51 = vld [vmem:[#allocation28_spill] sm:$0xff]  ;;  %v12753_v48 = vld [vmem:[#allocation25_spill] sm:$0xff] }
 0x298   : > { %9102 = vtanh.f32 %v3811_v43  ;;  %12749 = vst [vmem:[#allocation21_spill] sm:$0xff] %v11286_v8  ;;  %v3968_v16 = vrot.slane %v3868_v15, 7  ;;  %4094 = vst [vmem:[#allocation3 + $0x98] sm:$0xff] %v3868_v15  ;;  %v4126_v39 = vmul.f32 %v12750_v7, %v3868_v15  ;;  %v9095_v24 = vpop.eup %9094  ;;  %v3755_v26 = vmul.f32 0.6931472, %v9093_v2  ;;  %v11300_v25 = vpop.f32.mrb[141].mxu0 }
 0x299   : > { %12751 = vst [vmem:[#allocation20_spill] sm:$0xff] %v11290_v57  ;;  %v4197_v6 = vrot.slane %v4128_v54, 1  ;;  %v11296_v50 = vmul.f32 %v12752_v51, %v11284_v47  ;;  %4097 = vst [vmem:[#allocation3 + $0xe0] sm:$0xff] %v11284_v47  ;;  %v4199_v43 = vrot.slane %v11284_v47, 1  ;;  %v9097_v15 = vpop.eup %9096  ;;  %v3902_v17 = vmul.f32 %v12753_v48, %v3869_v12  ;;  %v11304_v54 = vpop.f32.mrb[142].mxu0 }
 0x29a   : > { %v3969_v18 = vsel %vm1110_vm8, %v3966_v58, %v3968_v16  ;;  %v4193_v1 = vrot.slane %v4126_v39, 1  ;;  %4095 = vst [vmem:[#allocation3 + $0xb0] sm:$0xff] %v3869_v12  ;;  %v4195_v7 = vrot.slane %v3869_v12, 1  ;;  %v12754_v2 = vmax.f32 %v11101_v5, 0.0  ;;  %v11312_v14 = vpop.f32.mrb[143].mxu0 }
 0x29b   : > { %4061 = vst [vmem:[#allocation3 + $0x90] sm:$0xff] %v3969_v18  ;;  %v3974_v51 = vrot.slane %v11296_v50, 7  ;;  %v4200_v8 = vsel %vm1336_vm6, %v4197_v6, %v4199_v43  ;;  %v3765_v57 = vmul.f32 0.6931472, %v9095_v24  ;;  %v12755_v58 = vrot.slane %v11233_v32, 1 }
 0x29c   : > { %v3809_v46 = vadd.f32 %v3755_v26, %v12754_v2  ;;  %4289 = vst [vmem:[#allocation3 + $0xd0] sm:$0xff] %v4200_v8  ;;  %v3970_v12 = vrot.slane %v3902_v17, 7  ;;  %v4196_v18 = vsel %vm1336_vm6, %v4193_v1, %v4195_v7  ;;  %v4198_v50 = vsel %vm1336_vm6, %v4195_v7, %v4197_v6 }
 0x29d   : > { %v4194_v39 = vsel %vm1336_vm6, %v12755_v58, %v4193_v1  ;;  %v3975_v48 = vsel %vm1110_vm8, %v3972_v61, %v3974_v51  ;;  %4287 = vst [vmem:[#allocation3 + $0xa0] sm:$0xff] %v4196_v18  ;;  %4288 = vst [vmem:[#allocation3 + $0xb8] sm:$0xff] %v4198_v50  ;;  %v12756_v24 = vmax.f32 %v11106_v52, 0.0  ;;  %v3761_v2 = vmul.f32 0.6931472, %v9097_v15 }
 0x29e   : > { %4286 = vst [vmem:[#allocation3 + $0x88] sm:$0xff] %v4194_v39  ;;  %9104 = vtanh.f32 %v3809_v46  ;;  %4064 = vst [vmem:[#allocation3 + $0xd8] sm:$0xff] %v3975_v48  ;;  %v3971_v32 = vsel %vm1110_vm8, %v3968_v16, %v3970_v12  ;;  %v3973_v8 = vsel %vm1110_vm8, %v3970_v12, %v3972_v61  ;;  %v3678_v1 = vmul.f32 1.442695, %v11223_v29 }
 0x29f   : > { %v3814_v26 = vadd.f32 %v3765_v57, %v12756_v24  ;;  %9106 = vlog2.f32 %v3719_v34  ;;  %4062 = vst [vmem:[#allocation3 + $0xa8] sm:$0xff] %v3971_v32  ;;  %4063 = vst [vmem:[#allocation3 + $0xc0] sm:$0xff] %v3973_v8  ;;  %v12757_v6 = vmax.f32 %v11109_v41, 0.0  ;;  %v12758_v46 = vand.u32 2147483647, %v11206_v3  ;;  %v11341_v34 = vpop.f32.mrb[144].mxu0 }
 0x2a0   : > { %v9099_v17 = vpop.eup %9098  ;;  %v8487_v57 = vadd.f32 %v10922_v11, %v11210_v0  ;;  %v11337_v29 = vadd.f32 %v11218_v23, %v11174_v55  ;;  %v7593_v61 = vadd.f32 %v11156_v36, %v11151_v21  ;;  %v11349_v0 = vpop.f32.mrb[145].mxu0  ;;  %v12759_v55 = vld [vmem:[#allocation23_spill] sm:$0xff]  ;;  %v3559_v36 = vmax.f32 %v11116_v10, 0.0  ;;  %v12760_v23 = vld [vmem:[#allocation22_spill] sm:$0xff] }
 0x2a1   : > { %9108 = vtanh.f32 %v3814_v26  ;;  %v3812_v7 = vadd.f32 %v3761_v2, %v12757_v6  ;;  %v3625_v58 = vsub.f32 0.0, %v12758_v46  ;;  %v9101_v15 = vpop.eup %9100  ;;  %v11332_v16 = vmul.f32 %v9099_v17, %v11082_v60  ;;  %v12761_v24 = vld [vmem:[#allocation34_spill] sm:$0xff] }
 0x2a2   : > { %9110 = vpow2.f32 %v11183_v38  ;;  %v9103_v39 = vpop.eup %9102  ;;  %v11344_v12 = vmul.f32 %v9101_v15, %v11089_v49  ;;  %v11347_v60 = vadd.f32 %v8487_v57, %v11170_v19  ;;  %v11361_v49 = vpop.f32.mrb[146].mxu0  ;;  %v3557_v50 = vmax.f32 %v11129_v30, 0.0 }
 0x2a3   : > { %9112 = vtanh.f32 %v3812_v7  ;;  %v3674_v11 = vmul.f32 1.442695, %v3625_v58  ;;  %4100 = vst [vmem:[#allocation3 + $0x128] sm:$0xff] %v11332_v16  ;;  %v11354_v38 = vmul.f32 %v12759_v55, %v11332_v16  ;;  %v11357_v21 = vmul.f32 %v9103_v39, %v11094_v33  ;;  %v11369_v48 = vpop.f32.mrb[147].mxu0 }
 0x2a4   : > { %9114 = vpow2.f32 %v11195_v45  ;;  %v3976_v19 = vrot.slane %v11344_v12, 7  ;;  %4098 = vst [vmem:[#allocation3 + $0xf8] sm:$0xff] %v11344_v12  ;;  %v4130_v18 = vmul.f32 %v12760_v23, %v11344_v12  ;;  %v3980_v8 = vrot.slane %v11332_v16, 7  ;;  %v12762_v23 = vld [vmem:[#allocation31_spill] sm:$0xff] }
 0x2a5   : > { %9116 = vpow2.f32 %v11215_v4  ;;  %v4205_v33 = vrot.slane %v11354_v38, 1  ;;  %v11374_v45 = vmul.f32 %v12761_v24, %v11357_v21  ;;  %4101 = vst [vmem:[#allocation3 + $0x140] sm:$0xff] %v11357_v21  ;;  %v4207_v26 = vrot.slane %v11357_v21, 1  ;;  %v4322_v21 = vld [vmem:[#allocation3 + $0x38] sm:$0xff] }
 0x2a6   : > { %9118 = vpow2.f32 %v3678_v1  ;;  %v3977_v2 = vsel %vm1110_vm8, %v3974_v51, %v3976_v19  ;;  %v4201_v32 = vrot.slane %v4130_v18, 1  ;;  %v3598_v4 = vand.u32 2147483647, %v11347_v60 }
 0x2a7   : > { %9120 = vpow2.f32 %v3674_v11  ;;  %4065 = vst [vmem:[#allocation3 + $0xf0] sm:$0xff] %v3977_v2  ;;  %v3982_v17 = vrot.slane %v11374_v45, 7  ;;  %v4208_v6 = vsel %vm1336_vm6, %v4205_v33, %v4207_v26  ;;  %v3596_v7 = vand.u32 2147483647, %v11337_v29  ;;  %v8978_v2 = vld [vmem:[#allocation9 + $0x108] sm:$0xff]  }
 0x2a8   : > { %v9105_v1 = vpop.eup %9104  ;;  %v4202_v51 = vsel %vm1336_vm6, %v4199_v43, %v4201_v32  ;;  %4293 = vst [vmem:[#allocation3 + $0x130] sm:$0xff] %v4208_v6  ;;  %v3630_v46 = vsub.f32 0.0, %v3598_v4  ;;  %v8495_v58 = vadd.f32 %v10926_v28, %v7593_v61  ;;  %v8499_v57 = vadd.f32 %v10916_v20, %v11168_v31  ;;  %v8976_v31 = vld [vmem:[#allocation9 + $0x100] sm:$0xff]  }
 0x2a9   : > { %v9107_v15 = vpop.eup %9106  ;;  %4290 = vst [vmem:[#allocation3 + $0xe8] sm:$0xff] %v4202_v51  ;;  %v3983_v16 = vsel %vm1110_vm8, %v3980_v8, %v3982_v17  ;;  %v3873_v39 = vmul.f32 %v9105_v1, %v11101_v5  ;;  %v3628_v11 = vsub.f32 0.0, %v3596_v7  ;;  %v11400_v47 = vadd.f32 %v11191_v9, %v11187_v22  ;;  %v8977_v22 = vld [vmem:[#allocation9 + $0xc0] sm:$0xff]   ;;  %7778 = vmatprep.subr.bf16.mxu0 %v8976_v31 }
 0x2aa   : > { %4068 = vst [vmem:[#allocation3 + $0x138] sm:$0xff] %v3983_v16  ;;  %v3767_v55 = vmul.f32 0.6931472, %v9107_v15  ;;  %v3684_v28 = vmul.f32 1.442695, %v3630_v46  ;;  %v11403_v61 = vadd.f32 %v8495_v58, %v11179_v40  ;;  %v11406_v20 = vadd.f32 %v8499_v57, %v11185_v56  ;;  %7779 = vmatpush3.bf16.msra.mxu0 %v8977_v22  ;;  %v8979_v58 = vld [vmem:[#allocation9 + $0xc8] sm:$0xff]  }
 0x2ab   : > { %v9109_v43 = vpop.eup %9108  ;;  %v3906_v18 = vmul.f32 %v12762_v23, %v3873_v39  ;;  %4099 = vst [vmem:[#allocation3 + $0x110] sm:$0xff] %v3873_v39  ;;  %v4203_v5 = vrot.slane %v3873_v39, 1  ;;  %v3562_v9 = vmax.f32 %v11139_v63, 0.0  ;;  %v3560_v7 = vmax.f32 %v11163_v27, 0.0  ;;  %7780 = vmatprep.subr.bf16.mxu0 %v8978_v2  ;;  %v8980_v22 = vld [vmem:[#allocation9 + $0x110] sm:$0xff]  }
 0x2ac   : > { %v9111_v38 = vpop.eup %9110  ;;  %v11410_v24 = vmul.f32 %v9109_v43, %v11106_v52  ;;  %v3815_v6 = vadd.f32 %v3767_v55, %v3559_v36  ;;  %9122 = vpow2.f32 %v3684_v28  ;;  %v3563_v52 = vmax.f32 %v11177_v53, 0.0 }
 0x2ad   : > { %v9113_v4 = vpop.eup %9112  ;;  %v3717_v40 = vadd.f32 1.0, %v9111_v38  ;;  %v3978_v1 = vrot.slane %v3906_v18, 7  ;;  %v4204_v51 = vsel %vm1336_vm6, %v4201_v32, %v4203_v5  ;;  %v4206_v46 = vsel %vm1336_vm6, %v4203_v5, %v4205_v33  ;;  %v12764_v38 = vld [vmem:[#allocation26_spill] sm:$0xff] }
 0x2ae   : > { %v9115_v56 = vpop.eup %9114  ;;  %4104 = vst [vmem:[#allocation3 + $0x188] sm:$0xff] %v11410_v24  ;;  %4291 = vst [vmem:[#allocation3 + $0x100] sm:$0xff] %v4204_v51  ;;  %v11419_v36 = vmul.f32 %v9113_v4, %v11109_v41  ;;  %9124 = vtanh.f32 %v3815_v6  ;;  %v3680_v16 = vmul.f32 1.442695, %v3628_v11  ;;  %v12763_v41 = vld [vmem:[#allocation24_spill] sm:$0xff]  ;;  %v3561_v12 = vmax.f32 %v11206_v3, 0.0  ;;  %7781 = vmatpush3.bf16.msra.mxu0 %v8979_v58 }
 0x2af   : > { %v9117_v57 = vpop.eup %9116  ;;  %4292 = vst [vmem:[#allocation3 + $0x118] sm:$0xff] %v4206_v46  ;;  %v3722_v15 = vadd.f32 1.0, %v9115_v56  ;;  %v3979_v33 = vsel %vm1110_vm8, %v3976_v19, %v3978_v1  ;;  %v3981_v32 = vsel %vm1110_vm8, %v3978_v1, %v3980_v8  ;;  %9126 = vlog2.f32 %v3717_v40  ;;  %v4325_v40 = vld [vmem:[#allocation3 + $0x50] sm:$0xff]  ;;  %v8982_v1 = vld [vmem:[#allocation9 + $0x118] sm:$0xff]   ;;  %7782 = vmatprep.subr.bf16.mxu0 %v8980_v22 }
 0x2b0   : > { %v9119_v39 = vpop.eup %9118  ;;  %v3720_v43 = vadd.f32 1.0, %v9117_v57  ;;  %4066 = vst [vmem:[#allocation3 + $0x108] sm:$0xff] %v3979_v33  ;;  %4067 = vst [vmem:[#allocation3 + $0x120] sm:$0xff] %v3981_v32  ;;  %v3984_v28 = vrot.slane %v11419_v36, 7  ;;  %v11429_v11 = vmul.f32 %v12763_v41, %v11419_v36  ;;  %v3599_v8 = vand.u32 2147483647, %v11403_v61 }
 0x2b1   : > { %v9121_v55 = vpop.eup %9120  ;;  %4102 = vst [vmem:[#allocation3 + $0x158] sm:$0xff] %v11419_v36  ;;  %9128 = vlog2.f32 %v3722_v15  ;;  %v3723_v19 = vadd.f32 1.0, %v9119_v39  ;;  %v11435_v23 = vmul.f32 %v12764_v38, %v11410_v24  ;;  %v3597_v4 = vand.u32 2147483647, %v11406_v20  ;;  %v8981_v56 = vld [vmem:[#allocation9 + $0xd0] sm:$0xff]   ;;  %v12771_v22 = vld [vmem:[#allocation50_spill] sm:$0xff] }
 0x2b2   : > { %9130 = vlog2.f32 %v3720_v43  ;;  %v3721_v31 = vadd.f32 1.0, %v9121_v55  ;;  %v3985_v18 = vsel %vm1110_vm8, %v3982_v17, %v3984_v28  ;;  %v4209_v5 = vrot.slane %v11429_v11, 1  ;;  %v12766_v57 = vld [vmem:[#allocation60_spill] sm:$0xff]  ;;  %7783 = vmatpush3.bf16.msra.mxu0 %v8981_v56  ;;  %v12784_v36 = vld [vmem:[#allocation41_spill] sm:$0xff] }
 0x2b3   : > { %9132 = vpow2.f32 %v3680_v16  ;;  %4069 = vst [vmem:[#allocation3 + $0x150] sm:$0xff] %v3985_v18  ;;  %v3631_v2 = vsub.f32 0.0, %v3599_v8  ;;  %v8507_v6 = vadd.f32 %v10932_v35, %v11400_v47  ;;  %v7599_v17 = vadd.f32 %v11202_v59, %v11197_v13  ;;  %v12765_v47 = vld [vmem:[#allocation57_spill] sm:$0xff]  ;;  %v12767_v39 = vld [vmem:[#allocation48_spill] sm:$0xff]  ;;  %7784 = vmatprep.subr.bf16.mxu0 %v8982_v1 }
 0x2b4   : > { %9134 = vlog2.f32 %v3723_v19  ;;  %v4210_v45 = vsel %vm1336_vm6, %v4207_v26, %v4209_v5  ;;  %v7602_v51 = vadd.f32 %v11249_v37, %v11241_v62  ;;  %v3629_v35 = vsub.f32 0.0, %v3597_v4  ;;  %v8983_v26 = vld [vmem:[#allocation9 + $0xd8] sm:$0xff]   ;;  %v4320_v37 = vld [vmem:[#allocation3 + $0x28] sm:$0xff] }
 0x2b5   : > { %9136 = vlog2.f32 %v3721_v31  ;;  %4294 = vst [vmem:[#allocation3 + $0x148] sm:$0xff] %v4210_v45  ;;  %v3686_v46 = vmul.f32 1.442695, %v3631_v2  ;;  %v11456_v58 = vadd.f32 %v8507_v6, %v12765_v47  ;;  %v7605_v15 = vadd.f32 %v11260_v42, %v12766_v57  ;;  %v12768_v13 = vld [vmem:[#allocation49_spill] sm:$0xff]  ;;  %v12769_v31 = vld [vmem:[#allocation59_spill] sm:$0xff]  ;;  %v12770_v38 = vld [vmem:[#allocation56_spill] sm:$0xff] }
 0x2b6   : > { %v9123_v16 = vpop.eup %9122  ;;  %v8515_v33 = vadd.f32 %v12767_v39, %v7599_v17  ;;  %v8503_v59 = vadd.f32 %v12768_v13, %v7602_v51  ;;  %v11462_v32 = vpack.c.bf16 %v4325_v40, %v4322_v21  ;;  %v7608_v62 = vadd.f32 %v11300_v25, %v11292_v44  ;;  %v12772_v4 = vld [vmem:[#allocation51_spill] sm:$0xff]  ;;  %7785 = vmatpush3.bf16.msra.mxu0 %v8983_v26 }
 0x2b7   : > { %v4213_v43 = vrot.slane %v11435_v23, 1  ;;  %v3726_v55 = vadd.f32 1.0, %v9123_v16  ;;  %9138 = vpow2.f32 %v3686_v46  ;;  %v3682_v42 = vmul.f32 1.442695, %v3629_v35  ;;  %v9412_v40 = vld [vmem:[#allocation2 + $0x8] sm:$0xff]  ;;  %v8984_v46 = vld [vmem:[#allocation9 + $0x120] sm:$0xff]  }
 0x2b8   : > { %v9125_v41 = vpop.eup %9124  ;;  %v3600_v19 = vand.u32 2147483647, %v11456_v58  ;;  %v11469_v8 = vadd.f32 %v8515_v33, %v12769_v31  ;;  %v11472_v18 = vadd.f32 %v8503_v59, %v12770_v38  ;;  %v8511_v2 = vadd.f32 %v12771_v22, %v7605_v15  ;;  %4691 = vmatprep.mubr.bf16.mxu0 %v11462_v32  ;;  %v12773_v47 = vld [vmem:[#allocation39_spill] sm:$0xff]  ;;  %7786 = vmatprep.subr.bf16.mxu0 %v8984_v46 }
 0x2b9   : > { %v9127_v44 = vpop.eup %9126  ;;  %v11477_v25 = vmul.f32 %v9125_v41, %v11116_v10  ;;  %9140 = vlog2.f32 %v3726_v55  ;;  %v8523_v6 = vadd.f32 %v12772_v4, %v7608_v62  ;;  %v4413_v56 = vpack.c.bf16 %v4320_v37, %v9412_v40  ;;  %v8985_v26 = vld [vmem:[#allocation9 + $0xe0] sm:$0xff]   ;;  %v8986_v31 = vld [vmem:[#allocation9 + $0x128] sm:$0xff]  }
 0x2ba   : > { %v3763_v45 = vmul.f32 0.6931472, %v9127_v44  ;;  %v3566_v17 = vmax.f32 %v11347_v60, 0.0  ;;  %v3564_v51 = vmax.f32 %v11337_v29, 0.0  ;;  %9142 = vpow2.f32 %v3682_v42  ;;  %7787 = vmatpush3.bf16.msra.mxu0 %v8985_v26  ;;  %v8987_v38 = vld [vmem:[#allocation9 + $0xe8] sm:$0xff]   ;;  %v4323_v26 = vld [vmem:[#allocation3 + $0x40] sm:$0xff] }
 0x2bb   : > { %v9129_v1 = vpop.eup %9128  ;;  %v11484_v57 = vmul.f32 %v12773_v47, %v11477_v25  ;;  %4105 = vst [vmem:[#allocation3 + $0x1a0] sm:$0xff] %v11477_v25  ;;  %v4215_v10 = vrot.slane %v11477_v25, 1  ;;  %v3601_v21 = vand.u32 2147483647, %v11469_v8  ;;  %8241 = vmatprep.mubr.bf16.mxu1 %v4413_v56  ;;  %v3988_v39 = vrot.slane %v11410_v24, 7  ;;  %7788 = vmatprep.subr.bf16.mxu0 %v8986_v31 }
 0x2bc   : > { %v9131_v35 = vpop.eup %9130  ;;  %v3773_v15 = vmul.f32 0.6931472, %v9129_v1  ;;  %v3813_v33 = vadd.f32 %v3763_v45, %v3557_v50  ;;  %v3632_v59 = vsub.f32 0.0, %v3600_v19  ;;  %v3602_v40 = vand.u32 2147483647, %v11472_v18 }
 0x2bd   : > { %v9133_v16 = vpop.eup %9132  ;;  %v3769_v13 = vmul.f32 0.6931472, %v9131_v35  ;;  %v3990_v37 = vrot.slane %v11484_v57, 7  ;;  %v4216_v55 = vsel %vm1336_vm6, %v4213_v43, %v4215_v10  ;;  %v3633_v44 = vsub.f32 0.0, %v3601_v21  ;;  %v12785_v57 = vld [vmem:[#allocation40_spill] sm:$0xff] }
 0x2be   : > { %v9135_v62 = vpop.eup %9134  ;;  %v3818_v42 = vadd.f32 %v3773_v15, %v3562_v9  ;;  %v3724_v41 = vadd.f32 1.0, %v9133_v16  ;;  %4297 = vst [vmem:[#allocation3 + $0x190] sm:$0xff] %v4216_v55  ;;  %9144 = vtanh.f32 %v3813_v33  ;;  %v3688_v1 = vmul.f32 1.442695, %v3632_v59  ;;  %v12775_v15 = vld [vmem:[#allocation62_spill] sm:$0xff]  ;;  %v4324_v33 = vld [vmem:[#allocation3 + $0x48] sm:$0xff]  ;;  %7789 = vmatpush3.bf16.msra.mxu0 %v8987_v38 }
 0x2bf   : > { %v9137_v50 = vpop.eup %9136  ;;  %v3816_v19 = vadd.f32 %v3769_v13, %v3560_v7  ;;  %v3775_v22 = vmul.f32 0.6931472, %v9135_v62  ;;  %v3991_v4 = vsel %vm1110_vm8, %v3988_v39, %v3990_v37  ;;  %v12774_v7 = vld [vmem:[#allocation58_spill] sm:$0xff]  ;;  %v3634_v47 = vsub.f32 0.0, %v3602_v40 }
 0x2c0   : > { %9146 = vtanh.f32 %v3818_v42  ;;  %v3771_v9 = vmul.f32 0.6931472, %v9137_v50  ;;  %4072 = vst [vmem:[#allocation3 + $0x198] sm:$0xff] %v3991_v4  ;;  %v11511_v45 = vadd.f32 %v8511_v2, %v12774_v7  ;;  %v11516_v21 = vadd.f32 %v8523_v6, %v12775_v15  ;;  %v4326_v16 = vld [vmem:[#allocation3 + $0x58] sm:$0xff]  ;;  %v8988_v2 = vld [vmem:[#allocation9 + $0x130] sm:$0xff]   ;;  %v4331_v38 = vld [vmem:[#allocation3 + $0x80] sm:$0xff] }
 0x2c1   : > { %9148 = vtanh.f32 %v3816_v19  ;;  %v3819_v56 = vadd.f32 %v3775_v22, %v3563_v52  ;;  %v9139_v46 = vpop.eup %9138  ;;  %v3690_v52 = vmul.f32 1.442695, %v3633_v44  ;;  %v3567_v55 = vmax.f32 %v11403_v61, 0.0  ;;  %v8969_v22 = vld [vmem:[#allocation9 + $0x148] sm:$0xff]   ;;  %7790 = vmatprep.subr.bf16.mxu0 %v8988_v2  ;;  %v8992_v44 = vld [vmem:[#allocation9 + $0x138] sm:$0xff]   ;;  %v4329_v2 = vld [vmem:[#allocation3 + $0x70] sm:$0xff] }
 0x2c2   : > { %v3817_v35 = vadd.f32 %v3771_v9, %v3561_v12  ;;  %9150 = vlog2.f32 %v3724_v41  ;;  %v3727_v13 = vadd.f32 1.0, %v9139_v46  ;;  %v3603_v59 = vand.u32 2147483647, %v11511_v45  ;;  %v8989_v41 = vld [vmem:[#allocation9 + $0xf0] sm:$0xff]   ;;  %v4332_v7 = vld [vmem:[#allocation3 + $0x88] sm:$0xff]  ;;  %v8993_v46 = vld [vmem:[#allocation9 + $0xf8] sm:$0xff]  }
 0x2c3   : > { %9152 = vtanh.f32 %v3819_v56  ;;  %v9141_v62 = vpop.eup %9140  ;;  %v3692_v12 = vmul.f32 1.442695, %v3634_v47  ;;  %v3604_v42 = vand.u32 2147483647, %v11516_v21  ;;  %v11521_v19 = vpack.c.bf16 %v4326_v16, %v4323_v26  ;;  %v4321_v56 = vld [vmem:[#allocation3 + $0x30] sm:$0xff]  ;;  %7791 = vmatpush3.bf16.msra.mxu0 %v8989_v41  ;;  %v4328_v26 = vld [vmem:[#allocation3 + $0x68] sm:$0xff] }
 0x2c4   : > { %9154 = vtanh.f32 %v3817_v35  ;;  %v9143_v6 = vpop.eup %9142  ;;  %v3781_v31 = vmul.f32 0.6931472, %v9141_v62  ;;  %v3635_v50 = vsub.f32 0.0, %v3603_v59  ;;  %v7611_v40 = vadd.f32 %v11312_v14, %v11304_v54  ;;  %v4335_v16 = vld [vmem:[#allocation3 + $0xa0] sm:$0xff]  ;;  %7792 = vmatprep.subr.bf16.mxu0 %v8992_v44  ;;  %v12776_v14 = vld [vmem:[#allocation52_spill] sm:$0xff] }
 0x2c5   : > { %9156 = vlog2.f32 %v3727_v13  ;;  %v3725_v4 = vadd.f32 1.0, %v9143_v6  ;;  %v3636_v9 = vsub.f32 0.0, %v3604_v42  ;;  %8242 = vmatmul.mubr.bf16.vlgmr.msra.gmra.mrb[76].mxu1 %v11521_v19  ;;  %v11528_v15 = vpack.c.bf16 %v4324_v33, %v4321_v56  ;;  %v12777_v62 = vld [vmem:[#allocation55_spill] sm:$0xff]  ;;  %v8970_v41 = vld [vmem:[#allocation9 + $0x150] sm:$0xff]  }
 0x2c6   : > { %9158 = vpow2.f32 %v3688_v1  ;;  %v3822_v35 = vadd.f32 %v3781_v31, %v3566_v17  ;;  %v3694_v47 = vmul.f32 1.442695, %v3635_v50  ;;  %v4338_v1 = vld [vmem:[#allocation3 + $0xb8] sm:$0xff]  ;;  %v8531_v54 = vadd.f32 %v12776_v14, %v7611_v40  ;;  %8274 = vmatpush3.bf16.msra.mxu1 %v12777_v62  ;;  %v12778_v50 = vld [vmem:[#allocation20_spill] sm:$0xff] }
 0x2c7   : > { %9160 = vpow2.f32 %v3690_v52  ;;  %v3696_v13 = vmul.f32 1.442695, %v3636_v9  ;;  %v11531_v59 = vpack.c.bf16 %v4331_v38, %v4328_v26  ;;  %4692 = vmatmul.mubr.bf16.gmra.mrb[152].mxu0 %v11528_v15  ;;  %v7614_v33 = vadd.f32 %v11349_v0, %v11341_v34  ;;  %8275 = vmatprep.subr.bf16.mxu1 %v8969_v22  ;;  %v12781_v9 = vld [vmem:[#allocation37_spill] sm:$0xff] }
 0x2c8   : > { %9162 = vlog2.f32 %v3725_v4  ;;  %v9145_v17 = vpop.eup %9144  ;;  %v11537_v52 = vpack.c.bf16 %v4332_v7, %v4329_v2  ;;  %v7617_v42 = vadd.f32 %v11369_v48, %v11361_v49  ;;  %v11543_v38 = vadd.f32 %v8531_v54, %v12778_v50  ;;  %7793 = vmatpush3.bf16.msra.mxu0 %v8993_v46  ;;  %v12779_v49 = vld [vmem:[#allocation53_spill] sm:$0xff] }
 0x2c9   : > { %9164 = vtanh.f32 %v3822_v35  ;;  %v3877_v31 = vmul.f32 %v9145_v17, %v11129_v30  ;;  %4699 = vmatprep.mubr.bf16.mxu0 %v11531_v59  ;;  %v11546_v44 = vpack.c.bf16 %v4338_v1, %v4335_v16  ;;  %v11552_v48 = vadd.f32 %v12779_v49, %v7614_v33  ;;  %v12780_v30 = vld [vmem:[#allocation54_spill] sm:$0xff]  ;;  %v12782_v35 = vld [vmem:[#allocation29_spill] sm:$0xff]  ;;  %v12783_v17 = vld [vmem:[#allocation27_spill] sm:$0xff] }
 0x2ca   : > { %v9147_v6 = vpop.eup %9146  ;;  %9166 = vpow2.f32 %v3692_v12  ;;  %8245 = vmatprep.mubr.bf16.mxu1 %v11537_v52  ;;  %v11556_v12 = vadd.f32 %v12780_v30, %v7617_v42  ;;  %8276 = vmatpush3.bf16.msra.mxu1 %v8969_v22  ;;  %v3565_v16 = vmax.f32 %v11406_v20, 0.0  ;;  %v8971_v1 = vld [vmem:[#allocation9 + $0x158] sm:$0xff]  }
 0x2cb   : > { %v9149_v34 = vpop.eup %9148  ;;  %v11549_v0 = vmul.f32 %v9147_v6, %v11139_v63  ;;  %9168 = vpow2.f32 %v3694_v47  ;;  %v3910_v40 = vmul.f32 %v12781_v9, %v3877_v31  ;;  %4103 = vst [vmem:[#allocation3 + $0x170] sm:$0xff] %v3877_v31  ;;  %v4211_v56 = vrot.slane %v3877_v31, 1  ;;  %8277 = vmatprep.subr.bf16.mxu1 %v8970_v41 }
 0x2cc   : > { %v9151_v4 = vpop.eup %9150  ;;  %v11560_v7 = vmul.f32 %v9149_v34, %v11163_v27  ;;  %9170 = vpow2.f32 %v3696_v13 }
 0x2cd   : > { %v9153_v63 = vpop.eup %9152  ;;  %v3996_v46 = vrot.slane %v11549_v0, 7  ;;  %4108 = vst [vmem:[#allocation3 + $0x1e8] sm:$0xff] %v11549_v0  ;;  %v4140_v47 = vmul.f32 %v12782_v35, %v11549_v0  ;;  %v3777_v26 = vmul.f32 0.6931472, %v9151_v4  ;;  %v3986_v54 = vrot.slane %v3910_v40, 7  ;;  %8246 = vmatmul.mubr.bf16.gmra.mrb[80].mxu1 %v11546_v44 }
 0x2ce   : > { %v9155_v14 = vpop.eup %9154  ;;  %v4212_v27 = vsel %vm1336_vm6, %v4209_v5, %v4211_v56  ;;  %v4214_v22 = vsel %vm1336_vm6, %v4211_v56, %v4213_v43  ;;  %v3992_v13 = vrot.slane %v11560_v7, 7  ;;  %4106 = vst [vmem:[#allocation3 + $0x1b8] sm:$0xff] %v11560_v7  ;;  %v4138_v33 = vmul.f32 %v12783_v17, %v11560_v7  ;;  %8278 = vmatpush3.bf16.msra.mxu1 %v8970_v41  ;;  %v4344_v17 = vld [vmem:[#allocation3 + $0xe8] sm:$0xff] }
 0x2cf   : > { %v9157_v2 = vpop.eup %9156  ;;  %4295 = vst [vmem:[#allocation3 + $0x160] sm:$0xff] %v4212_v27  ;;  %4296 = vst [vmem:[#allocation3 + $0x178] sm:$0xff] %v4214_v22  ;;  %v4221_v62 = vrot.slane %v4140_v47, 1  ;;  %v11578_v42 = vmul.f32 %v9153_v63, %v11177_v53  ;;  %v3881_v11 = vmul.f32 %v9155_v14, %v11206_v3  ;;  %v3987_v5 = vsel %vm1110_vm8, %v3984_v28, %v3986_v54  ;;  %v4327_v27 = vld [vmem:[#allocation3 + $0x60] sm:$0xff]  ;;  %v4330_v22 = vld [vmem:[#allocation3 + $0x78] sm:$0xff] }
 0x2d0   : > { %v9159_v23 = vpop.eup %9158  ;;  %v3989_v43 = vsel %vm1110_vm8, %v3986_v54, %v3988_v39  ;;  %v3993_v6 = vsel %vm1110_vm8, %v3990_v37, %v3992_v13  ;;  %v3820_v53 = vadd.f32 %v3777_v26, %v3564_v51  ;;  %4070 = vst [vmem:[#allocation3 + $0x168] sm:$0xff] %v3987_v5  ;;  %v4217_v31 = vrot.slane %v4138_v33, 1  ;;  %8279 = vmatprep.subr.bf16.mxu1 %v8971_v1  ;;  %v8972_v37 = vld [vmem:[#allocation9 + $0x160] sm:$0xff]   ;;  %v4334_v5 = vld [vmem:[#allocation3 + $0x98] sm:$0xff] }
 0x2d1   : > { %v9161_v3 = vpop.eup %9160  ;;  %4071 = vst [vmem:[#allocation3 + $0x180] sm:$0xff] %v3989_v43  ;;  %4073 = vst [vmem:[#allocation3 + $0x1b0] sm:$0xff] %v3993_v6  ;;  %v11595_v28 = vmul.f32 %v12784_v36, %v11578_v42  ;;  %v4223_v24 = vrot.slane %v11578_v42, 1  ;;  %v3914_v39 = vmul.f32 %v12785_v57, %v3881_v11  ;;  %v4219_v41 = vrot.slane %v3881_v11, 1  ;;  %v12786_v43 = vld [vmem:[#allocation61_spill] sm:$0xff]  ;;  %v4347_v36 = vld [vmem:[#allocation3 + $0x100] sm:$0xff] }
 0x2d2   : > { %4109 = vst [vmem:[#allocation3 + $0x200] sm:$0xff] %v11578_v42  ;;  %4107 = vst [vmem:[#allocation3 + $0x1d0] sm:$0xff] %v3881_v11  ;;  %v9163_v51 = vpop.eup %9162  ;;  %9172 = vtanh.f32 %v3820_v53  ;;  %v3783_v50 = vmul.f32 0.6931472, %v9157_v2  ;;  %v3728_v34 = vadd.f32 1.0, %v9159_v23  ;;  %v4218_v49 = vsel %vm1336_vm6, %v4215_v10, %v4217_v31  ;;  %8280 = vmatpush3.bf16.msra.mxu1 %v8971_v1  ;;  %v12787_v53 = vld [vmem:[#allocation21_spill] sm:$0xff] }
 0x2d3   : > { %v9165_v0 = vpop.eup %9164  ;;  %v3998_v30 = vrot.slane %v11595_v28, 7  ;;  %v11607_v4 = vsel %vm1336_vm6, %v4221_v62, %v4223_v24  ;;  %v3994_v9 = vrot.slane %v3914_v39, 7  ;;  %4298 = vst [vmem:[#allocation3 + $0x1a8] sm:$0xff] %v4218_v49  ;;  %v11611_v56 = vsel %vm1336_vm6, %v4217_v31, %v4219_v41  ;;  %8281 = vmatprep.subr.bf16.mxu1 %v8972_v37  ;;  %v4341_v31 = vld [vmem:[#allocation3 + $0xd0] sm:$0xff]  ;;  %v4350_v57 = vld [vmem:[#allocation3 + $0x118] sm:$0xff]  ;;  %v8990_v28 = vld [vmem:[#allocation9 + $0x1c0] sm:$0xff]  }
 0x2d4   : > { %v9167_v40 = vpop.eup %9166  ;;  %4301 = vst [vmem:[#allocation3 + $0x1f0] sm:$0xff] %v11607_v4  ;;  %v11614_v7 = vsel %vm1336_vm6, %v4219_v41, %v4221_v62  ;;  %v11617_v25 = vmul.f32 %v9165_v0, %v11347_v60  ;;  %v3823_v10 = vadd.f32 %v3783_v50, %v3567_v55  ;;  %4299 = vst [vmem:[#allocation3 + $0x1c0] sm:$0xff] %v11611_v56  ;;  %v3779_v14 = vmul.f32 0.6931472, %v9163_v51  ;;  %v8973_v60 = vld [vmem:[#allocation9 + $0x168] sm:$0xff]   ;;  %v4337_v62 = vld [vmem:[#allocation3 + $0xb0] sm:$0xff] }
 0x2d5   : > { %v9169_v63 = vpop.eup %9168  ;;  %v3999_v35 = vsel %vm1110_vm8, %v3996_v46, %v3998_v30  ;;  %v3995_v47 = vsel %vm1110_vm8, %v3992_v13, %v3994_v9  ;;  %v3997_v26 = vsel %vm1110_vm8, %v3994_v9, %v3996_v46  ;;  %4300 = vst [vmem:[#allocation3 + $0x1d8] sm:$0xff] %v11614_v7  ;;  %v3568_v55 = vmax.f32 %v11456_v58, 0.0  ;;  %v8974_v41 = vld [vmem:[#allocation9 + $0x170] sm:$0xff]   ;;  %v4356_v0 = vld [vmem:[#allocation3 + $0x148] sm:$0xff] }
 0x2d6   : > { %v9171_v54 = vpop.eup %9170  ;;  %4076 = vst [vmem:[#allocation3 + $0x1f8] sm:$0xff] %v3999_v35  ;;  %4074 = vst [vmem:[#allocation3 + $0x1c8] sm:$0xff] %v3995_v47  ;;  %9174 = vtanh.f32 %v3823_v10  ;;  %v3729_v1 = vadd.f32 1.0, %v9161_v3  ;;  %v3821_v46 = vadd.f32 %v3779_v14, %v3565_v16  ;;  %v3730_v13 = vadd.f32 1.0, %v9167_v40  ;;  %8282 = vmatpush3.bf16.msra.mxu1 %v8972_v37 }
 0x2d7   : > { %4075 = vst [vmem:[#allocation3 + $0x1e0] sm:$0xff] %v3997_v26  ;;  %4112 = vst [vmem:[#allocation3 + $0x248] sm:$0xff] %v11617_v25  ;;  %9176 = vlog2.f32 %v3728_v34  ;;  %v3731_v2 = vadd.f32 1.0, %v9169_v63  ;;  %v3569_v33 = vmax.f32 %v11469_v8, 0.0  ;;  %v3732_v11 = vadd.f32 1.0, %v9171_v54  ;;  %8283 = vmatprep.subr.bf16.mxu1 %v8973_v60  ;;  %v11660_v63 = vld [vmem:[#allocation9 + $0x178] sm:$0xff]  }
 0x2d8   : > { %9178 = vlog2.f32 %v3729_v1  ;;  %v3605_v23 = vand.u32 2147483647, %v11543_v38  ;;  %v11636_v6 = vadd.f32 %v11552_v48, %v12786_v43  ;;  %v11640_v16 = vadd.f32 %v11556_v12, %v12787_v53  ;;  %v12788_v48 = vld [vmem:[#allocation32_spill] sm:$0xff]  ;;  %v4343_v1 = vld [vmem:[#allocation3 + $0xe0] sm:$0xff]  ;;  %v4362_v43 = vld [vmem:[#allocation3 + $0x178] sm:$0xff] }
 0x2d9   : > { %9180 = vtanh.f32 %v3821_v46  ;;  %v11642_v3 = vpack.c.bf16 %v4330_v22, %v4327_v27  ;;  %v11644_v51 = vpack.c.bf16 %v4337_v62, %v4334_v5  ;;  %v11646_v37 = vpack.c.bf16 %v4344_v17, %v4341_v31  ;;  %v4336_v54 = vld [vmem:[#allocation3 + $0xa8] sm:$0xff]  ;;  %v4353_v27 = vld [vmem:[#allocation3 + $0x130] sm:$0xff] }
 0x2da   : > { %9182 = vlog2.f32 %v3730_v13  ;;  %v3637_v39 = vsub.f32 0.0, %v3605_v23  ;;  %v11650_v50 = vmul.f32 %v12788_v48, %v11617_v25  ;;  %v3570_v12 = vmax.f32 %v11472_v18, 0.0  ;;  %8284 = vmatpush3.bf16.msra.mxu1 %v8973_v60  ;;  %v4333_v13 = vld [vmem:[#allocation3 + $0x90] sm:$0xff]  ;;  %v12789_v60 = vld [vmem:[#allocation30_spill] sm:$0xff]  ;;  %v4368_v53 = vld [vmem:[#allocation3 + $0x1a8] sm:$0xff] }
 0x2db   : > { %9184 = vlog2.f32 %v3731_v2  ;;  %v3606_v34 = vand.u32 2147483647, %v11636_v6  ;;  %4700 = vmatmul.mubr.bf16.gmra.mrb[156].mxu0 %v11642_v3  ;;  %v3607_v40 = vand.u32 2147483647, %v11640_v16  ;;  %8249 = vmatprep.mubr.bf16.mxu1 %v11646_v37  ;;  %v11658_v10 = vpack.c.bf16 %v4350_v57, %v4347_v36  ;;  %v4340_v2 = vld [vmem:[#allocation3 + $0xc8] sm:$0xff] }
 0x2dc   : > { %v9173_v49 = vpop.eup %9172  ;;  %9186 = vlog2.f32 %v3732_v11  ;;  %v3698_v9 = vmul.f32 1.442695, %v3637_v39  ;;  %4707 = vmatprep.mubr.bf16.mxu0 %v11644_v51  ;;  %v3571_v47 = vmax.f32 %v11511_v45, 0.0  ;;  %v3572_v26 = vmax.f32 %v11516_v21, 0.0  ;;  %8285 = vmatprep.subr.bf16.mxu1 %v8974_v41 }
 0x2dd   : > { %v11663_v35 = vmul.f32 %v9173_v49, %v11337_v29  ;;  %v3638_v14 = vsub.f32 0.0, %v3606_v34  ;;  %v4004_v22 = vrot.slane %v11617_v25, 7  ;;  %v3639_v46 = vsub.f32 0.0, %v3607_v40  ;;  %8250 = vmatmul.mubr.bf16.gmra.mrb[84].mxu1 %v11658_v10  ;;  %v4359_v29 = vld [vmem:[#allocation3 + $0x160] sm:$0xff] }
 0x2de   : > { %9188 = vpow2.f32 %v3698_v9  ;;  %v11669_v62 = vpack.c.bf16 %v4356_v0, %v4353_v27  ;;  %v4229_v17 = vrot.slane %v11650_v50, 1  ;;  %v11678_v57 = vpack.c.bf16 %v4336_v54, %v4333_v13  ;;  %v4339_v40 = vld [vmem:[#allocation3 + $0xc0] sm:$0xff]  ;;  %v4365_v54 = vld [vmem:[#allocation3 + $0x190] sm:$0xff]  ;;  %8286 = vmatpush3.bf16.msra.mxu1 %v8974_v41 }
 0x2df   : > { %v4000_v11 = vrot.slane %v11663_v35, 7  ;;  %4110 = vst [vmem:[#allocation3 + $0x218] sm:$0xff] %v11663_v35  ;;  %v11676_v23 = vmul.f32 %v12789_v60, %v11663_v35  ;;  %v3700_v5 = vmul.f32 1.442695, %v3638_v14  ;;  %v3702_v36 = vmul.f32 1.442695, %v3639_v46  ;;  %8287 = vmatprep.subr.bf16.mxu1 %v11660_v63 }
 0x2e0   : > { %v9175_v31 = vpop.eup %9174  ;;  %v11680_v39 = vpack.c.bf16 %v4343_v1, %v4340_v2  ;;  %8253 = vmatprep.mubr.bf16.mxu1 %v11669_v62  ;;  %v4440_v48 = vpack.c.bf16 %v11614_v7, %v11611_v56  ;;  %v4342_v14 = vld [vmem:[#allocation3 + $0xd8] sm:$0xff]  ;;  %v11694_v46 = vpack.c.bf16 %v4362_v43, %v4359_v29  ;;  %v11696_v13 = vpack.c.bf16 %v4368_v53, %v4365_v54  ;;  %v12790_v2 = vld [vmem:[#allocation43_spill] sm:$0xff]  ;;  %v4349_v54 = vld [vmem:[#allocation3 + $0x110] sm:$0xff] }
 0x2e1   : > { %v9177_v34 = vpop.eup %9176  ;;  %v4001_v0 = vsel %vm1110_vm8, %v3998_v30, %v4000_v11  ;;  %v4225_v49 = vrot.slane %v11676_v23, 1  ;;  %v11692_v9 = vmul.f32 %v9175_v31, %v11403_v61  ;;  %9190 = vpow2.f32 %v3700_v5 }
 0x2e2   : > { %v9179_v1 = vpop.eup %9178  ;;  %4077 = vst [vmem:[#allocation3 + $0x210] sm:$0xff] %v4001_v0  ;;  %v3785_v27 = vmul.f32 0.6931472, %v9177_v34  ;;  %9192 = vpow2.f32 %v3702_v36  ;;  %8288 = vmatpush3.bf16.msra.mxu1 %v11660_v63  ;;  %v3573_v7 = vmax.f32 %v11543_v38, 0.0 }
 0x2e3   : > { %v9181_v30 = vpop.eup %9180  ;;  %v11702_v61 = vsel %vm1336_vm6, %v4223_v24, %v4225_v49  ;;  %v11706_v41 = vmul.f32 %v12790_v2, %v11692_v9  ;;  %4113 = vst [vmem:[#allocation3 + $0x260] sm:$0xff] %v11692_v9  ;;  %v4231_v29 = vrot.slane %v11692_v9, 1  ;;  %v3787_v60 = vmul.f32 0.6931472, %v9179_v1  ;;  %4708 = vmatmul.mubr.bf16.gmra.mrb[160].mxu0 %v11678_v57  ;;  %7914 = vmatprep.subr.bf16.mxu1 %v8990_v28 }
 0x2e4   : > { %v9183_v23 = vpop.eup %9182  ;;  %4302 = vst [vmem:[#allocation3 + $0x208] sm:$0xff] %v11702_v61  ;;  %v11713_v5 = vmul.f32 %v9181_v30, %v11406_v20  ;;  %v3824_v42 = vadd.f32 %v3785_v27, %v3568_v55  ;;  %4715 = vmatprep.mubr.bf16.mxu0 %v11680_v39  ;;  %v11718_v24 = vpack.c.bf16 %v4342_v14, %v4339_v40 }
 0x2e5   : > { %v4443_v43 = vpack.c.bf16 %v11702_v61, %v11607_v4  ;;  %v9185_v53 = vpop.eup %9184  ;;  %v4006_v31 = vrot.slane %v11706_v41, 7  ;;  %v11728_v20 = vsel %vm1336_vm6, %v4229_v17, %v4231_v29  ;;  %v3825_v55 = vadd.f32 %v3787_v60, %v3569_v33  ;;  %v12791_v4 = vld [vmem:[#allocation42_spill] sm:$0xff]  ;;  %8254 = vmatmul.mubr.bf16.gmra.mrb[88].mxu1 %v11694_v46 }
 0x2e6   : > { %v3789_v36 = vmul.f32 0.6931472, %v9183_v23  ;;  %v9187_v34 = vpop.eup %9186  ;;  %4305 = vst [vmem:[#allocation3 + $0x250] sm:$0xff] %v11728_v20  ;;  %v3918_v0 = vmul.f32 %v12791_v4, %v11713_v5  ;;  %4111 = vst [vmem:[#allocation3 + $0x230] sm:$0xff] %v11713_v5  ;;  %v4227_v40 = vrot.slane %v11713_v5, 1  ;;  %9194 = vtanh.f32 %v3824_v42  ;;  %8257 = vmatprep.mubr.bf16.mxu1 %v11696_v13  ;;  %v4346_v60 = vld [vmem:[#allocation3 + $0xf8] sm:$0xff] }
 0x2e7   : > { %v3791_v14 = vmul.f32 0.6931472, %v9185_v53  ;;  %v11744_v33 = vsel %vm1110_vm8, %v4004_v22, %v4006_v31  ;;  %9196 = vtanh.f32 %v3825_v55  ;;  %v3793_v1 = vmul.f32 0.6931472, %v9187_v34  ;;  %v4348_v53 = vld [vmem:[#allocation3 + $0x108] sm:$0xff]  ;;  %v4345_v4 = vld [vmem:[#allocation3 + $0xf0] sm:$0xff] }
 0x2e8   : > { %v3826_v63 = vadd.f32 %v3789_v36, %v3570_v12  ;;  %v9189_v27 = vpop.eup %9188  ;;  %4080 = vst [vmem:[#allocation3 + $0x258] sm:$0xff] %v11744_v33  ;;  %v4002_v30 = vrot.slane %v3918_v0, 7  ;;  %v11751_v28 = vsel %vm1336_vm6, %v4225_v49, %v4227_v40  ;;  %v11756_v61 = vsel %vm1336_vm6, %v4227_v40, %v4229_v17  ;;  %v4355_v36 = vld [vmem:[#allocation3 + $0x140] sm:$0xff]  ;;  %v4354_v40 = vld [vmem:[#allocation3 + $0x138] sm:$0xff] }
 0x2e9   : > { %v3827_v2 = vadd.f32 %v3791_v14, %v3571_v47  ;;  %4303 = vst [vmem:[#allocation3 + $0x220] sm:$0xff] %v11751_v28  ;;  %4304 = vst [vmem:[#allocation3 + $0x238] sm:$0xff] %v11756_v61  ;;  %v3828_v12 = vadd.f32 %v3793_v1, %v3572_v26  ;;  %v3733_v23 = vadd.f32 1.0, %v9189_v27  ;;  %v11764_v49 = vpack.c.bf16 %v4349_v54, %v4346_v60  ;;  %v4351_v0 = vld [vmem:[#allocation3 + $0x120] sm:$0xff]  ;;  %v4352_v1 = vld [vmem:[#allocation3 + $0x128] sm:$0xff] }
 0x2ea   : > { %9198 = vtanh.f32 %v3826_v63  ;;  %v11769_v50 = vsel %vm1110_vm8, %v4000_v11, %v4002_v30  ;;  %v11774_v47 = vsel %vm1110_vm8, %v4002_v30, %v4004_v22  ;;  %v4446_v17 = vpack.c.bf16 %v11756_v61, %v11751_v28 }
 0x2eb   : > { %9200 = vtanh.f32 %v3827_v2  ;;  %v9191_v42 = vpop.eup %9190  ;;  %4078 = vst [vmem:[#allocation3 + $0x228] sm:$0xff] %v11769_v50  ;;  %4079 = vst [vmem:[#allocation3 + $0x240] sm:$0xff] %v11774_v47  ;;  %4716 = vmatmul.mubr.bf16.gmra.mrb[164].mxu0 %v11718_v24  ;;  %v4445_v22 = vpack.c.bf16 %v11713_v5, %v11663_v35  ;;  %v11792_v63 = vpack.c.bf16 %v4348_v53, %v4345_v4  ;;  %v3575_v2 = vmax.f32 %v11640_v16, 0.0  ;;  %v8998_v35 = vld [vmem:[#allocation9 + $0x1d8] sm:$0xff]  }
 0x2ec   : > { %9202 = vtanh.f32 %v3828_v12  ;;  %v9193_v26 = vpop.eup %9192  ;;  %v3734_v11 = vadd.f32 1.0, %v9191_v42  ;;  %4723 = vmatprep.mubr.bf16.mxu0 %v11764_v49  ;;  %v11799_v27 = vpack.c.bf16 %v4355_v36, %v4352_v1  ;;  %v12793_v12 = vld [vmem:[#allocation44_spill] sm:$0xff]  ;;  %v12794_v1 = vld [vmem:[#allocation35_spill] sm:$0xff] }
 0x2ed   : > { %9204 = vlog2.f32 %v3733_v23  ;;  %v3735_v25 = vadd.f32 1.0, %v9193_v26  ;;  %8258 = vmatmul.mubr.bf16.gmra.mrb[92].mxu1 %v4440_v48  ;;  %v3574_v48 = vmax.f32 %v11636_v6, 0.0 }
 0x2ee   : > { %9206 = vlog2.f32 %v3734_v11  ;;  %8261 = vmatprep.mubr.bf16.mxu1 %v4443_v43  ;;  %v4361_v43 = vld [vmem:[#allocation3 + $0x170] sm:$0xff]  ;;  %v4358_v11 = vld [vmem:[#allocation3 + $0x158] sm:$0xff] }
 0x2ef   : > { %9208 = vlog2.f32 %v3735_v25 }
 0x2f0   : > { %v9195_v34 = vpop.eup %9194 }
 0x2f1   : > { %v9197_v14 = vpop.eup %9196  ;;  %v11790_v54 = vmul.f32 %v9195_v34, %v11456_v58  ;;  %v12792_v58 = vld [vmem:[#allocation33_spill] sm:$0xff] }
 0x2f2   : > { %v11795_v56 = vmul.f32 %v9197_v14, %v11469_v8  ;;  %v11807_v8 = vpack.c.bf16 %v4354_v40, %v4351_v0  ;;  %v11827_v0 = vpack.c.bf16 %v4361_v43, %v4358_v11 }
 0x2f3   : > { %v4008_v28 = vrot.slane %v11790_v54, 7  ;;  %4114 = vst [vmem:[#allocation3 + $0x278] sm:$0xff] %v11790_v54  ;;  %v4146_v61 = vmul.f32 %v12792_v58, %v11790_v54  ;;  %4724 = vmatmul.mubr.bf16.gmra.mrb[168].mxu0 %v11792_v63 }
 0x2f4   : > { %v9199_v30 = vpop.eup %9198  ;;  %v3922_v23 = vmul.f32 %v12793_v12, %v11795_v56  ;;  %4115 = vst [vmem:[#allocation3 + $0x290] sm:$0xff] %v11795_v56  ;;  %v4235_v42 = vrot.slane %v11795_v56, 1  ;;  %4731 = vmatprep.mubr.bf16.mxu0 %v11799_v27 }
 0x2f5   : > { %v9201_v60 = vpop.eup %9200  ;;  %v11814_v26 = vmul.f32 %v9199_v30, %v11472_v18  ;;  %v11822_v36 = vsel %vm1110_vm8, %v4006_v31, %v4008_v28  ;;  %v4233_v34 = vrot.slane %v4146_v61, 1  ;;  %8262 = vmatmul.mubr.bf16.gmra.mrb[96].mxu1 %v4446_v17  ;;  %v12795_v30 = vld [vmem:[#allocation45_spill] sm:$0xff] }
 0x2f6   : > { %v9203_v53 = vpop.eup %9202  ;;  %v11825_v4 = vmul.f32 %v9201_v60, %v11511_v45  ;;  %4081 = vst [vmem:[#allocation3 + $0x270] sm:$0xff] %v11822_v36  ;;  %v4010_v40 = vrot.slane %v3922_v23, 7 }
 0x2f7   : > { %v9205_v18 = vpop.eup %9204  ;;  %v4012_v14 = vrot.slane %v11814_v26, 7  ;;  %4116 = vst [vmem:[#allocation3 + $0x2a8] sm:$0xff] %v11814_v26  ;;  %v4148_v41 = vmul.f32 %v12794_v1, %v11814_v26  ;;  %v11835_v31 = vmul.f32 %v9203_v53, %v11516_v21  ;;  %v4234_v45 = vsel %vm1336_vm6, %v4231_v29, %v4233_v34  ;;  %v12796_v53 = vld [vmem:[#allocation36_spill] sm:$0xff] }
 0x2f8   : > { %v4236_v43 = vsel %vm1336_vm6, %v4233_v34, %v4235_v42  ;;  %v3924_v58 = vmul.f32 %v12795_v30, %v11825_v4  ;;  %4117 = vst [vmem:[#allocation3 + $0x2c0] sm:$0xff] %v11825_v4  ;;  %v4239_v61 = vrot.slane %v11825_v4, 1  ;;  %v9207_v60 = vpop.eup %9206  ;;  %4306 = vst [vmem:[#allocation3 + $0x268] sm:$0xff] %v4234_v45  ;;  %v11846_v12 = vsel %vm1110_vm8, %v4008_v28, %v4010_v40 }
 0x2f9   : > { %4307 = vst [vmem:[#allocation3 + $0x280] sm:$0xff] %v4236_v43  ;;  %v11849_v21 = vsel %vm1110_vm8, %v4010_v40, %v4012_v14  ;;  %v4237_v17 = vrot.slane %v4148_v41, 1  ;;  %v4016_v29 = vrot.slane %v11835_v31, 7  ;;  %4118 = vst [vmem:[#allocation3 + $0x2d8] sm:$0xff] %v11835_v31  ;;  %v9209_v23 = vpop.eup %9208  ;;  %v11857_v34 = vmul.f32 %v12796_v53, %v11835_v31 }
 0x2fa   : > { %4082 = vst [vmem:[#allocation3 + $0x288] sm:$0xff] %v11846_v12  ;;  %4083 = vst [vmem:[#allocation3 + $0x2a0] sm:$0xff] %v11849_v21  ;;  %v4014_v11 = vrot.slane %v3924_v58, 7  ;;  %v3795_v28 = vmul.f32 0.6931472, %v9205_v18  ;;  %v4449_v25 = vpack.c.bf16 %v4234_v45, %v11728_v20 }
 0x2fb   : > { %v3797_v1 = vmul.f32 0.6931472, %v9207_v60  ;;  %v4238_v40 = vsel %vm1336_vm6, %v4235_v42, %v4237_v17  ;;  %v4240_v41 = vsel %vm1336_vm6, %v4237_v17, %v4239_v61  ;;  %v3799_v30 = vmul.f32 0.6931472, %v9209_v23  ;;  %4732 = vmatmul.mubr.bf16.gmra.mrb[172].mxu0 %v11807_v8  ;;  %v4360_v23 = vld [vmem:[#allocation3 + $0x168] sm:$0xff] }
 0x2fc   : > { %4308 = vst [vmem:[#allocation3 + $0x298] sm:$0xff] %v4238_v40  ;;  %v11863_v55 = vsel %vm1110_vm8, %v4012_v14, %v4014_v11  ;;  %4309 = vst [vmem:[#allocation3 + $0x2b0] sm:$0xff] %v4240_v41  ;;  %v11868_v58 = vsel %vm1110_vm8, %v4014_v11, %v4016_v29  ;;  %v4241_v18 = vrot.slane %v11857_v34, 1  ;;  %v3829_v60 = vadd.f32 %v3795_v28, %v3573_v7  ;;  %v4363_v34 = vld [vmem:[#allocation3 + $0x180] sm:$0xff]  ;;  %v4366_v28 = vld [vmem:[#allocation3 + $0x198] sm:$0xff] }
 0x2fd   : > { %4084 = vst [vmem:[#allocation3 + $0x2b8] sm:$0xff] %v11863_v55  ;;  %4085 = vst [vmem:[#allocation3 + $0x2d0] sm:$0xff] %v11868_v58  ;;  %v3830_v20 = vadd.f32 %v3797_v1, %v3574_v48  ;;  %v3831_v42 = vadd.f32 %v3799_v30, %v3575_v2  ;;  %4739 = vmatprep.mubr.bf16.mxu0 %v11827_v0  ;;  %8265 = vmatprep.mubr.bf16.mxu1 %v4449_v25  ;;  %v4367_v2 = vld [vmem:[#allocation3 + $0x1a0] sm:$0xff]  ;;  %v4357_v25 = vld [vmem:[#allocation3 + $0x150] sm:$0xff] }
 0x2fe   : > { %v4452_v14 = vpack.c.bf16 %v4238_v40, %v4236_v43  ;;  %v4242_v45 = vsel %vm1336_vm6, %v4239_v61, %v4241_v18  ;;  %9210 = vtanh.f32 %v3829_v60  ;;  %v4450_v7 = vpack.c.bf16 %v11846_v12, %v11822_v36  ;;  %v4364_v61 = vld [vmem:[#allocation3 + $0x188] sm:$0xff]  ;;  %v4373_v1 = vld [vmem:[#allocation3 + $0x1d0] sm:$0xff]  ;;  %v4370_v60 = vld [vmem:[#allocation3 + $0x1b8] sm:$0xff] }
 0x2ff   : > { %v4454_v17 = vpack.c.bf16 %v11825_v4, %v11814_v26  ;;  %4310 = vst [vmem:[#allocation3 + $0x2c8] sm:$0xff] %v4242_v45  ;;  %9212 = vtanh.f32 %v3830_v20  ;;  %v11882_v11 = vpack.c.bf16 %v4242_v45, %v4240_v41  ;;  %v11887_v43 = vpack.c.bf16 %v4360_v23, %v4357_v25  ;;  %v12797_v23 = vld [vmem:[#allocation46_spill] sm:$0xff]  ;;  %v5082_v26 = vld [vmem:[#allocation3 + $0x268] sm:$0xff]  ;;  %v5079_v4 = vld [vmem:[#allocation3 + $0x250] sm:$0xff] }
 0x300   : > { %8266 = vmatmul.mubr.bf16.gmra.mrb[100].mxu1 %v4452_v14  ;;  %9214 = vtanh.f32 %v3831_v42  ;;  %v11889_v53 = vpack.c.bf16 %v4367_v2, %v4364_v61  ;;  %v11897_v14 = vpack.c.bf16 %v4366_v28, %v4363_v34  ;;  %v11899_v45 = vpack.c.bf16 %v4373_v1, %v4370_v60  ;;  %v12798_v48 = vld [vmem:[#allocation38_spill] sm:$0xff]  ;;  %v12799_v1 = vld [vmem:[#allocation47_spill] sm:$0xff] }
 0x301   : > { %8269 = vmatprep.mubr.bf16.mxu1 %v11882_v11  ;;  %v11981_v12 = vpack.c.bf16 %v5082_v26, %v5079_v4 }
 0x303   : > { %4740 = vmatmul.mubr.bf16.gmra.mrb[176].mxu0 %v11887_v43  ;;  %v5088_v36 = vld [vmem:[#allocation3 + $0x298] sm:$0xff] }
 0x304   : > { %4747 = vmatprep.mubr.bf16.mxu0 %v11889_v53 }
 0x308   : > { %v9211_v40 = vpop.eup %9210 }
 0x309   : > { %v9213_v41 = vpop.eup %9212  ;;  %v11894_v30 = vmul.f32 %v9211_v40, %v11543_v38 }
 0x30a   : > { %v9215_v20 = vpop.eup %9214  ;;  %v3894_v42 = vmul.f32 %v9213_v41, %v11636_v6 }
 0x30b   : > { %v3926_v2 = vmul.f32 %v12797_v23, %v11894_v30  ;;  %4119 = vst [vmem:[#allocation3 + $0x2f0] sm:$0xff] %v11894_v30  ;;  %v4243_v25 = vrot.slane %v11894_v30, 1  ;;  %v3895_v61 = vmul.f32 %v9215_v20, %v11640_v16  ;;  %v4457_v38 = vpack.c.bf16 %v11894_v30, %v11835_v31  ;;  %4748 = vmatmul.mubr.bf16.gmra.mrb[180].mxu0 %v11897_v14  ;;  %v4372_v23 = vld [vmem:[#allocation3 + $0x1c8] sm:$0xff] }
 0x30c   : > { %v4020_v40 = vrot.slane %v3894_v42, 7  ;;  %4120 = vst [vmem:[#allocation3 + $0x308] sm:$0xff] %v3894_v42  ;;  %v4152_v6 = vmul.f32 %v12798_v48, %v3894_v42  ;;  %4755 = vmatprep.mubr.bf16.mxu0 %v11899_v45 }
 0x30d   : > { %v4018_v34 = vrot.slane %v3926_v2, 7  ;;  %v4244_v28 = vsel %vm1336_vm6, %v4241_v18, %v4243_v25  ;;  %v3928_v41 = vmul.f32 %v12799_v1, %v3895_v61  ;;  %4121 = vst [vmem:[#allocation3 + $0x320] sm:$0xff] %v3895_v61  ;;  %v4247_v60 = vrot.slane %v3895_v61, 1  ;;  %v4379_v61 = vld [vmem:[#allocation3 + $0x200] sm:$0xff] }
 0x30e   : > { %4311 = vst [vmem:[#allocation3 + $0x2e0] sm:$0xff] %v4244_v28  ;;  %v4245_v16 = vrot.slane %v4152_v6, 1 }
 0x30f   : > { %v11916_v20 = vsel %vm1110_vm8, %v4016_v29, %v4018_v34  ;;  %v4021_v48 = vsel %vm1110_vm8, %v4018_v34, %v4020_v40  ;;  %v4022_v42 = vrot.slane %v3928_v41, 7  ;;  %4314 = vst [vmem:[#allocation3 + $0x328] sm:$0x7f] %v4247_v60  ;;  %v4369_v34 = vld [vmem:[#allocation3 + $0x1b0] sm:$0xff] }
 0x310   : > { %4086 = vst [vmem:[#allocation3 + $0x2e8] sm:$0xff] %v11916_v20  ;;  %4087 = vst [vmem:[#allocation3 + $0x300] sm:$0xff] %v4021_v48  ;;  %v4246_v18 = vsel %vm1336_vm6, %v4243_v25, %v4245_v16  ;;  %v11922_v2 = vsel %vm1336_vm6, %v4245_v16, %v4247_v60  ;;  %v4456_v6 = vpack.c.bf16 %v11916_v20, %v11868_v58  ;;  %v4376_v25 = vld [vmem:[#allocation3 + $0x1e8] sm:$0xff]  ;;  %v4378_v60 = vld [vmem:[#allocation3 + $0x1f8] sm:$0xff]  ;;  %vm9615_vm6 = vmmov 0  }
 0x311   : > { %4312 = vst [vmem:[#allocation3 + $0x2f8] sm:$0xff] %v4246_v18  ;;  %v4023_v29 = vsel %vm1110_vm8, %v4020_v40, %v4022_v42  ;;  %4089 = vst [vmem:[#allocation3 + $0x330] sm:$0x1] %v4022_v42  ;;  %v11928_v1 = vpack.c.bf16 %v4246_v18, %v4244_v28  ;;  %v11930_v41 = vpack.c.bf16 %v4372_v23, %v4369_v34  ;;  %v4375_v40 = vld [vmem:[#allocation3 + $0x1e0] sm:$0xff]  ;;  %v8994_v28 = vld [vmem:[#allocation9 + $0x1c8] sm:$0xff]   ;;  %v7658_v23 = vpop.f32.mrb[148].mxu0 }
 0x312   : > { %4313 = vst [vmem:[#allocation3 + $0x310] sm:$0xff] %v11922_v2  ;;  %4088 = vst [vmem:[#allocation3 + $0x318] sm:$0xff] %v4023_v29  ;;  %v11932_v48 = vpack.c.bf16 %v4379_v61, %v4376_v25  ;;  %v8991_v16 = vld [vmem:[#allocation9 + $0x180] sm:$0xff]   ;;  %v11938_v42 = vpack.c.bf16 %v4378_v60, %v4375_v40  ;;  %v8996_v18 = vld [vmem:[#allocation9 + $0x1d0] sm:$0xff]   ;;  %v7659_v61 = vpop.f32.mrb[149].mxu0 }
 0x313   : > { %8270 = vmatmul.mubr.bf16.gmra.mrb[104].mxu1 %v11928_v1  ;;  %4756 = vmatmul.mubr.bf16.gmra.mrb[184].mxu0 %v11930_v41  ;;  %v11946_v29 = vld [vmem:[#allocation3 + $0x210] sm:$0xff]  ;;  %v11948_v34 = vadd.f32 %v7659_v61, %v7658_v23  ;;  %v11950_v25 = vld [vmem:[#allocation3 + $0x248] sm:$0xff]  ;;  %v8999_v40 = vld [vmem:[#allocation9 + $0x198] sm:$0xff]  }
 0x314   : > { %8289 = vmatprep.mubr.bf16.mxu1 %v11521_v19  ;;  %4763 = vmatprep.mubr.bf16.mxu0 %v11932_v48  ;;  %v8995_v19 = vld [vmem:[#allocation9 + $0x188] sm:$0xff]   ;;  %v4448_v5 = vpack.c.bf16 %v11692_v9, %v11950_v25  ;;  %v9004_v23 = vld [vmem:[#allocation9 + $0x1f0] sm:$0xff]   ;;  %v5064_v61 = vld [vmem:[#allocation3 + $0x1d8] sm:$0xff] }
 0x315   : > { %v9003_v9 = vld [vmem:[#allocation9 + $0x1a8] sm:$0xff]   ;;  %v9011_v58 = vld [vmem:[#allocation9 + $0x218] sm:$0xff]   ;;  %v5077_v20 = vld [vmem:[#allocation3 + $0x240] sm:$0xff] }
 0x316   : > { %v11995_v31 = vld [vmem:[#allocation3 + $0x328] sm:$0xff] }
 0x317   : > { %v5102_v26 = vld [vmem:[#allocation3 + $0x308] sm:$0xff] }
 0x31b   : > { %8290 = vmatmul.mubr.bf16.vlgmr.msra.gmra.mrb[76].mxu1 %v11537_v52  ;;  %4764 = vmatmul.mubr.bf16.gmra.mrb[188].mxu0 %v11938_v42  ;;  %v8997_v52 = vld [vmem:[#allocation9 + $0x190] sm:$0xff]  }
 0x31c   : > { %8293 = vmatprep.mubr.bf16.mxu1 %v11546_v44  ;;  %4771 = vmatprep.mubr.bf16.mxu0 %v4445_v22  ;;  %v4444_v44 = vpack.c.bf16 %v11769_v50, %v11946_v29  ;;  %v7661_v22 = vpop.f32.mrb[150].mxu0  ;;  %v9001_v50 = vld [vmem:[#allocation9 + $0x1a0] sm:$0xff]  }
 0x31d   : > { %7915 = vmatpush3.bf16.msra.mxu1 %v8991_v16  ;;  %v7662_v60 = vpop.f32.mrb[151].mxu0  ;;  %v9000_v16 = vld [vmem:[#allocation9 + $0x1e0] sm:$0xff]  }
 0x31e   : > { %7916 = vmatprep.subr.bf16.mxu1 %v8994_v28  ;;  %v11958_v28 = vadd.f32 %v7662_v60, %v7661_v22  ;;  %v5090_v22 = vld [vmem:[#allocation3 + $0x2a8] sm:$0xff] }
 0x321   : > { %7917 = vmatpush3.bf16.msra.mxu1 %v8995_v19  ;;  %v9002_v19 = vld [vmem:[#allocation9 + $0x1e8] sm:$0xff]  }
 0x322   : > { %7918 = vmatprep.subr.bf16.mxu1 %v8996_v18  ;;  %v5061_v18 = vld [vmem:[#allocation3 + $0x1c0] sm:$0xff] }
 0x323   : > { %8294 = vmatmul.mubr.bf16.gmra.mrb[80].mxu1 %v11646_v37  ;;  %4772 = vmatmul.mubr.bf16.gmra.mrb[192].mxu0 %v4444_v44  ;;  %v12800_v37 = vpack.c.bf16 %v11744_v33, %v11774_v47  ;;  %v5133_v44 = vpack.c.bf16 %v5064_v61, %v5061_v18  ;;  %v5070_v33 = vld [vmem:[#allocation3 + $0x208] sm:$0xff]  ;;  %v5076_v47 = vld [vmem:[#allocation3 + $0x238] sm:$0xff] }
 0x324   : > { %8297 = vmatprep.mubr.bf16.mxu1 %v11658_v10  ;;  %4779 = vmatprep.mubr.bf16.mxu0 %v4448_v5  ;;  %v12801_v10 = vpack.c.bf16 %v11795_v56, %v11790_v54  ;;  %v5067_v54 = vld [vmem:[#allocation3 + $0x1f0] sm:$0xff]  ;;  %v5096_v61 = vld [vmem:[#allocation3 + $0x2d8] sm:$0xff] }
 0x325   : > { %7919 = vmatpush3.bf16.msra.mxu1 %v8997_v52  ;;  %v9005_v52 = vld [vmem:[#allocation9 + $0x1b0] sm:$0xff]   ;;  %v5136_v56 = vpack.c.bf16 %v5070_v33, %v5067_v54 }
 0x326   : > { %7920 = vmatprep.subr.bf16.mxu1 %v8998_v35  ;;  %v5073_v35 = vld [vmem:[#allocation3 + $0x220] sm:$0xff] }
 0x327   : > { %v5139_v5 = vpack.c.bf16 %v5076_v47, %v5073_v35  ;;  %v5105_v47 = vld [vmem:[#allocation3 + $0x320] sm:$0xff]  ;;  %v5095_v35 = vld [vmem:[#allocation3 + $0x2d0] sm:$0xff] }
 0x328   : > { %v5153_v4 = vpack.c.bf16 %v5105_v47, %v5102_v26 }
 0x329   : > { %7921 = vmatpush3.bf16.msra.mxu1 %v8999_v40 }
 0x32a   : > { %7922 = vmatprep.subr.bf16.mxu1 %v9000_v16  ;;  %v5092_v16 = vld [vmem:[#allocation3 + $0x2b8] sm:$0xff] }
 0x32b   : > { %8298 = vmatmul.mubr.bf16.gmra.mrb[84].mxu1 %v11669_v62  ;;  %4780 = vmatmul.mubr.bf16.gmra.mrb[196].mxu0 %v12800_v37  ;;  %v9006_v62 = vld [vmem:[#allocation9 + $0x1f8] sm:$0xff]  }
 0x32c   : > { %8301 = vmatprep.mubr.bf16.mxu1 %v11694_v46  ;;  %4787 = vmatprep.mubr.bf16.mxu0 %v12801_v10  ;;  %v9007_v46 = vld [vmem:[#allocation9 + $0x1b8] sm:$0xff]  }
 0x32d   : > { %7923 = vmatpush3.bf16.msra.mxu1 %v9001_v50 }
 0x32e   : > { %7924 = vmatprep.subr.bf16.mxu1 %v9002_v19  ;;  %v5099_v19 = vld [vmem:[#allocation3 + $0x2f0] sm:$0xff] }
 0x331   : > { %7925 = vmatpush3.bf16.msra.mxu1 %v9003_v9  ;;  %v5089_v9 = vld [vmem:[#allocation3 + $0x2a0] sm:$0xff] }
 0x332   : > { %7926 = vmatprep.subr.bf16.mxu1 %v9004_v23  ;;  %v5146_v18 = vpack.c.bf16 %v5092_v16, %v5089_v9 }
 0x333   : > { %8302 = vmatmul.mubr.bf16.gmra.mrb[88].mxu1 %v11696_v13  ;;  %4788 = vmatmul.mubr.bf16.gmra.mrb[200].mxu0 %v4450_v7  ;;  %v12802_v13 = vpack.c.bf16 %v11863_v55, %v11849_v21  ;;  %v5085_v7 = vld [vmem:[#allocation3 + $0x280] sm:$0xff]  ;;  %v5154_v21 = vpack.c.bf16 %v11995_v31, %v11922_v2 }
 0x334   : > { %8305 = vmatprep.mubr.bf16.mxu1 %v5133_v44  ;;  %4795 = vmatprep.mubr.bf16.mxu0 %v4454_v17  ;;  %v11983_v17 = vpack.c.bf16 %v5088_v36, %v5085_v7  ;;  %v9008_v55 = vld [vmem:[#allocation9 + $0x200] sm:$0xff]   ;;  %v5150_v44 = vpack.c.bf16 %v5099_v19, %v5096_v61  ;;  %v5716_v19 = vld [vmem:[#allocation3 + $0xd0] sm:$0xff]  ;;  %v5725_v61 = vld [vmem:[#allocation3 + $0x118] sm:$0xff] }
 0x335   : > { %7927 = vmatpush3.bf16.msra.mxu1 %v9005_v52 }
 0x336   : > { %7928 = vmatprep.subr.bf16.mxu1 %v9006_v62 }
 0x339   : > { %7929 = vmatpush3.bf16.msra.mxu1 %v9007_v46  ;;  %v5098_v46 = vld [vmem:[#allocation3 + $0x2e8] sm:$0xff] }
 0x33a   : > { %8321 = vmatprep.subr.bf16.mxu1 %v9008_v55 }
 0x33b   : > { %8306 = vmatmul.mubr.bf16.gmra.mrb[92].mxu1 %v5136_v56  ;;  %4796 = vmatmul.mubr.bf16.gmra.mrb[204].mxu0 %v12802_v13  ;;  %v5149_v13 = vpack.c.bf16 %v5098_v46, %v5095_v35  ;;  %v5728_v35 = vld [vmem:[#allocation3 + $0x130] sm:$0xff] }
 0x33c   : > { %8309 = vmatprep.mubr.bf16.mxu1 %v5139_v5  ;;  %4803 = vmatprep.mubr.bf16.mxu0 %v4457_v38 }
 0x343   : > { %8310 = vmatmul.mubr.bf16.gmra.mrb[96].mxu1 %v11981_v12  ;;  %4804 = vmatmul.mubr.bf16.gmra.mrb[208].mxu0 %v4456_v6 }
 0x344   : > { %8313 = vmatprep.mubr.bf16.mxu1 %v11983_v17  ;;  %5380 = vmatprep.mubr.bf16.mxu0 %v11462_v32  ;;  %v9009_v32 = vld [vmem:[#allocation9 + $0x208] sm:$0xff]  }
 0x34b   : > { %8314 = vmatmul.mubr.bf16.gmra.mrb[100].mxu1 %v11882_v11  ;;  %5381 = vmatmul.mubr.bf16.vlgmr.msra.gmra.mrb[212].mxu0 %v11528_v15  ;;  %v9010_v15 = vld [vmem:[#allocation9 + $0x210] sm:$0xff]  }
 0x34c   : > { %8317 = vmatprep.mubr.bf16.mxu1 %v11928_v1  ;;  %5388 = vmatprep.mubr.bf16.mxu0 %v11531_v59  ;;  %v5084_v1 = vld [vmem:[#allocation3 + $0x278] sm:$0xff] }
 0x353   : > { %8318 = vmatmul.mubr.bf16.gmra.mrb[104].mxu1 %v5154_v21  ;;  %5389 = vmatmul.mubr.bf16.gmra.mrb[216].mxu0 %v11642_v3 }
 0x354   : > { %6071 = vmatprep.mubr.bf16.mxu1 %v11531_v59  ;;  %5396 = vmatprep.mubr.bf16.mxu0 %v11644_v51  ;;  %v9012_v59 = vld [vmem:[#allocation9 + $0x220] sm:$0xff]  }
 0x35b   : > { %6072 = vmatmul.mubr.bf16.vlgmr.msra.gmra.mrb[108].mxu1 %v11642_v3  ;;  %5397 = vmatmul.mubr.bf16.gmra.mrb[220].mxu0 %v11678_v57  ;;  %v9013_v3 = vld [vmem:[#allocation9 + $0x228] sm:$0xff]  }
 0x35c   : > { %6079 = vmatprep.mubr.bf16.mxu1 %v11644_v51  ;;  %5404 = vmatprep.mubr.bf16.mxu0 %v11680_v39  ;;  %v9014_v51 = vld [vmem:[#allocation9 + $0x230] sm:$0xff]  }
 0x35d   : > { %8322 = vmatpush3.bf16.msra.mxu1 %v9008_v55  ;;  %v5104_v55 = vld [vmem:[#allocation3 + $0x318] sm:$0xff] }
 0x35e   : > { %8323 = vmatprep.subr.bf16.mxu1 %v9009_v32 }
 0x361   : > { %8324 = vmatpush3.bf16.msra.mxu1 %v9009_v32 }
 0x362   : > { %8325 = vmatprep.subr.bf16.mxu1 %v9010_v15 }
 0x363   : > { %6080 = vmatmul.mubr.bf16.gmra.mrb[112].mxu1 %v11678_v57  ;;  %5405 = vmatmul.mubr.bf16.gmra.mrb[224].mxu0 %v11718_v24  ;;  %v9015_v57 = vld [vmem:[#allocation9 + $0x238] sm:$0xff]  }
 0x364   : > { %6087 = vmatprep.mubr.bf16.mxu1 %v11680_v39  ;;  %5412 = vmatprep.mubr.bf16.mxu0 %v11764_v49  ;;  %v5075_v39 = vld [vmem:[#allocation3 + $0x230] sm:$0xff] }
 0x365   : > { %8326 = vmatpush3.bf16.msra.mxu1 %v9010_v15 }
 0x366   : > { %8327 = vmatprep.subr.bf16.mxu1 %v9011_v58 }
 0x369   : > { %8328 = vmatpush3.bf16.msra.mxu1 %v9011_v58  ;;  %v5101_v58 = vld [vmem:[#allocation3 + $0x300] sm:$0xff] }
 0x36a   : > { %8329 = vmatprep.subr.bf16.mxu1 %v9012_v59 }
 0x36b   : > { %6088 = vmatmul.mubr.bf16.gmra.mrb[116].mxu1 %v11718_v24  ;;  %5413 = vmatmul.mubr.bf16.gmra.mrb[228].mxu0 %v11792_v63  ;;  %v5072_v24 = vld [vmem:[#allocation3 + $0x218] sm:$0xff] }
 0x36c   : > { %6095 = vmatprep.mubr.bf16.mxu1 %v11764_v49  ;;  %5420 = vmatprep.mubr.bf16.mxu0 %v11799_v27  ;;  %v5138_v49 = vpack.c.bf16 %v5075_v39, %v5072_v24  ;;  %v9413_v24 = vld [vmem:[#allocation2 + $0x8] sm:$0xff] }
 0x36d   : > { %8330 = vmatpush3.bf16.msra.mxu1 %v9012_v59 }
 0x36e   : > { %8331 = vmatprep.subr.bf16.mxu1 %v9013_v3 }
 0x371   : > { %8332 = vmatpush3.bf16.msra.mxu1 %v9013_v3  ;;  %v5152_v3 = vpack.c.bf16 %v5104_v55, %v5101_v58 }
 0x372   : > { %8333 = vmatprep.subr.bf16.mxu1 %v9014_v51 }
 0x373   : > { %6096 = vmatmul.mubr.bf16.gmra.mrb[120].mxu1 %v11792_v63  ;;  %5421 = vmatmul.mubr.bf16.gmra.mrb[232].mxu0 %v11807_v8  ;;  %v5074_v63 = vld [vmem:[#allocation3 + $0x228] sm:$0xff] }
 0x374   : > { %6103 = vmatprep.mubr.bf16.mxu1 %v11799_v27  ;;  %5428 = vmatprep.mubr.bf16.mxu0 %v11827_v0  ;;  %v5081_v27 = vld [vmem:[#allocation3 + $0x260] sm:$0xff] }
 0x375   : > { %8334 = vmatpush3.bf16.msra.mxu1 %v9014_v51 }
 0x376   : > { %8335 = vmatprep.subr.bf16.mxu1 %v9015_v57 }
 0x379   : > { %8336 = vmatpush3.bf16.msra.mxu1 %v9015_v57 }
 0x37b   : > { %6104 = vmatmul.mubr.bf16.gmra.mrb[124].mxu1 %v11807_v8  ;;  %5429 = vmatmul.mubr.bf16.gmra.mrb[236].mxu0 %v11887_v43  ;;  %v5137_v8 = vpack.c.bf16 %v5074_v63, %v11946_v29  ;;  %v5083_v29 = vld [vmem:[#allocation3 + $0x270] sm:$0xff] }
 0x37c   : > { %6111 = vmatprep.mubr.bf16.mxu1 %v11827_v0  ;;  %5436 = vmatprep.mubr.bf16.mxu0 %v11889_v53  ;;  %v5141_v0 = vpack.c.bf16 %v5081_v27, %v11950_v25 }
 0x383   : > { %6112 = vmatmul.mubr.bf16.gmra.mrb[128].mxu1 %v11887_v43  ;;  %5437 = vmatmul.mubr.bf16.gmra.mrb[240].mxu0 %v11897_v14 }
 0x384   : > { %6119 = vmatprep.mubr.bf16.mxu1 %v11889_v53  ;;  %5444 = vmatprep.mubr.bf16.mxu0 %v11899_v45  ;;  %v5080_v53 = vld [vmem:[#allocation3 + $0x258] sm:$0xff] }
 0x385   : > { %v5140_v6 = vpack.c.bf16 %v5080_v53, %v5077_v20  ;;  %v5707_v53 = vld [vmem:[#allocation3 + $0x88] sm:$0xff] }
 0x38b   : > { %6120 = vmatmul.mubr.bf16.gmra.mrb[132].mxu1 %v11897_v14  ;;  %5445 = vmatmul.mubr.bf16.gmra.mrb[244].mxu0 %v11930_v41 }
 0x38c   : > { %6127 = vmatprep.mubr.bf16.mxu1 %v11899_v45  ;;  %5452 = vmatprep.mubr.bf16.mxu0 %v11932_v48  ;;  %v5087_v45 = vld [vmem:[#allocation3 + $0x290] sm:$0xff] }
 0x393   : > { %6128 = vmatmul.mubr.bf16.gmra.mrb[136].mxu1 %v11930_v41  ;;  %5453 = vmatmul.mubr.bf16.gmra.mrb[248].mxu0 %v11938_v42  ;;  %v5144_v41 = vpack.c.bf16 %v5087_v45, %v5084_v1 }
 0x394   : > { %6135 = vmatprep.mubr.bf16.mxu1 %v11932_v48  ;;  %5460 = vmatprep.mubr.bf16.mxu0 %v5138_v49  ;;  %v5086_v48 = vld [vmem:[#allocation3 + $0x288] sm:$0xff] }
 0x395   : > { %v5143_v25 = vpack.c.bf16 %v5086_v48, %v5083_v29  ;;  %v5713_v29 = vld [vmem:[#allocation3 + $0xb8] sm:$0xff] }
 0x39a   : > { %v7664_v11 = vpop.f32.mrb[152].mxu0 }
 0x39b   : > { %6136 = vmatmul.mubr.bf16.gmra.mrb[140].mxu1 %v11938_v42  ;;  %5461 = vmatmul.mubr.bf16.gmra.mrb[252].mxu0 %v5137_v8  ;;  %v7665_v43 = vpop.f32.mrb[153].mxu0  ;;  %v5093_v42 = vld [vmem:[#allocation3 + $0x2c0] sm:$0xff] }
 0x39c   : > { %6143 = vmatprep.mubr.bf16.mxu1 %v5138_v49  ;;  %5468 = vmatprep.mubr.bf16.mxu0 %v5141_v0  ;;  %v12036_v30 = vadd.f32 %v7665_v43, %v7664_v11  ;;  %v7667_v14 = vpop.f32.mrb[154].mxu0  ;;  %v5147_v40 = vpack.c.bf16 %v5093_v42, %v5090_v22  ;;  %v12052_v49 = vpack.c.bf16 %v9413_v24, %v9413_v24  ;;  %v5792_v11 = vld [vmem:[#allocation3 + $0x330] sm:$0xff]  ;;  %v5710_v42 = vld [vmem:[#allocation3 + $0xa0] sm:$0xff]  ;;  %v5719_v22 = vld [vmem:[#allocation3 + $0xe8] sm:$0xff] }
 0x39d   : > { %v7668_v38 = vpop.f32.mrb[155].mxu0  ;;  %v5843_v20 = vpack.c.bf16 %v9413_v24, %v5792_v11  ;;  %v5806_v9 = vpack.c.bf16 %v5719_v22, %v5716_v19  ;;  %v5749_v11 = vld [vmem:[#allocation3 + $0x1d8] sm:$0xff] }
 0x39e   : > { %v12038_v2 = vadd.f32 %v7668_v38, %v7667_v14 }
 0x3a3   : > { %6144 = vmatmul.mubr.bf16.gmra.mrb[144].mxu1 %v5137_v8  ;;  %5469 = vmatmul.mubr.bf16.gmra.mrb[0].mxu0 %v5140_v6 }
 0x3a4   : > { %6151 = vmatprep.mubr.bf16.mxu1 %v5141_v0  ;;  %5476 = vmatprep.mubr.bf16.mxu0 %v5144_v41 }
 0x3ab   : > { %6152 = vmatmul.mubr.bf16.gmra.mrb[148].mxu1 %v5140_v6  ;;  %5477 = vmatmul.mubr.bf16.gmra.mrb[4].mxu0 %v5143_v25  ;;  %v5704_v6 = vld [vmem:[#allocation3 + $0x70] sm:$0xff] }
 0x3ac   : > { %6159 = vmatprep.mubr.bf16.mxu1 %v5144_v41  ;;  %5484 = vmatprep.mubr.bf16.mxu0 %v5147_v40  ;;  %v5800_v41 = vpack.c.bf16 %v5707_v53, %v5704_v6  ;;  %v5755_v53 = vld [vmem:[#allocation3 + $0x208] sm:$0xff] }
 0x3ae   : > { %v7670_v60 = vpop.f32.mrb[156].mxu0 }
 0x3af   : > { %v7671_v50 = vpop.f32.mrb[157].mxu0 }
 0x3b0   : > { %v12040_v37 = vadd.f32 %v7671_v50, %v7670_v60  ;;  %v7673_v10 = vpop.f32.mrb[158].mxu0  ;;  %v5803_v50 = vpack.c.bf16 %v5713_v29, %v5710_v42 }
 0x3b1   : > { %v7674_v23 = vpop.f32.mrb[159].mxu0 }
 0x3b2   : > { %v12042_v52 = vadd.f32 %v7674_v23, %v7673_v10 }
 0x3b3   : > { %6160 = vmatmul.mubr.bf16.gmra.mrb[152].mxu1 %v5143_v25  ;;  %5485 = vmatmul.mubr.bf16.gmra.mrb[8].mxu0 %v5146_v18 }
 0x3b4   : > { %6167 = vmatprep.mubr.bf16.mxu1 %v5147_v40  ;;  %5492 = vmatprep.mubr.bf16.mxu0 %v5150_v44 }
 0x3b6   : > { %v7676_v62 = vpop.f32.mrb[160].mxu0 }
 0x3b7   : > { %v7677_v33 = vpop.f32.mrb[161].mxu0 }
 0x3b8   : > { %v12044_v54 = vadd.f32 %v7677_v33, %v7676_v62  ;;  %v7679_v56 = vpop.f32.mrb[162].mxu0  ;;  %v5731_v62 = vld [vmem:[#allocation3 + $0x148] sm:$0xff] }
 0x3b9   : > { %v7680_v5 = vpop.f32.mrb[163].mxu0 }
 0x3ba   : > { %v12046_v36 = vadd.f32 %v7680_v5, %v7679_v56 }
 0x3bb   : > { %6168 = vmatmul.mubr.bf16.gmra.mrb[156].mxu1 %v5146_v18  ;;  %5493 = vmatmul.mubr.bf16.gmra.mrb[12].mxu0 %v5149_v13  ;;  %v5722_v18 = vld [vmem:[#allocation3 + $0x100] sm:$0xff] }
 0x3bc   : > { %6175 = vmatprep.mubr.bf16.mxu1 %v5150_v44  ;;  %5500 = vmatprep.mubr.bf16.mxu0 %v5153_v4  ;;  %v5809_v56 = vpack.c.bf16 %v5725_v61, %v5722_v18 }
 0x3be   : > { %v7682_v7 = vpop.f32.mrb[164].mxu0 }
 0x3bf   : > { %v7683_v21 = vpop.f32.mrb[165].mxu0 }
 0x3c0   : > { %v12048_v32 = vadd.f32 %v7683_v21, %v7682_v7  ;;  %v7685_v15 = vpop.f32.mrb[166].mxu0  ;;  %v5737_v7 = vld [vmem:[#allocation3 + $0x178] sm:$0xff]  ;;  %v5743_v21 = vld [vmem:[#allocation3 + $0x1a8] sm:$0xff] }
 0x3c1   : > { %v7686_v59 = vpop.f32.mrb[167].mxu0 }
 0x3c2   : > { %v12050_v51 = vadd.f32 %v7686_v59, %v7685_v15 }
 0x3c3   : > { %6176 = vmatmul.mubr.bf16.gmra.mrb[160].mxu1 %v5149_v13  ;;  %5501 = vmatmul.mubr.bf16.gmra.mrb[16].mxu0 %v5152_v3  ;;  %v5812_v13 = vpack.c.bf16 %v5731_v62, %v5728_v35 }
 0x3c4   : > { %6183 = vmatprep.mubr.bf16.mxu1 %v5153_v4  ;;  %v5734_v4 = vld [vmem:[#allocation3 + $0x160] sm:$0xff] }
 0x3c6   : > { %v7688_v57 = vpop.f32.mrb[168].mxu0 }
 0x3c7   : > { %v7689_v39 = vpop.f32.mrb[169].mxu0 }
 0x3c8   : > { %v12054_v63 = vadd.f32 %v7689_v39, %v7688_v57  ;;  %v7691_v27 = vpop.f32.mrb[170].mxu0  ;;  %v5740_v57 = vld [vmem:[#allocation3 + $0x190] sm:$0xff] }
 0x3c9   : > { %v7692_v8 = vpop.f32.mrb[171].mxu0  ;;  %v5818_v24 = vpack.c.bf16 %v5743_v21, %v5740_v57 }
 0x3ca   : > { %v12056_v0 = vadd.f32 %v7692_v8, %v7691_v27  ;;  %v5746_v8 = vld [vmem:[#allocation3 + $0x1c0] sm:$0xff] }
 0x3cb   : > { %6184 = vmatmul.mubr.bf16.gmra.mrb[164].mxu1 %v5152_v3  ;;  %v5815_v3 = vpack.c.bf16 %v5737_v7, %v5734_v4  ;;  %v5821_v6 = vpack.c.bf16 %v5749_v11, %v5746_v8  ;;  %v5785_v4 = vld [vmem:[#allocation3 + $0x2f8] sm:$0xff] }
 0x3cc   : > { %6191 = vmatprep.mubr.bf16.mxu1 %v12052_v49 }
 0x3ce   : > { %v7694_v43 = vpop.f32.mrb[172].mxu0 }
 0x3cf   : > { %v7695_v14 = vpop.f32.mrb[173].mxu0 }
 0x3d0   : > { %v12059_v45 = vadd.f32 %v7695_v14, %v7694_v43  ;;  %v7697_v38 = vpop.f32.mrb[174].mxu0 }
 0x3d1   : > { %v7698_v1 = vpop.f32.mrb[175].mxu0 }
 0x3d2   : > { %v12061_v48 = vadd.f32 %v7698_v1, %v7697_v38  ;;  %v5752_v1 = vld [vmem:[#allocation3 + $0x1f0] sm:$0xff] }
 0x3d3   : > { %6192 = vmatmul.mubr.bf16.gmra.mrb[168].mxu1 %v5843_v20  ;;  %v5824_v42 = vpack.c.bf16 %v5755_v53, %v5752_v1 }
 0x3d4   : > { %8337 = vmatprep.mubr.bf16.mxu1 %v5800_v41 }
 0x3d6   : > { %v7700_v25 = vpop.f32.mrb[176].mxu0 }
 0x3d7   : > { %v7701_v40 = vpop.f32.mrb[177].mxu0 }
 0x3d8   : > { %v12063_v60 = vadd.f32 %v7701_v40, %v7700_v25  ;;  %v7703_v16 = vpop.f32.mrb[178].mxu0  ;;  %v5761_v25 = vld [vmem:[#allocation3 + $0x238] sm:$0xff] }
 0x3d9   : > { %v7704_v10 = vpop.f32.mrb[179].mxu0 }
 0x3da   : > { %v12065_v23 = vadd.f32 %v7704_v10, %v7703_v16  ;;  %v5758_v16 = vld [vmem:[#allocation3 + $0x220] sm:$0xff] }
 0x3db   : > { %8338 = vmatmul.mubr.bf16.vlgmr.msra.gmra.mrb[76].mxu1 %v5803_v50  ;;  %v5827_v10 = vpack.c.bf16 %v5761_v25, %v5758_v16 }
 0x3dc   : > { %8341 = vmatprep.mubr.bf16.mxu1 %v5806_v9 }
 0x3de   : > { %v7706_v44 = vpop.f32.mrb[180].mxu0 }
 0x3df   : > { %v7707_v46 = vpop.f32.mrb[181].mxu0 }
 0x3e0   : > { %v12067_v33 = vadd.f32 %v7707_v46, %v7706_v44  ;;  %v7709_v47 = vpop.f32.mrb[182].mxu0  ;;  %v5779_v44 = vld [vmem:[#allocation3 + $0x2c8] sm:$0xff] }
 0x3e1   : > { %v7710_v5 = vpop.f32.mrb[183].mxu0 }
 0x3e2   : > { %v12069_v26 = vadd.f32 %v7710_v5, %v7709_v47 }
 0x3e3   : > { %8342 = vmatmul.mubr.bf16.gmra.mrb[80].mxu1 %v5809_v56  ;;  %v5776_v56 = vld [vmem:[#allocation3 + $0x2b0] sm:$0xff] }
 0x3e4   : > { %8345 = vmatprep.mubr.bf16.mxu1 %v5812_v13  ;;  %v5836_v5 = vpack.c.bf16 %v5779_v44, %v5776_v56 }
 0x3e6   : > { %v7712_v55 = vpop.f32.mrb[184].mxu0 }
 0x3e7   : > { %v7713_v15 = vpop.f32.mrb[185].mxu0 }
 0x3e8   : > { %v12071_v58 = vadd.f32 %v7713_v15, %v7712_v55  ;;  %v7715_v59 = vpop.f32.mrb[186].mxu0  ;;  %v5788_v55 = vld [vmem:[#allocation3 + $0x310] sm:$0xff]  ;;  %v5782_v15 = vld [vmem:[#allocation3 + $0x2e0] sm:$0xff] }
 0x3e9   : > { %v7716_v39 = vpop.f32.mrb[187].mxu0 }
 0x3ea   : > { %v12073_v27 = vadd.f32 %v7716_v39, %v7715_v59  ;;  %v5842_v39 = vpack.c.bf16 %v11995_v31, %v5788_v55 }
 0x3eb   : > { %8346 = vmatmul.mubr.bf16.gmra.mrb[84].mxu1 %v5815_v3  ;;  %v5839_v3 = vpack.c.bf16 %v5785_v4, %v5782_v15 }
 0x3ec   : > { %8349 = vmatprep.mubr.bf16.mxu1 %v5818_v24 }
 0x3ee   : > { %v7718_v43 = vpop.f32.mrb[188].mxu0 }
 0x3ef   : > { %v7719_v14 = vpop.f32.mrb[189].mxu0 }
 0x3f0   : > { %v12075_v38 = vadd.f32 %v7719_v14, %v7718_v43  ;;  %v7721_v20 = vpop.f32.mrb[190].mxu0 }
 0x3f1   : > { %v7722_v41 = vpop.f32.mrb[191].mxu0 }
 0x3f2   : > { %v12077_v29 = vadd.f32 %v7722_v41, %v7721_v20 }
 0x3f3   : > { %8350 = vmatmul.mubr.bf16.gmra.mrb[88].mxu1 %v5821_v6 }
 0x3f4   : > { %8353 = vmatprep.mubr.bf16.mxu1 %v5824_v42 }
 0x3f6   : > { %v7724_v22 = vpop.f32.mrb[192].mxu0 }
 0x3f7   : > { %v7725_v40 = vpop.f32.mrb[193].mxu0 }
 0x3f8   : > { %v12079_v50 = vadd.f32 %v7725_v40, %v7724_v22  ;;  %v7727_v19 = vpop.f32.mrb[194].mxu0  ;;  %v12106_v22 = vld [vmem:[%s12605_s4] ss:$0 sm:$0xff] }
 0x3f9   : > { %v7728_v9 = vpop.f32.mrb[195].mxu0  ;;  %v8537_v16 = vadd.f32 %v11948_v34, %v12106_v22  ;;  %v8541_v34 = vadd.f32 %v12038_v2, %v12106_v22  ;;  %v8561_v2 = vadd.f32 %v12042_v52, %v12106_v22 }
 0x3fa   : > { %v12081_v18 = vadd.f32 %v7728_v9, %v7727_v19  ;;  %v8545_v9 = vadd.f32 %v11958_v28, %v12106_v22 }
 0x3fb   : > { %8354 = vmatmul.mubr.bf16.gmra.mrb[92].mxu1 %v5827_v10 }
 0x3fc   : > { %8357 = vmatprep.mubr.bf16.mxu1 %v11981_v12 }
 0x3fe   : > { %v7730_v61 = vpop.f32.mrb[196].mxu0 }
 0x3ff   : > { %v7731_v62 = vpop.f32.mrb[197].mxu0 }
 0x400   : > { %v12084_v46 = vadd.f32 %v7731_v62, %v7730_v61  ;;  %v7733_v47 = vpop.f32.mrb[198].mxu0 }
 0x401   : > { %v7734_v35 = vpop.f32.mrb[199].mxu0 }
 0x402   : > { %v12086_v13 = vadd.f32 %v7734_v35, %v7733_v47  ;;  %v8533_v35 = vadd.f32 %v12036_v30, %v12106_v22 }
 0x403   : > { %8358 = vmatmul.mubr.bf16.gmra.mrb[96].mxu1 %v11983_v17 }
 0x404   : > { %8361 = vmatprep.mubr.bf16.mxu1 %v5836_v5 }
 0x406   : > { %v7736_v7 = vpop.f32.mrb[200].mxu0 }
 0x407   : > { %v7737_v21 = vpop.f32.mrb[201].mxu0 }
 0x408   : > { %v12089_v12 = vadd.f32 %v7737_v21, %v7736_v7  ;;  %v7739_v59 = vpop.f32.mrb[202].mxu0 }
 0x409   : > { %v7740_v57 = vpop.f32.mrb[203].mxu0 }
 0x40a   : > { %v12092_v24 = vadd.f32 %v7740_v57, %v7739_v59 }
 0x40b   : > { %8362 = vmatmul.mubr.bf16.gmra.mrb[100].mxu1 %v5839_v3 }
 0x40c   : > { %8365 = vmatprep.mubr.bf16.mxu1 %v5842_v39 }
 0x40e   : > { %v7742_v8 = vpop.f32.mrb[204].mxu0 }
 0x40f   : > { %v7743_v11 = vpop.f32.mrb[205].mxu0 }
 0x410   : > { %v12094_v17 = vadd.f32 %v7743_v11, %v7742_v8  ;;  %v7745_v43 = vpop.f32.mrb[206].mxu0  ;;  %v8553_v11 = vadd.f32 %v12040_v37, %v12106_v22 }
 0x411   : > { %v7746_v53 = vpop.f32.mrb[207].mxu0 }
 0x412   : > { %v12096_v14 = vadd.f32 %v7746_v53, %v7745_v43 }
 0x413   : > { %8366 = vmatmul.mubr.bf16.gmra.mrb[104].mxu1 %v12052_v49 }
 0x416   : > { %v7748_v20 = vpop.f32.mrb[208].mxu0 }
 0x417   : > { %v7749_v6 = vpop.f32.mrb[209].mxu0 }
 0x418   : > { %v12099_v1 = vadd.f32 %v7749_v6, %v7748_v20  ;;  %v7751_v41 = vpop.f32.mrb[210].mxu0 }
 0x419   : > { %v7752_v31 = vpop.f32.mrb[211].mxu0 }
 0x41a   : > { %v12101_v42 = vadd.f32 %v7752_v31, %v7751_v41 }
 0x41e   : > { %v7794_v25 = vpop.f32.mrb[212].mxu0 }
 0x41f   : > { %v7795_v40 = vpop.f32.mrb[213].mxu0 }
 0x420   : > { %v7796_v19 = vadd.f32 %v7795_v40, %v7794_v25  ;;  %v7797_v49 = vpop.f32.mrb[214].mxu0 }
 0x421   : > { %v7798_v10 = vpop.f32.mrb[215].mxu0 }
 0x422   : > { %v8538_v61 = vadd.f32 %v8537_v16, %v7796_v19  ;;  %v7799_v44 = vadd.f32 %v7798_v10, %v7797_v49 }
 0x424   : > { %v8546_v62 = vadd.f32 %v8545_v9, %v7799_v44 }
 0x426   : > { %v7800_v47 = vpop.f32.mrb[216].mxu0 }
 0x427   : > { %v7801_v56 = vpop.f32.mrb[217].mxu0 }
 0x428   : > { %v7802_v5 = vadd.f32 %v7801_v56, %v7800_v47  ;;  %v7803_v4 = vpop.f32.mrb[218].mxu0  ;;  %v8549_v47 = vadd.f32 %v12044_v54, %v12106_v22 }
 0x429   : > { %v7804_v7 = vpop.f32.mrb[219].mxu0 }
 0x42a   : > { %v8534_v55 = vadd.f32 %v8533_v35, %v7802_v5  ;;  %v7805_v21 = vadd.f32 %v7804_v7, %v7803_v4 }
 0x42c   : > { %v8542_v15 = vadd.f32 %v8541_v34, %v7805_v21 }
 0x42e   : > { %v7930_v59 = vpop.f32.mrb[108].mxu1  ;;  %v7806_v3 = vpop.f32.mrb[220].mxu0 }
 0x42f   : > { %v7931_v28 = vpop.f32.mrb[109].mxu1  ;;  %v7807_v57 = vpop.f32.mrb[221].mxu0 }
 0x430   : > { %v7932_v39 = vadd.f32 %v7931_v28, %v7930_v59  ;;  %v7933_v8 = vpop.f32.mrb[110].mxu1  ;;  %v7808_v43 = vadd.f32 %v7807_v57, %v7806_v3  ;;  %v7809_v30 = vpop.f32.mrb[222].mxu0 }
 0x431   : > { %v7934_v53 = vpop.f32.mrb[111].mxu1  ;;  %v7810_v20 = vpop.f32.mrb[223].mxu0 }
 0x432   : > { %v7935_v6 = vadd.f32 %v7934_v53, %v7933_v8  ;;  %v12118_v41 = vadd.f32 %v8538_v61, %v7932_v39  ;;  %v8554_v31 = vadd.f32 %v8553_v11, %v7808_v43  ;;  %v7811_v25 = vadd.f32 %v7810_v20, %v7809_v30 }
 0x433   : > { %v8569_v11 = vadd.f32 %v12048_v32, %v12106_v22 }
 0x434   : > { %v12122_v40 = vadd.f32 %v8546_v62, %v7935_v6  ;;  %v8562_v16 = vadd.f32 %v8561_v2, %v7811_v25  ;;  %v8557_v62 = vadd.f32 %v12046_v36, %v12106_v22 }
 0x436   : > { %v7936_v19 = vpop.f32.mrb[112].mxu1  ;;  %v7812_v49 = vpop.f32.mrb[224].mxu0 }
 0x437   : > { %v7937_v10 = vpop.f32.mrb[113].mxu1  ;;  %v7813_v9 = vpop.f32.mrb[225].mxu0 }
 0x438   : > { %v7938_v37 = vadd.f32 %v7937_v10, %v7936_v19  ;;  %v7939_v44 = vpop.f32.mrb[114].mxu1  ;;  %v7814_v56 = vadd.f32 %v7813_v9, %v7812_v49  ;;  %v7815_v61 = vpop.f32.mrb[226].mxu0 }
 0x439   : > { %v7940_v35 = vpop.f32.mrb[115].mxu1  ;;  %v7816_v5 = vpop.f32.mrb[227].mxu0 }
 0x43a   : > { %v7941_v4 = vadd.f32 %v7940_v35, %v7939_v44  ;;  %v12126_v52 = vadd.f32 %v8534_v55, %v7938_v37  ;;  %v8550_v7 = vadd.f32 %v8549_v47, %v7814_v56  ;;  %v7817_v34 = vadd.f32 %v7816_v5, %v7815_v61 }
 0x43b   : > { %v8565_v47 = vadd.f32 %v12054_v63, %v12106_v22 }
 0x43c   : > { %v12130_v21 = vadd.f32 %v8542_v15, %v7941_v4  ;;  %v8558_v59 = vadd.f32 %v8557_v62, %v7817_v34  ;;  %v8577_v15 = vadd.f32 %v12050_v51, %v12106_v22 }
 0x43e   : > { %v7942_v3 = vpop.f32.mrb[116].mxu1  ;;  %v7818_v28 = vpop.f32.mrb[228].mxu0 }
 0x43f   : > { %v7943_v57 = vpop.f32.mrb[117].mxu1  ;;  %v7819_v39 = vpop.f32.mrb[229].mxu0 }
 0x440   : > { %v7944_v54 = vadd.f32 %v7943_v57, %v7942_v3  ;;  %v7945_v8 = vpop.f32.mrb[118].mxu1  ;;  %v7820_v43 = vadd.f32 %v7819_v39, %v7818_v28  ;;  %v7821_v55 = vpop.f32.mrb[230].mxu0 }
 0x441   : > { %v7946_v30 = vpop.f32.mrb[119].mxu1  ;;  %v7822_v53 = vpop.f32.mrb[231].mxu0 }
 0x442   : > { %v7947_v20 = vadd.f32 %v7946_v30, %v7945_v8  ;;  %v12134_v36 = vadd.f32 %v8554_v31, %v7944_v54  ;;  %v8570_v6 = vadd.f32 %v8569_v11, %v7820_v43  ;;  %v7823_v2 = vadd.f32 %v7822_v53, %v7821_v55 }
 0x443   : > { %v8585_v11 = vadd.f32 %v12059_v45, %v12106_v22 }
 0x444   : > { %v12138_v25 = vadd.f32 %v8562_v16, %v7947_v20  ;;  %v8578_v19 = vadd.f32 %v8577_v15, %v7823_v2  ;;  %v8573_v16 = vadd.f32 %v12056_v0, %v12106_v22 }
 0x446   : > { %v7948_v49 = vpop.f32.mrb[120].mxu1  ;;  %v7824_v10 = vpop.f32.mrb[232].mxu0 }
 0x447   : > { %v7949_v9 = vpop.f32.mrb[121].mxu1  ;;  %v7825_v37 = vpop.f32.mrb[233].mxu0 }
 0x448   : > { %v7950_v32 = vadd.f32 %v7949_v9, %v7948_v49  ;;  %v7951_v44 = vpop.f32.mrb[122].mxu1  ;;  %v7826_v56 = vadd.f32 %v7825_v37, %v7824_v10  ;;  %v7827_v31 = vpop.f32.mrb[234].mxu0 }
 0x449   : > { %v7952_v61 = vpop.f32.mrb[123].mxu1  ;;  %v7828_v35 = vpop.f32.mrb[235].mxu0 }
 0x44a   : > { %v7953_v5 = vadd.f32 %v7952_v61, %v7951_v44  ;;  %v12142_v51 = vadd.f32 %v8550_v7, %v7950_v32  ;;  %v8566_v4 = vadd.f32 %v8565_v47, %v7826_v56  ;;  %v7829_v62 = vadd.f32 %v7828_v35, %v7827_v31 }
 0x44b   : > { %v8581_v47 = vadd.f32 %v12063_v60, %v12106_v22 }
 0x44c   : > { %v12146_v34 = vadd.f32 %v8558_v59, %v7953_v5  ;;  %v8574_v3 = vadd.f32 %v8573_v16, %v7829_v62  ;;  %v8593_v59 = vadd.f32 %v12061_v48, %v12106_v22 }
 0x44e   : > { %v7954_v28 = vpop.f32.mrb[124].mxu1  ;;  %v7830_v57 = vpop.f32.mrb[236].mxu0 }
 0x44f   : > { %v7955_v39 = vpop.f32.mrb[125].mxu1  ;;  %v7831_v54 = vpop.f32.mrb[237].mxu0 }
 0x450   : > { %v7956_v63 = vadd.f32 %v7955_v39, %v7954_v28  ;;  %v7957_v8 = vpop.f32.mrb[126].mxu1  ;;  %v7832_v43 = vadd.f32 %v7831_v54, %v7830_v57  ;;  %v7833_v7 = vpop.f32.mrb[238].mxu0 }
 0x451   : > { %v7958_v55 = vpop.f32.mrb[127].mxu1  ;;  %v7834_v30 = vpop.f32.mrb[239].mxu0 }
 0x452   : > { %v7959_v53 = vadd.f32 %v7958_v55, %v7957_v8  ;;  %v12150_v0 = vadd.f32 %v8570_v6, %v7956_v63  ;;  %v8586_v20 = vadd.f32 %v8585_v11, %v7832_v43  ;;  %v7835_v15 = vadd.f32 %v7834_v30, %v7833_v7 }
 0x453   : > { %v8601_v11 = vadd.f32 %v12067_v33, %v12106_v22 }
 0x454   : > { %v12154_v2 = vadd.f32 %v8578_v19, %v7959_v53  ;;  %v8594_v49 = vadd.f32 %v8593_v59, %v7835_v15  ;;  %v8589_v19 = vadd.f32 %v12065_v23, %v12106_v22 }
 0x456   : > { %v7960_v10 = vpop.f32.mrb[128].mxu1  ;;  %v7836_v9 = vpop.f32.mrb[240].mxu0 }
 0x457   : > { %v7961_v37 = vpop.f32.mrb[129].mxu1  ;;  %v7837_v32 = vpop.f32.mrb[241].mxu0 }
 0x458   : > { %v7962_v45 = vadd.f32 %v7961_v37, %v7960_v10  ;;  %v7963_v44 = vpop.f32.mrb[130].mxu1  ;;  %v7838_v56 = vadd.f32 %v7837_v32, %v7836_v9  ;;  %v7839_v6 = vpop.f32.mrb[242].mxu0 }
 0x459   : > { %v7964_v31 = vpop.f32.mrb[131].mxu1  ;;  %v7840_v61 = vpop.f32.mrb[243].mxu0 }
 0x45a   : > { %v7965_v35 = vadd.f32 %v7964_v31, %v7963_v44  ;;  %v12158_v48 = vadd.f32 %v8566_v4, %v7962_v45  ;;  %v8582_v5 = vadd.f32 %v8581_v47, %v7838_v56  ;;  %v7841_v16 = vadd.f32 %v7840_v61, %v7839_v6 }
 0x45b   : > { %v8597_v47 = vadd.f32 %v12071_v58, %v12106_v22 }
 0x45c   : > { %v12162_v62 = vadd.f32 %v8574_v3, %v7965_v35  ;;  %v8590_v28 = vadd.f32 %v8589_v19, %v7841_v16  ;;  %v8609_v3 = vadd.f32 %v12069_v26, %v12106_v22 }
 0x45e   : > { %v7966_v57 = vpop.f32.mrb[132].mxu1  ;;  %v7842_v39 = vpop.f32.mrb[244].mxu0 }
 0x45f   : > { %v7967_v54 = vpop.f32.mrb[133].mxu1  ;;  %v7843_v63 = vpop.f32.mrb[245].mxu0 }
 0x460   : > { %v7968_v60 = vadd.f32 %v7967_v54, %v7966_v57  ;;  %v7969_v8 = vpop.f32.mrb[134].mxu1  ;;  %v7844_v43 = vadd.f32 %v7843_v63, %v7842_v39  ;;  %v7845_v4 = vpop.f32.mrb[246].mxu0 }
 0x461   : > { %v7970_v7 = vpop.f32.mrb[135].mxu1  ;;  %v7846_v55 = vpop.f32.mrb[247].mxu0 }
 0x462   : > { %v7971_v30 = vadd.f32 %v7970_v7, %v7969_v8  ;;  %v12166_v23 = vadd.f32 %v8586_v20, %v7968_v60  ;;  %v8602_v53 = vadd.f32 %v8601_v11, %v7844_v43  ;;  %v7847_v59 = vadd.f32 %v7846_v55, %v7845_v4 }
 0x463   : > { %v8617_v11 = vadd.f32 %v12075_v38, %v12106_v22 }
 0x464   : > { %v12170_v15 = vadd.f32 %v8594_v49, %v7971_v30  ;;  %v8610_v10 = vadd.f32 %v8609_v3, %v7847_v59  ;;  %v8605_v49 = vadd.f32 %v12073_v27, %v12106_v22 }
 0x466   : > { %v7972_v9 = vpop.f32.mrb[136].mxu1  ;;  %v7848_v37 = vpop.f32.mrb[248].mxu0 }
 0x467   : > { %v7973_v32 = vpop.f32.mrb[137].mxu1  ;;  %v7849_v45 = vpop.f32.mrb[249].mxu0 }
 0x468   : > { %v7974_v33 = vadd.f32 %v7973_v32, %v7972_v9  ;;  %v7975_v44 = vpop.f32.mrb[138].mxu1  ;;  %v7850_v56 = vadd.f32 %v7849_v45, %v7848_v37  ;;  %v7851_v20 = vpop.f32.mrb[250].mxu0 }
 0x469   : > { %v7976_v6 = vpop.f32.mrb[139].mxu1  ;;  %v7852_v31 = vpop.f32.mrb[251].mxu0 }
 0x46a   : > { %v7977_v61 = vadd.f32 %v7976_v6, %v7975_v44  ;;  %v12174_v26 = vadd.f32 %v8582_v5, %v7974_v33  ;;  %v8598_v35 = vadd.f32 %v8597_v47, %v7850_v56  ;;  %v7853_v19 = vadd.f32 %v7852_v31, %v7851_v20 }
 0x46b   : > { %v8613_v47 = vadd.f32 %v12079_v50, %v12106_v22 }
 0x46c   : > { %v12178_v16 = vadd.f32 %v8590_v28, %v7977_v61  ;;  %v8606_v57 = vadd.f32 %v8605_v49, %v7853_v19  ;;  %v8625_v28 = vadd.f32 %v12077_v29, %v12106_v22 }
 0x46e   : > { %v7978_v39 = vpop.f32.mrb[140].mxu1  ;;  %v7854_v54 = vpop.f32.mrb[252].mxu0 }
 0x46f   : > { %v7979_v63 = vpop.f32.mrb[141].mxu1  ;;  %v7855_v60 = vpop.f32.mrb[253].mxu0 }
 0x470   : > { %v7980_v58 = vadd.f32 %v7979_v63, %v7978_v39  ;;  %v7981_v8 = vpop.f32.mrb[142].mxu1  ;;  %v7856_v43 = vadd.f32 %v7855_v60, %v7854_v54  ;;  %v7857_v5 = vpop.f32.mrb[254].mxu0 }
 0x471   : > { %v7982_v4 = vpop.f32.mrb[143].mxu1  ;;  %v7858_v7 = vpop.f32.mrb[255].mxu0 }
 0x472   : > { %v7983_v55 = vadd.f32 %v7982_v4, %v7981_v8  ;;  %v12182_v27 = vadd.f32 %v8602_v53, %v7980_v58  ;;  %v8618_v30 = vadd.f32 %v8617_v11, %v7856_v43  ;;  %v7859_v3 = vadd.f32 %v7858_v7, %v7857_v5 }
 0x473   : > { %v8633_v11 = vadd.f32 %v12084_v46, %v12106_v22 }
 0x474   : > { %v12186_v59 = vadd.f32 %v8610_v10, %v7983_v55  ;;  %v8626_v9 = vadd.f32 %v8625_v28, %v7859_v3  ;;  %v8621_v10 = vadd.f32 %v12081_v18, %v12106_v22 }
 0x476   : > { %v7984_v37 = vpop.f32.mrb[144].mxu1  ;;  %v7860_v32 = vpop.f32.mrb[0].mxu0 }
 0x477   : > { %v7985_v45 = vpop.f32.mrb[145].mxu1  ;;  %v7861_v33 = vpop.f32.mrb[1].mxu0 }
 0x478   : > { %v7986_v38 = vadd.f32 %v7985_v45, %v7984_v37  ;;  %v7987_v44 = vpop.f32.mrb[146].mxu1  ;;  %v7862_v56 = vadd.f32 %v7861_v33, %v7860_v32  ;;  %v7863_v53 = vpop.f32.mrb[2].mxu0 }
 0x479   : > { %v7988_v20 = vpop.f32.mrb[147].mxu1  ;;  %v7864_v6 = vpop.f32.mrb[3].mxu0 }
 0x47a   : > { %v7989_v31 = vadd.f32 %v7988_v20, %v7987_v44  ;;  %v12190_v29 = vadd.f32 %v8598_v35, %v7986_v38  ;;  %v8614_v61 = vadd.f32 %v8613_v47, %v7862_v56  ;;  %v7865_v49 = vadd.f32 %v7864_v6, %v7863_v53 }
 0x47b   : > { %v8629_v47 = vadd.f32 %v12089_v12, %v12106_v22 }
 0x47c   : > { %v12194_v19 = vadd.f32 %v8606_v57, %v7989_v31  ;;  %v8622_v39 = vadd.f32 %v8621_v10, %v7865_v49  ;;  %v8641_v57 = vadd.f32 %v12086_v13, %v12106_v22 }
 0x47e   : > { %v7990_v54 = vpop.f32.mrb[148].mxu1  ;;  %v7866_v63 = vpop.f32.mrb[4].mxu0 }
 0x47f   : > { %v7991_v60 = vpop.f32.mrb[149].mxu1  ;;  %v7867_v58 = vpop.f32.mrb[5].mxu0 }
 0x480   : > { %v7992_v50 = vadd.f32 %v7991_v60, %v7990_v54  ;;  %v7993_v8 = vpop.f32.mrb[150].mxu1  ;;  %v7868_v43 = vadd.f32 %v7867_v58, %v7866_v63  ;;  %v7869_v35 = vpop.f32.mrb[6].mxu0 }
 0x481   : > { %v7994_v5 = vpop.f32.mrb[151].mxu1  ;;  %v7870_v4 = vpop.f32.mrb[7].mxu0 }
 0x482   : > { %v7995_v7 = vadd.f32 %v7994_v5, %v7993_v8  ;;  %v12198_v18 = vadd.f32 %v8618_v30, %v7992_v50  ;;  %v8634_v55 = vadd.f32 %v8633_v11, %v7868_v43  ;;  %v7871_v28 = vadd.f32 %v7870_v4, %v7869_v35 }
 0x483   : > { %v8649_v11 = vadd.f32 %v12094_v17, %v12106_v22 }
 0x484   : > { %v12202_v3 = vadd.f32 %v8626_v9, %v7995_v7  ;;  %v8642_v37 = vadd.f32 %v8641_v57, %v7871_v28  ;;  %v8637_v9 = vadd.f32 %v12092_v24, %v12106_v22 }
 0x486   : > { %v7996_v32 = vpop.f32.mrb[152].mxu1  ;;  %v7872_v45 = vpop.f32.mrb[8].mxu0 }
 0x487   : > { %v7997_v33 = vpop.f32.mrb[153].mxu1  ;;  %v7873_v38 = vpop.f32.mrb[9].mxu0 }
 0x488   : > { %v7998_v46 = vadd.f32 %v7997_v33, %v7996_v32  ;;  %v7999_v44 = vpop.f32.mrb[154].mxu1  ;;  %v7874_v56 = vadd.f32 %v7873_v38, %v7872_v45  ;;  %v7875_v30 = vpop.f32.mrb[10].mxu0 }
 0x489   : > { %v8000_v53 = vpop.f32.mrb[155].mxu1  ;;  %v7876_v20 = vpop.f32.mrb[11].mxu0 }
 0x48a   : > { %v8001_v6 = vadd.f32 %v8000_v53, %v7999_v44  ;;  %v12206_v13 = vadd.f32 %v8614_v61, %v7998_v46  ;;  %v8630_v31 = vadd.f32 %v8629_v47, %v7874_v56  ;;  %v7877_v10 = vadd.f32 %v7876_v20, %v7875_v30 }
 0x48b   : > { %v8645_v47 = vadd.f32 %v12099_v1, %v12106_v22 }
 0x48c   : > { %v12210_v49 = vadd.f32 %v8622_v39, %v8001_v6  ;;  %v8638_v54 = vadd.f32 %v8637_v9, %v7877_v10  ;;  %v8657_v39 = vadd.f32 %v12096_v14, %v12106_v22 }
 0x48e   : > { %v8002_v63 = vpop.f32.mrb[156].mxu1  ;;  %v7878_v60 = vpop.f32.mrb[12].mxu0 }
 0x48f   : > { %v8003_v58 = vpop.f32.mrb[157].mxu1  ;;  %v7879_v50 = vpop.f32.mrb[13].mxu0 }
 0x490   : > { %v8004_v12 = vadd.f32 %v8003_v58, %v8002_v63  ;;  %v8005_v8 = vpop.f32.mrb[158].mxu1  ;;  %v7880_v43 = vadd.f32 %v7879_v50, %v7878_v60  ;;  %v7881_v61 = vpop.f32.mrb[14].mxu0 }
 0x491   : > { %v8006_v35 = vpop.f32.mrb[159].mxu1  ;;  %v7882_v5 = vpop.f32.mrb[15].mxu0 }
 0x492   : > { %v8007_v4 = vadd.f32 %v8006_v35, %v8005_v8  ;;  %v12214_v24 = vadd.f32 %v8634_v55, %v8004_v12  ;;  %v8650_v7 = vadd.f32 %v8649_v11, %v7880_v43  ;;  %v7883_v57 = vadd.f32 %v7882_v5, %v7881_v61 }
 0x494   : > { %v12218_v28 = vadd.f32 %v8642_v37, %v8007_v4  ;;  %v8658_v32 = vadd.f32 %v8657_v39, %v7883_v57  ;;  %v8653_v37 = vadd.f32 %v12101_v42, %v12106_v22 }
 0x496   : > { %v8008_v45 = vpop.f32.mrb[160].mxu1  ;;  %v7884_v33 = vpop.f32.mrb[16].mxu0 }
 0x497   : > { %v8009_v38 = vpop.f32.mrb[161].mxu1  ;;  %v7885_v46 = vpop.f32.mrb[17].mxu0 }
 0x498   : > { %v8010_v17 = vadd.f32 %v8009_v38, %v8008_v45  ;;  %v8011_v44 = vpop.f32.mrb[162].mxu1  ;;  %v7886_v56 = vadd.f32 %v7885_v46, %v7884_v33  ;;  %v7887_v55 = vpop.f32.mrb[18].mxu0 }
 0x499   : > { %v8012_v30 = vpop.f32.mrb[163].mxu1  ;;  %v7888_v53 = vpop.f32.mrb[19].mxu0 }
 0x49a   : > { %v8013_v20 = vadd.f32 %v8012_v30, %v8011_v44  ;;  %v12222_v14 = vadd.f32 %v8630_v31, %v8010_v17  ;;  %v8646_v6 = vadd.f32 %v8645_v47, %v7886_v56  ;;  %v7889_v9 = vadd.f32 %v7888_v53, %v7887_v55 }
 0x49c   : > { %v12226_v10 = vadd.f32 %v8638_v54, %v8013_v20  ;;  %v8654_v63 = vadd.f32 %v8653_v37, %v7889_v9 }
 0x49e   : > { %v8014_v60 = vpop.f32.mrb[164].mxu1 }
 0x49f   : > { %v8015_v58 = vpop.f32.mrb[165].mxu1 }
 0x4a0   : > { %v8016_v50 = vadd.f32 %v8015_v58, %v8014_v60  ;;  %v8017_v12 = vpop.f32.mrb[166].mxu1 }
 0x4a1   : > { %v8018_v1 = vpop.f32.mrb[167].mxu1 }
 0x4a2   : > { %v8019_v8 = vadd.f32 %v8018_v1, %v8017_v12  ;;  %v12228_v11 = vadd.f32 %v8650_v7, %v8016_v50 }
 0x4a4   : > { %v12230_v43 = vadd.f32 %v8658_v32, %v8019_v8 }
 0x4a6   : > { %v8020_v31 = vpop.f32.mrb[168].mxu1 }
 0x4a7   : > { %v8021_v61 = vpop.f32.mrb[169].mxu1 }
 0x4a8   : > { %v8022_v35 = vadd.f32 %v8021_v61, %v8020_v31  ;;  %v8023_v5 = vpop.f32.mrb[170].mxu1 }
 0x4a9   : > { %v8024_v42 = vpop.f32.mrb[171].mxu1 }
 0x4aa   : > { %v8025_v22 = vadd.f32 %v8024_v42, %v8023_v5  ;;  %v12232_v4 = vadd.f32 %v8646_v6, %v8022_v35 }
 0x4ac   : > { %v12234_v54 = vadd.f32 %v8654_v63, %v8025_v22 }
 0x4ae   : > { %v8339_v39 = vpop.f32.mrb[76].mxu1 }
 0x4af   : > { %v12237_v57 = vadd.f32 %v12126_v52, %v8339_v39  ;;  %v6234_v45 = vpop.f32.mrb[77].mxu1 }
 0x4b0   : > { %v12240_v7 = vadd.f32 %v12118_v41, %v6234_v45  ;;  %v8340_v32 = vpop.f32.mrb[78].mxu1 }
 0x4b1   : > { %v6427_v33 = vand.u32 2147483647, %v12237_v57  ;;  %v12244_v38 = vadd.f32 %v12130_v21, %v8340_v32  ;;  %v6237_v46 = vpop.f32.mrb[79].mxu1 }
 0x4b2   : > { %v6425_v17 = vand.u32 2147483647, %v12240_v7  ;;  %v12248_v44 = vadd.f32 %v12122_v40, %v6237_v46 }
 0x4b3   : > { %v6459_v47 = vsub.f32 0.0, %v6427_v33  ;;  %v6428_v52 = vand.u32 2147483647, %v12244_v38  ;;  %v12803_v33 = vld [vmem:[#allocation19_spill] sm:$0xff] }
 0x4b4   : > { %v6457_v56 = vsub.f32 0.0, %v6425_v17  ;;  %v6426_v55 = vand.u32 2147483647, %v12248_v44 }
 0x4b5   : > { %v6493_v41 = vmul.f32 1.442695, %v6459_v47  ;;  %v6460_v30 = vsub.f32 0.0, %v6428_v52  ;;  %v12278_v52 = vld [vmem:[%s12606_s5] sm:$0x3] }
 0x4b6   : > { %v6489_v53 = vmul.f32 1.442695, %v6457_v56  ;;  %v6458_v20 = vsub.f32 0.0, %v6426_v55  ;;  %v8343_v37 = vpop.f32.mrb[80].mxu1 }
 0x4b7   : > { %9216 = vpow2.f32 %v6493_v41  ;;  %v6495_v21 = vmul.f32 1.442695, %v6460_v30  ;;  %v12253_v6 = vadd.f32 %v12142_v51, %v8343_v37  ;;  %v6250_v9 = vpop.f32.mrb[81].mxu1 }
 0x4b8   : > { %9218 = vpow2.f32 %v6489_v53  ;;  %v6491_v40 = vmul.f32 1.442695, %v6458_v20  ;;  %v12256_v63 = vadd.f32 %v12134_v36, %v6250_v9  ;;  %v8344_v60 = vpop.f32.mrb[82].mxu1 }
 0x4b9   : > { %9220 = vpow2.f32 %v6495_v21  ;;  %v6431_v58 = vand.u32 2147483647, %v12253_v6  ;;  %v12260_v50 = vadd.f32 %v12146_v34, %v8344_v60  ;;  %v6253_v12 = vpop.f32.mrb[83].mxu1 }
 0x4ba   : > { %9222 = vpow2.f32 %v6491_v40  ;;  %v6429_v1 = vand.u32 2147483647, %v12256_v63  ;;  %v12264_v51 = vadd.f32 %v12138_v25, %v6253_v12  ;;  %v6753_v25 = vsub.s32 1, %v12803_v33 }
 0x4bb   : > { %v6463_v8 = vsub.f32 0.0, %v6431_v58  ;;  %v6432_v31 = vand.u32 2147483647, %v12260_v50 }
 0x4bc   : > { %v6461_v61 = vsub.f32 0.0, %v6429_v1  ;;  %v6430_v36 = vand.u32 2147483647, %v12264_v51  ;;  %v6754_v40 = vrot.slane %v12278_v52, %v6753_v25 }
 0x4bd   : > { %v6501_v35 = vmul.f32 1.442695, %v6463_v8  ;;  %v6464_v5 = vsub.f32 0.0, %v6432_v31 }
 0x4be   : > { %v6497_v42 = vmul.f32 1.442695, %v6461_v61  ;;  %v6462_v22 = vsub.f32 0.0, %v6430_v36  ;;  %v8347_v39 = vpop.f32.mrb[84].mxu1  ;;  %v6758_v25 = vpack.c.bf16 %v6754_v40, %v6754_v40 }
 0x4bf   : > { %9224 = vpow2.f32 %v6501_v35  ;;  %v6503_v34 = vmul.f32 1.442695, %v6464_v5  ;;  %v12269_v45 = vadd.f32 %v12158_v48, %v8347_v39  ;;  %v6266_v32 = vpop.f32.mrb[85].mxu1  ;;  %v6395_v5 = vmax.f32 %v12237_v57, 0.0 }
 0x4c0   : > { %9226 = vpow2.f32 %v6497_v42  ;;  %v6499_v46 = vmul.f32 1.442695, %v6462_v22  ;;  %v12273_v17 = vadd.f32 %v12150_v0, %v6266_v32  ;;  %v8348_v47 = vpop.f32.mrb[86].mxu1  ;;  %6807 = vmatprep.mubr.bf16.mxu0 %v6758_v25 }
 0x4c1   : > { %v9217_v56 = vpop.eup %9216  ;;  %9228 = vpow2.f32 %v6503_v34  ;;  %v6435_v55 = vand.u32 2147483647, %v12269_v45  ;;  %v12282_v48 = vadd.f32 %v12162_v62, %v8348_v47  ;;  %v6269_v41 = vpop.f32.mrb[87].mxu1  ;;  %v6393_v47 = vmax.f32 %v12240_v7, 0.0 }
 0x4c2   : > { %v9219_v30 = vpop.eup %9218  ;;  %v6555_v53 = vadd.f32 1.0, %v9217_v56  ;;  %9230 = vpow2.f32 %v6499_v46  ;;  %v6433_v0 = vand.u32 2147483647, %v12273_v17  ;;  %v12288_v62 = vadd.f32 %v12154_v2, %v6269_v41 }
 0x4c3   : > { %v9221_v20 = vpop.eup %9220  ;;  %v6553_v37 = vadd.f32 1.0, %v9219_v30  ;;  %v6467_v21 = vsub.f32 0.0, %v6435_v55  ;;  %v6436_v9 = vand.u32 2147483647, %v12282_v48  ;;  %v6396_v30 = vmax.f32 %v12244_v38, 0.0 }
 0x4c4   : > { %v9223_v60 = vpop.eup %9222  ;;  %9232 = vlog2.f32 %v6555_v53  ;;  %v6556_v58 = vadd.f32 1.0, %v9221_v20  ;;  %v6465_v12 = vsub.f32 0.0, %v6433_v0  ;;  %v6434_v36 = vand.u32 2147483647, %v12288_v62 }
 0x4c5   : > { %9234 = vlog2.f32 %v6553_v37  ;;  %v6554_v1 = vadd.f32 1.0, %v9223_v60  ;;  %v6509_v8 = vmul.f32 1.442695, %v6467_v21  ;;  %v6468_v31 = vsub.f32 0.0, %v6436_v9 }
 0x4c6   : > { %9236 = vlog2.f32 %v6556_v58  ;;  %v6505_v61 = vmul.f32 1.442695, %v6465_v12  ;;  %v8351_v35 = vpop.f32.mrb[88].mxu1  ;;  %v6466_v2 = vsub.f32 0.0, %v6434_v36  ;;  %v6394_v53 = vmax.f32 %v12248_v44, 0.0 }
 0x4c7   : > { %9238 = vlog2.f32 %v6554_v1  ;;  %v6511_v42 = vmul.f32 1.442695, %v6468_v31  ;;  %v12293_v22 = vadd.f32 %v12174_v26, %v8351_v35  ;;  %v6282_v39 = vpop.f32.mrb[89].mxu1  ;;  %v6399_v20 = vmax.f32 %v12253_v6, 0.0 }
 0x4c8   : > { %9240 = vpow2.f32 %v6509_v8  ;;  %v12296_v34 = vadd.f32 %v12166_v23, %v6282_v39  ;;  %v8352_v32 = vpop.f32.mrb[90].mxu1  ;;  %v6507_v60 = vmul.f32 1.442695, %v6466_v2  ;;  %v6400_v36 = vmax.f32 %v12260_v50, 0.0 }
 0x4c9   : > { %v9225_v46 = vpop.eup %9224  ;;  %9242 = vpow2.f32 %v6505_v61  ;;  %v6439_v56 = vand.u32 2147483647, %v12293_v22  ;;  %v12301_v55 = vadd.f32 %v12178_v16, %v8352_v32  ;;  %v6285_v41 = vpop.f32.mrb[91].mxu1  ;;  %v6397_v61 = vmax.f32 %v12256_v63, 0.0 }
 0x4ca   : > { %v9227_v26 = vpop.eup %9226  ;;  %v6559_v0 = vadd.f32 1.0, %v9225_v46  ;;  %9244 = vpow2.f32 %v6511_v42  ;;  %v6437_v9 = vand.u32 2147483647, %v12296_v34  ;;  %v12308_v58 = vadd.f32 %v12170_v15, %v6285_v41 }
 0x4cb   : > { %v9229_v23 = vpop.eup %9228  ;;  %v6557_v37 = vadd.f32 1.0, %v9227_v26  ;;  %v6471_v21 = vsub.f32 0.0, %v6439_v56  ;;  %v6440_v35 = vand.u32 2147483647, %v12301_v55 }
 0x4cc   : > { %v9231_v40 = vpop.eup %9230  ;;  %9246 = vlog2.f32 %v6559_v0  ;;  %v6560_v16 = vadd.f32 1.0, %v9229_v23  ;;  %v6469_v8 = vsub.f32 0.0, %v6437_v9  ;;  %v6401_v9 = vmax.f32 %v12273_v17, 0.0 }
 0x4cd   : > { %9248 = vlog2.f32 %v6557_v37  ;;  %v6558_v12 = vadd.f32 1.0, %v9231_v40  ;;  %v6517_v1 = vmul.f32 1.442695, %v6471_v21  ;;  %v6438_v26 = vand.u32 2147483647, %v12308_v58 }
 0x4ce   : > { %v9233_v31 = vpop.eup %9232  ;;  %9250 = vlog2.f32 %v6560_v16  ;;  %v8355_v42 = vpop.f32.mrb[92].mxu1  ;;  %v6513_v2 = vmul.f32 1.442695, %v6469_v8  ;;  %v6472_v8 = vsub.f32 0.0, %v6440_v35 }
 0x4cf   : > { %v9235_v39 = vpop.eup %9234  ;;  %v6590_v32 = vmul.f32 0.6931472, %v9233_v31  ;;  %9252 = vlog2.f32 %v6558_v12  ;;  %v12314_v15 = vadd.f32 %v12190_v29, %v8355_v42  ;;  %v6298_v25 = vpop.f32.mrb[93].mxu1 }
 0x4d0   : > { %v9237_v46 = vpop.eup %9236  ;;  %v6586_v56 = vmul.f32 0.6931472, %v9235_v39  ;;  %9254 = vpow2.f32 %v6507_v60  ;;  %v8356_v0 = vpop.f32.mrb[94].mxu1 }
 0x4d1   : > { %v9239_v23 = vpop.eup %9238  ;;  %v6651_v37 = vadd.f32 %v6590_v32, %v6395_v5  ;;  %v6592_v21 = vmul.f32 0.6931472, %v9237_v46  ;;  %9256 = vpow2.f32 %v6517_v1  ;;  %v6301_v40 = vpop.f32.mrb[95].mxu1  ;;  %v12321_v32 = vadd.f32 %v12182_v27, %v6298_v25 }
 0x4d2   : > { %v9241_v16 = vpop.eup %9240  ;;  %v6649_v12 = vadd.f32 %v6586_v56, %v6393_v47  ;;  %v6588_v29 = vmul.f32 0.6931472, %v9239_v23  ;;  %9258 = vpow2.f32 %v6513_v2  ;;  %v6443_v47 = vand.u32 2147483647, %v12314_v15 }
 0x4d3   : > { %v9243_v31 = vpop.eup %9242  ;;  %9260 = vtanh.f32 %v6651_v37  ;;  %v6652_v42 = vadd.f32 %v6592_v21, %v6396_v30  ;;  %v6563_v39 = vadd.f32 1.0, %v9241_v16  ;;  %v12325_v2 = vadd.f32 %v12194_v19, %v8356_v0 }
 0x4d4   : > { %v9245_v60 = vpop.eup %9244  ;;  %9262 = vtanh.f32 %v6649_v12  ;;  %v6650_v41 = vadd.f32 %v6588_v29, %v6394_v53  ;;  %v6561_v5 = vadd.f32 1.0, %v9243_v31  ;;  %v6519_v30 = vmul.f32 1.442695, %v6472_v8 }
 0x4d5   : > { %9264 = vtanh.f32 %v6652_v42  ;;  %v6564_v1 = vadd.f32 1.0, %v9245_v60  ;;  %v6441_v46 = vand.u32 2147483647, %v12321_v32  ;;  %v12329_v56 = vadd.f32 %v12186_v59, %v6301_v40 }
 0x4d6   : > { %v9247_v35 = vpop.eup %9246  ;;  %9266 = vtanh.f32 %v6650_v41  ;;  %v8359_v53 = vpop.f32.mrb[96].mxu1  ;;  %v6470_v0 = vsub.f32 0.0, %v6438_v26  ;;  %v6444_v41 = vand.u32 2147483647, %v12325_v2  ;;  %v6475_v8 = vsub.f32 0.0, %v6443_v47 }
 0x4d7   : > { %v9249_v23 = vpop.eup %9248  ;;  %v6598_v37 = vmul.f32 0.6931472, %v9247_v35  ;;  %9268 = vlog2.f32 %v6563_v39  ;;  %v6314_v21 = vpop.f32.mrb[97].mxu1 }
 0x4d8   : > { %v9251_v16 = vpop.eup %9250  ;;  %v6594_v19 = vmul.f32 0.6931472, %v9249_v23  ;;  %9270 = vlog2.f32 %v6561_v5  ;;  %v8360_v12 = vpop.f32.mrb[98].mxu1  ;;  %v6473_v5 = vsub.f32 0.0, %v6441_v46  ;;  %v6476_v25 = vsub.f32 0.0, %v6444_v41 }
 0x4d9   : > { %v9253_v29 = vpop.eup %9252  ;;  %v6655_v59 = vadd.f32 %v6598_v37, %v6399_v20  ;;  %v6600_v40 = vmul.f32 0.6931472, %v9251_v16  ;;  %9272 = vlog2.f32 %v6564_v1  ;;  %v12336_v31 = vpop.f32.mrb[99].mxu1  ;;  %v12804_v1 = vmax.f32 %v12264_v51, 0.0 }
 0x4da   : > { %v9255_v42 = vpop.eup %9254  ;;  %v6653_v39 = vadd.f32 %v6594_v19, %v6397_v61  ;;  %v6596_v60 = vmul.f32 0.6931472, %v9253_v29  ;;  %9274 = vpow2.f32 %v6519_v30  ;;  %v6442_v16 = vand.u32 2147483647, %v12329_v56 }
 0x4db   : > { %v9257_v26 = vpop.eup %9256  ;;  %9276 = vtanh.f32 %v6655_v59  ;;  %v6656_v35 = vadd.f32 %v6600_v40, %v6400_v36  ;;  %v6562_v23 = vadd.f32 1.0, %v9255_v42  ;;  %v6515_v30 = vmul.f32 1.442695, %v6470_v0 }
 0x4dc   : > { %v9259_v20 = vpop.eup %9258  ;;  %9278 = vtanh.f32 %v6653_v39  ;;  %v6654_v47 = vadd.f32 %v6596_v60, %v12804_v1  ;;  %v6567_v37 = vadd.f32 1.0, %v9257_v26  ;;  %v12346_v46 = vadd.f32 %v12206_v13, %v8359_v53 }
 0x4dd   : > { %v9261_v27 = vpop.eup %9260  ;;  %9280 = vtanh.f32 %v6656_v35  ;;  %v6565_v61 = vadd.f32 1.0, %v9259_v20  ;;  %v6525_v36 = vmul.f32 1.442695, %v6475_v8  ;;  %v6521_v29 = vmul.f32 1.442695, %v6473_v5 }
 0x4de   : > { %v9263_v19 = vpop.eup %9262  ;;  %9282 = vtanh.f32 %v6654_v47  ;;  %v12349_v41 = vadd.f32 %v12198_v18, %v6314_v21  ;;  %v8363_v59 = vpop.f32.mrb[100].mxu1  ;;  %v12352_v42 = vmul.f32 %v9261_v27, %v12237_v57  ;;  %v6527_v39 = vmul.f32 1.442695, %v6476_v25 }
 0x4df   : > { %v9265_v40 = vpop.eup %9264  ;;  %9284 = vlog2.f32 %v6562_v23  ;;  %v6447_v60 = vand.u32 2147483647, %v12346_v46  ;;  %v6330_v0 = vpop.f32.mrb[101].mxu1  ;;  %v12356_v13 = vmul.f32 %v9263_v19, %v12240_v7  ;;  %v6474_v18 = vsub.f32 0.0, %v6442_v16 }
 0x4e0   : > { %v9267_v26 = vpop.eup %9266  ;;  %v12359_v53 = vmul.f32 %v9265_v40, %v12244_v38  ;;  %9286 = vlog2.f32 %v6567_v37  ;;  %v12361_v21 = vpop.f32.mrb[102].mxu1  ;;  %v6445_v25 = vand.u32 2147483647, %v12349_v41  ;;  %v12372_v23 = vadd.f32 %v12210_v49, %v8360_v12 }
 0x4e1   : > { %v9269_v8 = vpop.eup %9268  ;;  %v12364_v57 = vmul.f32 %v9267_v26, %v12248_v44  ;;  %9288 = vlog2.f32 %v6565_v61  ;;  %v6479_v27 = vsub.f32 0.0, %v6447_v60  ;;  %v12367_v5 = vpop.f32.mrb[103].mxu1  ;;  %v6407_v47 = vmax.f32 %v12293_v22, 0.0 }
 0x4e2   : > { %v9271_v35 = vpop.eup %9270  ;;  %v6606_v38 = vmul.f32 0.6931472, %v9269_v8  ;;  %9290 = vpow2.f32 %v6515_v30  ;;  %v12805_v16 = vmax.f32 %v12269_v45, 0.0  ;;  %v6477_v40 = vsub.f32 0.0, %v6445_v25 }
 0x4e3   : > { %v9273_v20 = vpop.eup %9272  ;;  %v6759_v44 = vpack.c.bf16 %v12364_v57, %v12356_v13  ;;  %v6602_v1 = vmul.f32 0.6931472, %v9271_v35  ;;  %9292 = vpow2.f32 %v6525_v36  ;;  %v6523_v30 = vmul.f32 1.442695, %v6474_v18 }
 0x4e4   : > { %v9275_v37 = vpop.eup %9274  ;;  %v6659_v61 = vadd.f32 %v6606_v38, %v12805_v16  ;;  %v6608_v19 = vmul.f32 0.6931472, %v9273_v20  ;;  %9294 = vpow2.f32 %v6521_v29  ;;  %v12806_v36 = vmax.f32 %v12282_v48, 0.0 }
 0x4e5   : > { %v9277_v60 = vpop.eup %9276  ;;  %v6657_v49 = vadd.f32 %v6602_v1, %v6401_v9  ;;  %v6568_v12 = vadd.f32 1.0, %v9275_v37  ;;  %9296 = vpow2.f32 %v6527_v39  ;;  %v6533_v7 = vmul.f32 1.442695, %v6479_v27 }
 0x4e6   : > { %v9279_v26 = vpop.eup %9278  ;;  %v12382_v8 = vmul.f32 %v9277_v60, %v12253_v6  ;;  %9298 = vtanh.f32 %v6659_v61  ;;  %v6660_v35 = vadd.f32 %v6608_v19, %v12806_v36  ;;  %v12386_v38 = vpop.f32.mrb[104].mxu1  ;;  %v6529_v25 = vmul.f32 1.442695, %v6477_v40 }
 0x4e7   : > { %v9281_v29 = vpop.eup %9280  ;;  %9300 = vtanh.f32 %v6657_v49  ;;  %v6448_v20 = vand.u32 2147483647, %v12372_v23  ;;  %v12391_v9 = vadd.f32 %v12202_v3, %v12336_v31  ;;  %v12393_v39 = vpop.f32.mrb[105].mxu1  ;;  %v12399_v27 = vadd.f32 %v12222_v14, %v8363_v59 }
 0x4e8   : > { %v9283_v6 = vpop.eup %9282  ;;  %v12396_v18 = vmul.f32 %v9281_v29, %v12260_v50  ;;  %9302 = vtanh.f32 %v6660_v35  ;;  %v12402_v1 = vadd.f32 %v12214_v24, %v6330_v0  ;;  %v12404_v37 = vpop.f32.mrb[106].mxu1  ;;  %v12407_v61 = vmul.f32 %v9279_v26, %v12256_v63 }
 0x4e9   : > { %v9285_v16 = vpop.eup %9284  ;;  %v12410_v3 = vmul.f32 %v9283_v6, %v12264_v51  ;;  %9304 = vlog2.f32 %v6568_v12  ;;  %v6480_v31 = vsub.f32 0.0, %v6448_v20  ;;  %v12412_v50 = vpop.f32.mrb[107].mxu1  ;;  %v6446_v24 = vand.u32 2147483647, %v12391_v9 }
 0x4ea   : > { %v9287_v19 = vpop.eup %9286  ;;  %v6604_v59 = vmul.f32 0.6931472, %v9285_v16  ;;  %9306 = vpow2.f32 %v6523_v30  ;;  %v12807_v49 = vmax.f32 %v12288_v62, 0.0  ;;  %v6405_v26 = vmax.f32 %v12296_v34, 0.0 }
 0x4eb   : > { %v9289_v0 = vpop.eup %9288  ;;  %v6614_v40 = vmul.f32 0.6931472, %v9287_v19  ;;  %9308 = vpow2.f32 %v6533_v7  ;;  %v6535_v51 = vmul.f32 1.442695, %v6480_v31  ;;  %v6478_v20 = vsub.f32 0.0, %v6446_v24 }
 0x4ec   : > { %v9291_v60 = vpop.eup %9290  ;;  %v6658_v12 = vadd.f32 %v6604_v59, %v12807_v49  ;;  %v6610_v36 = vmul.f32 0.6931472, %v9289_v0  ;;  %9310 = vpow2.f32 %v6529_v25  ;;  %v6451_v31 = vand.u32 2147483647, %v12399_v27 }
 0x4ed   : > { %v9293_v35 = vpop.eup %9292  ;;  %v6663_v29 = vadd.f32 %v6614_v40, %v6407_v47  ;;  %v6566_v30 = vadd.f32 1.0, %v9291_v60  ;;  %9312 = vpow2.f32 %v6535_v51  ;;  %v6449_v0 = vand.u32 2147483647, %v12402_v1 }
 0x4ee   : > { %v9295_v6 = vpop.eup %9294  ;;  %9314 = vtanh.f32 %v6658_v12  ;;  %v6661_v16 = vadd.f32 %v6610_v36, %v6405_v26  ;;  %v6571_v14 = vadd.f32 1.0, %v9293_v35  ;;  %v12426_v47 = vadd.f32 %v12226_v10, %v12361_v21 }
 0x4ef   : > { %v9297_v19 = vpop.eup %9296  ;;  %9316 = vtanh.f32 %v6663_v29  ;;  %v6569_v7 = vadd.f32 1.0, %v9295_v6  ;;  %v6531_v24 = vmul.f32 1.442695, %v6478_v20  ;;  %v6483_v40 = vsub.f32 0.0, %v6451_v31 }
 0x4f0   : > { %v9299_v63 = vpop.eup %9298  ;;  %9318 = vtanh.f32 %v6661_v16  ;;  %v6572_v59 = vadd.f32 1.0, %v9297_v19  ;;  %v12430_v51 = vadd.f32 %v12218_v28, %v12367_v5  ;;  %v6481_v12 = vsub.f32 0.0, %v6449_v0 }
 0x4f1   : > { %v9301_v25 = vpop.eup %9300  ;;  %9320 = vlog2.f32 %v6566_v30  ;;  %v12433_v49 = vmul.f32 %v9299_v63, %v12269_v45  ;;  %v6541_v10 = vmul.f32 1.442695, %v6483_v40  ;;  %v6452_v21 = vand.u32 2147483647, %v12426_v47 }
 0x4f2   : > { %v9303_v60 = vpop.eup %9302  ;;  %9322 = vlog2.f32 %v6571_v14  ;;  %v12440_v29 = vmul.f32 %v9301_v25, %v12273_v17  ;;  %v6408_v28 = vmax.f32 %v12301_v55, 0.0  ;;  %v6450_v16 = vand.u32 2147483647, %v12430_v51 }
 0x4f3   : > { %v9305_v26 = vpop.eup %9304  ;;  %v12436_v36 = vmul.f32 %v9303_v60, %v12282_v48  ;;  %9324 = vlog2.f32 %v6569_v7  ;;  %v6484_v48 = vsub.f32 0.0, %v6452_v21  ;;  %v6537_v7 = vmul.f32 1.442695, %v6481_v12 }
 0x4f4   : > { %v9307_v35 = vpop.eup %9306  ;;  %v6616_v5 = vmul.f32 0.6931472, %v9305_v26  ;;  %9326 = vlog2.f32 %v6572_v59  ;;  %v12448_v31 = vadd.f32 %v12232_v4, %v12386_v38  ;;  %v6482_v25 = vsub.f32 0.0, %v6450_v16 }
 0x4f5   : > { %v9309_v45 = vpop.eup %9308  ;;  %v6764_v14 = vpack.c.bf16 %v12436_v36, %v12433_v49  ;;  %v6570_v63 = vadd.f32 1.0, %v9307_v35  ;;  %9328 = vpow2.f32 %v6531_v24  ;;  %v12452_v24 = vadd.f32 %v12228_v11, %v12393_v39 }
 0x4f6   : > { %v9311_v30 = vpop.eup %9310  ;;  %v6664_v20 = vadd.f32 %v6616_v5, %v6408_v28  ;;  %v6575_v6 = vadd.f32 1.0, %v9309_v45  ;;  %9330 = vpow2.f32 %v6541_v10  ;;  %v6543_v26 = vmul.f32 1.442695, %v6484_v48 }
 0x4f7   : > { %v9313_v19 = vpop.eup %9312  ;;  %9332 = vlog2.f32 %v6570_v63  ;;  %v6573_v17 = vadd.f32 1.0, %v9311_v30  ;;  %v6455_v12 = vand.u32 2147483647, %v12448_v31  ;;  %v6406_v4 = vmax.f32 %v12308_v58, 0.0 }
 0x4f8   : > { %v9315_v59 = vpop.eup %9314  ;;  %9334 = vtanh.f32 %v6664_v20  ;;  %v6576_v0 = vadd.f32 1.0, %v9313_v19  ;;  %v6411_v38 = vmax.f32 %v12314_v15, 0.0  ;;  %v6539_v21 = vmul.f32 1.442695, %v6482_v25 }
 0x4f9   : > { %v9317_v40 = vpop.eup %9316  ;;  %v12455_v60 = vmul.f32 %v9315_v59, %v12288_v62  ;;  %9336 = vlog2.f32 %v6575_v6  ;;  %v6409_v39 = vmax.f32 %v12321_v32, 0.0  ;;  %v6487_v62 = vsub.f32 0.0, %v6455_v12 }
 0x4fa   : > { %v12458_v10 = vpop.eup %9318  ;;  %9338 = vlog2.f32 %v6573_v17  ;;  %v6453_v45 = vand.u32 2147483647, %v12452_v24  ;;  %v12468_v63 = vadd.f32 %v12234_v54, %v12404_v37  ;;  %v12472_v6 = vadd.f32 %v12230_v43, %v12412_v50 }
 0x4fb   : > { %v9321_v35 = vpop.eup %9320  ;;  %v6763_v11 = vpack.c.bf16 %v12455_v60, %v12440_v29  ;;  %9340 = vlog2.f32 %v6576_v0  ;;  %v6549_v20 = vmul.f32 1.442695, %v6487_v62  ;;  %v6412_v59 = vmax.f32 %v12325_v2, 0.0 }
 0x4fc   : > { %v9323_v28 = vpop.eup %9322  ;;  %v6612_v5 = vmul.f32 0.6931472, %v9321_v35  ;;  %9342 = vpow2.f32 %v6537_v7  ;;  %v6485_v54 = vsub.f32 0.0, %v6453_v45  ;;  %v6410_v43 = vmax.f32 %v12329_v56, 0.0 }
 0x4fd   : > { %v9325_v48 = vpop.eup %9324  ;;  %v6622_v30 = vmul.f32 0.6931472, %v9323_v28  ;;  %9344 = vpow2.f32 %v6543_v26  ;;  %v12477_v28 = vmul.f32 %v9317_v40, %v12293_v22  ;;  %v12808_v57 = vpack.c.bf16 %v12359_v53, %v12352_v42 }
 0x4fe   : > { %v9327_v16 = vpop.eup %9326  ;;  %v6662_v19 = vadd.f32 %v6612_v5, %v6406_v4  ;;  %v6618_v17 = vmul.f32 0.6931472, %v9325_v48  ;;  %9346 = vpow2.f32 %v6539_v21  ;;  %v6456_v48 = vand.u32 2147483647, %v12468_v63 }
 0x4ff   : > { %v9329_v7 = vpop.eup %9328  ;;  %v6667_v0 = vadd.f32 %v6622_v30, %v6411_v38  ;;  %v6624_v25 = vmul.f32 0.6931472, %v9327_v16  ;;  %9348 = vpow2.f32 %v6549_v20  ;;  %v6415_v38 = vmax.f32 %v12346_v46, 0.0 }
 0x500   : > { %v9331_v37 = vpop.eup %9330  ;;  %9350 = vtanh.f32 %v6662_v19  ;;  %v6665_v12 = vadd.f32 %v6618_v17, %v6409_v39  ;;  %v6574_v26 = vadd.f32 1.0, %v9329_v7  ;;  %v6545_v39 = vmul.f32 1.442695, %v6485_v54 }
 0x501   : > { %v9333_v35 = vpop.eup %9332  ;;  %9352 = vtanh.f32 %v6667_v0  ;;  %v6668_v62 = vadd.f32 %v6624_v25, %v6412_v59  ;;  %v6579_v50 = vadd.f32 1.0, %v9331_v37  ;;  %v6454_v19 = vand.u32 2147483647, %v12472_v6 }
 0x502   : > { %v9335_v4 = vpop.eup %9334  ;;  %9354 = vtanh.f32 %v6665_v12  ;;  %v6620_v21 = vmul.f32 0.6931472, %v9333_v35  ;;  %v6416_v17 = vmax.f32 %v12372_v23, 0.0  ;;  %v6413_v54 = vmax.f32 %v12349_v41, 0.0 }
 0x503   : > { %v9337_v5 = vpop.eup %9336  ;;  %v12481_v45 = vmul.f32 %v9335_v4, %v12301_v55  ;;  %9356 = vtanh.f32 %v6668_v62  ;;  %v6488_v12 = vsub.f32 0.0, %v6456_v48  ;;  %v12809_v42 = vpack.c.bf16 %v12410_v3, %v12407_v61 }
 0x504   : > { %v9339_v30 = vpop.eup %9338  ;;  %v6666_v20 = vadd.f32 %v6620_v21, %v6410_v43  ;;  %v6630_v16 = vmul.f32 0.6931472, %v9337_v5  ;;  %9358 = vlog2.f32 %v6574_v26  ;;  %v6486_v43 = vsub.f32 0.0, %v6454_v19 }
 0x505   : > { %v9341_v22 = vpop.eup %9340  ;;  %v6766_v40 = vpack.c.bf16 %v12481_v45, %v12477_v28  ;;  %9360 = vlog2.f32 %v6579_v50  ;;  %v6626_v7 = vmul.f32 0.6931472, %v9339_v30  ;;  %v12810_v61 = vpack.c.bf16 %v12396_v18, %v12382_v8  ;;  %v9022_v28 = vld [vmem:[#allocation10 + $0x30] sm:$0xff]   ;;  %v9023_v45 = vld [vmem:[#allocation10 + $0x38] sm:$0xff]  }
 0x506   : > { %v9343_v59 = vpop.eup %9342  ;;  %9362 = vtanh.f32 %v6666_v20  ;;  %v6671_v55 = vadd.f32 %v6630_v16, %v6415_v38  ;;  %v6632_v0 = vmul.f32 0.6931472, %v9341_v22  ;;  %v12491_v38 = vmul.f32 %v12458_v10, %v12296_v34 }
 0x507   : > { %v9345_v25 = vpop.eup %9344  ;;  %v6577_v37 = vadd.f32 1.0, %v9343_v59  ;;  %9364 = vpow2.f32 %v6545_v39  ;;  %v6669_v50 = vadd.f32 %v6626_v7, %v6413_v54  ;;  %v6551_v39 = vmul.f32 1.442695, %v6488_v12 }
 0x508   : > { %v9347_v26 = vpop.eup %9346  ;;  %9366 = vtanh.f32 %v6671_v55  ;;  %v6672_v35 = vadd.f32 %v6632_v0, %v6416_v17  ;;  %v6580_v62 = vadd.f32 1.0, %v9345_v25  ;;  %v6547_v16 = vmul.f32 1.442695, %v6486_v43 }
 0x509   : > { %v9349_v4 = vpop.eup %9348  ;;  %v6578_v21 = vadd.f32 1.0, %v9347_v26  ;;  %v6749_v60 = vsub.s32 0, %v12803_v33  ;;  %v9017_v33 = vld [vmem:[#allocation10 + $0x8] sm:$0xff]  }
 0x50a   : > { %v9351_v5 = vpop.eup %9350  ;;  %9368 = vtanh.f32 %v6672_v35 }
 0x50b   : > { %v9353_v20 = vpop.eup %9352  ;;  %v12494_v30 = vmul.f32 %v9351_v5, %v12308_v58  ;;  %9370 = vlog2.f32 %v6577_v37  ;;  %v6414_v58 = vmax.f32 %v12391_v9, 0.0  ;;  %v6750_v49 = vrot.slane %v12278_v52, %v6749_v60  ;;  %v9019_v52 = vld [vmem:[#allocation10 + $0x18] sm:$0xff]  }
 0x50c   : > { %v9355_v48 = vpop.eup %9354  ;;  %9372 = vlog2.f32 %v6580_v62  ;;  %v6731_v59 = vmul.f32 %v9353_v20, %v12314_v15  ;;  %v6583_v15 = vadd.f32 1.0, %v9349_v4 }
 0x50d   : > { %v9357_v22 = vpop.eup %9356  ;;  %v6765_v19 = vpack.c.bf16 %v12494_v30, %v12491_v38  ;;  %9374 = vlog2.f32 %v6578_v21  ;;  %v6729_v54 = vmul.f32 %v9355_v48, %v12321_v32  ;;  %v6757_v36 = vpack.c.bf16 %v6750_v49, %v6750_v49 }
 0x50e   : > { %v9359_v17 = vpop.eup %9358  ;;  %v6732_v55 = vmul.f32 %v9357_v22, %v12325_v2  ;;  %9376 = vtanh.f32 %v6669_v50  ;;  %v6419_v2 = vmax.f32 %v12399_v27, 0.0 }
 0x50f   : > { %v9361_v34 = vpop.eup %9360  ;;  %v6628_v10 = vmul.f32 0.6931472, %v9359_v17  ;;  %9378 = vpow2.f32 %v6551_v39 }
 0x510   : > { %v9363_v7 = vpop.eup %9362  ;;  %9380 = vpow2.f32 %v6547_v16  ;;  %v6768_v0 = vpack.c.bf16 %v6732_v55, %v6731_v59  ;;  %v6638_v26 = vmul.f32 0.6931472, %v9361_v34  ;;  %v6420_v16 = vmax.f32 %v12426_v47, 0.0 }
 0x511   : > { %v9365_v25 = vpop.eup %9364  ;;  %v6730_v37 = vmul.f32 %v9363_v7, %v12329_v56  ;;  %v6670_v12 = vadd.f32 %v6628_v10, %v6414_v58  ;;  %v6417_v56 = vmax.f32 %v12402_v1, 0.0  ;;  %v6418_v59 = vmax.f32 %v12430_v51, 0.0 }
 0x512   : > { %v9367_v35 = vpop.eup %9366  ;;  %v6581_v62 = vadd.f32 1.0, %v9365_v25  ;;  %v6675_v39 = vadd.f32 %v6638_v26, %v6419_v2 }
 0x513   : > { %9382 = vtanh.f32 %v6670_v12  ;;  %v6767_v43 = vpack.c.bf16 %v6730_v37, %v6729_v54  ;;  %v6735_v50 = vmul.f32 %v9367_v35, %v12346_v46 }
 0x514   : > { %v9369_v21 = vpop.eup %9368  ;;  %9384 = vlog2.f32 %v6583_v15 }
 0x515   : > { %v9371_v5 = vpop.eup %9370  ;;  %v6736_v20 = vmul.f32 %v9369_v21, %v12372_v23  ;;  %8050 = vmatprep.subr.bf16.mxu0 %v6767_v43  ;;  %9386 = vlog2.f32 %v6581_v62 }
 0x516   : > { %v9373_v32 = vpop.eup %9372  ;;  %v6634_v48 = vmul.f32 0.6931472, %v9371_v5  ;;  %8051 = vmatpush3.bf16.msra.mxu0 %v6759_v44  ;;  %9388 = vtanh.f32 %v6675_v39  ;;  %v6421_v5 = vmax.f32 %v12452_v24, 0.0 }
 0x517   : > { %v9375_v4 = vpop.eup %9374  ;;  %v6640_v22 = vmul.f32 0.6931472, %v9373_v32  ;;  %8052 = vmatprep.subr.bf16.mxu0 %v6768_v0  ;;  %v6770_v46 = vpack.c.bf16 %v6736_v20, %v6735_v50 }
 0x518   : > { %v9377_v17 = vpop.eup %9376  ;;  %v6673_v23 = vadd.f32 %v6634_v48, %v6417_v56  ;;  %v6636_v55 = vmul.f32 0.6931472, %v9375_v4  ;;  %v6424_v4 = vmax.f32 %v12468_v63, 0.0 }
 0x519   : > { %v9379_v34 = vpop.eup %9378  ;;  %v6676_v58 = vadd.f32 %v6640_v22, %v6420_v16  ;;  %v6733_v25 = vmul.f32 %v9377_v17, %v12349_v41  ;;  %v6423_v41 = vmax.f32 %v12448_v31, 0.0 }
 0x51a   : > { %v9381_v10 = vpop.eup %9380  ;;  %9390 = vtanh.f32 %v6673_v23  ;;  %v6674_v7 = vadd.f32 %v6636_v55, %v6418_v59  ;;  %v6584_v13 = vadd.f32 1.0, %v9379_v34  ;;  %8053 = vmatpush3.bf16.msra.mxu0 %v12808_v57 }
 0x51b   : > { %9392 = vtanh.f32 %v6676_v58  ;;  %v6582_v44 = vadd.f32 1.0, %v9381_v10 }
 0x51c   : > { %9394 = vtanh.f32 %v6674_v7  ;;  %v6832_v7 = vld [vmem:[%s12608_s7] sm:$0x1] }
 0x51d   : > { %v9383_v0 = vpop.eup %9382  ;;  %9396 = vlog2.f32 %v6584_v13 }
 0x51e   : > { %v6734_v54 = vmul.f32 %v9383_v0, %v12391_v9  ;;  %9398 = vlog2.f32 %v6582_v44  ;;  %v9385_v37 = vpop.eup %9384 }
 0x51f   : > { %v9387_v26 = vpop.eup %9386  ;;  %v6646_v15 = vmul.f32 0.6931472, %v9385_v37 }
 0x520   : > { %v6769_v12 = vpack.c.bf16 %v6734_v54, %v6733_v25  ;;  %v9389_v35 = vpop.eup %9388  ;;  %v6642_v2 = vmul.f32 0.6931472, %v9387_v26 }
 0x521   : > { %v6739_v9 = vmul.f32 %v9389_v35, %v12399_v27  ;;  %v6679_v39 = vadd.f32 %v6646_v15, %v6423_v41 }
 0x522   : > { %8054 = vmatprep.subr.bf16.mxu0 %v6769_v12  ;;  %v6677_v32 = vadd.f32 %v6642_v2, %v6421_v5 }
 0x523   : > { %8055 = vmatpush3.bf16.msra.mxu0 %v12809_v42  ;;  %9400 = vtanh.f32 %v6679_v39 }
 0x524   : > { %v9391_v53 = vpop.eup %9390  ;;  %8056 = vmatprep.subr.bf16.mxu0 %v6770_v46  ;;  %9402 = vtanh.f32 %v6677_v32 }
 0x525   : > { %v9393_v62 = vpop.eup %9392  ;;  %v6737_v50 = vmul.f32 %v9391_v53, %v12402_v1 }
 0x526   : > { %v9395_v43 = vpop.eup %9394  ;;  %v6740_v21 = vmul.f32 %v9393_v62, %v12426_v47  ;;  %v6422_v47 = vmax.f32 %v12472_v6, 0.0 }
 0x527   : > { %v6738_v20 = vmul.f32 %v9395_v43, %v12430_v51  ;;  %8057 = vmatpush3.bf16.msra.mxu0 %v12810_v61  ;;  %v9397_v3 = vpop.eup %9396 }
 0x528   : > { %v6772_v56 = vpack.c.bf16 %v6740_v21, %v6739_v9  ;;  %v9399_v48 = vpop.eup %9398  ;;  %v6648_v27 = vmul.f32 0.6931472, %v9397_v3 }
 0x529   : > { %v6771_v16 = vpack.c.bf16 %v6738_v20, %v6737_v50  ;;  %v6644_v22 = vmul.f32 0.6931472, %v9399_v48 }
 0x52a   : > { %v6680_v1 = vadd.f32 %v6648_v27, %v6424_v4 }
 0x52b   : > { %8058 = vmatprep.subr.bf16.mxu0 %v6771_v16  ;;  %v6678_v51 = vadd.f32 %v6644_v22, %v6422_v47 }
 0x52c   : > { %8059 = vmatpush3.bf16.msra.mxu0 %v6763_v11  ;;  %9404 = vtanh.f32 %v6680_v1 }
 0x52d   : > { %8060 = vmatprep.subr.bf16.mxu0 %v6772_v56  ;;  %9406 = vtanh.f32 %v6678_v51  ;;  %v9401_v8 = vpop.eup %9400 }
 0x52e   : > { %v9403_v18 = vpop.eup %9402  ;;  %v6743_v23 = vmul.f32 %v9401_v8, %v12448_v31  ;;  %v9414_v31 = vld [vmem:[#allocation2 + $0x8] sm:$0xff] }
 0x52f   : > { %v6741_v55 = vmul.f32 %v9403_v18, %v12452_v24  ;;  %v9018_v24 = vld [vmem:[#allocation10 + $0x10] sm:$0xff]  }
 0x530   : > { %8061 = vmatpush3.bf16.msra.mxu0 %v6764_v14  ;;  %v9016_v14 = vld [vmem:[#allocation10] sm:$0xff]  }
 0x536   : > { %v9405_v46 = vpop.eup %9404 }
 0x537   : > { %v9407_v17 = vpop.eup %9406  ;;  %v6744_v59 = vmul.f32 %v9405_v46, %v12468_v63  ;;  %v9020_v63 = vld [vmem:[#allocation10 + $0x20] sm:$0xff]  }
 0x538   : > { %v6742_v29 = vmul.f32 %v9407_v17, %v12472_v6  ;;  %v9021_v6 = vld [vmem:[#allocation10 + $0x28] sm:$0xff]  }
 0x539   : > { %v6774_v11 = vpack.c.bf16 %v6744_v59, %v6743_v23 }
 0x53a   : > { %v6773_v34 = vpack.c.bf16 %v6742_v29, %v6741_v55 }
 0x53c   : > { %8062 = vmatprep.subr.bf16.mxu0 %v6773_v34 }
 0x53d   : > { %8063 = vmatpush3.bf16.msra.mxu0 %v6765_v19 }
 0x53e   : > { %8064 = vmatprep.subr.bf16.mxu0 %v6774_v11 }
 0x541   : > { %8065 = vmatpush3.bf16.msra.mxu0 %v6766_v40 }
 0x542   : > { %8369 = vmatprep.subr.bf16.mxu0 %v9414_v31 }
 0x544   : > { %6808 = vmatmul.mubr.bf16.vlgmr.msra.gmra.mrb[20].mxu0 %v6757_v36 }
 0x545   : > { %8370 = vmatpush3.bf16.msra.mxu0 %v9016_v14  ;;  %8385 = vmatprep.mubr.msk.bf16.mxu0 %vm9615_vm6, %v9414_v31 }
 0x546   : > { %8371 = vmatprep.subr.bf16.mxu0 %v9414_v31 }
 0x549   : > { %8372 = vmatpush3.bf16.msra.mxu0 %v9017_v33 }
 0x54a   : > { %8373 = vmatprep.subr.bf16.mxu0 %v9414_v31 }
 0x54d   : > { %8374 = vmatpush3.bf16.msra.mxu0 %v9018_v24 }
 0x54e   : > { %8375 = vmatprep.subr.bf16.mxu0 %v9414_v31 }
 0x551   : > { %8376 = vmatpush3.bf16.msra.mxu0 %v9019_v52 }
 0x552   : > { %8377 = vmatprep.subr.bf16.mxu0 %v9414_v31 }
 0x555   : > { %8378 = vmatpush3.bf16.msra.mxu0 %v9020_v63 }
 0x556   : > { %8379 = vmatprep.subr.bf16.mxu0 %v9414_v31 }
 0x559   : > { %8380 = vmatpush3.bf16.msra.mxu0 %v9021_v6 }
 0x55a   : > { %8381 = vmatprep.subr.bf16.mxu0 %v9414_v31 }
 0x55d   : > { %8382 = vmatpush3.bf16.msra.mxu0 %v9022_v28 }
 0x55e   : > { %8383 = vmatprep.subr.bf16.mxu0 %v9414_v31 }
 0x561   : > { %8384 = vmatpush3.bf16.msra.mxu0 %v9023_v45 }
 0x617   : > { %v8066_v40 = vpop.f32.mrb[20].mxu0 }
 0x618   : > { %v8067_v38 = vpop.f32.mrb[21].mxu0 }
 0x619   : > { %v8068_v30 = vadd.f32 %v8067_v38, %v8066_v40  ;;  %v8069_v19 = vpop.f32.mrb[22].mxu0 }
 0x61a   : > { %v8070_v58 = vpop.f32.mrb[23].mxu0 }
 0x61b   : > { %v6815_v10 = vpack.c.bf16 %v8068_v30, %v8068_v30 }
 0x61d   : > { %8386 = vmatmul.mubr.bf16.vlgmr.msra.gmra.mrb[24].mxu0 %v6815_v10 }
 0x6f0   : > { %v6915_v13 = vpop.f32.mrb[24].mxu0 }
 0x6f1   : > { %v6916_v57 = vadd.f32 %v6915_v13, %v6832_v7  ;;  %v8387_v44 = vpop.f32.mrb[25].mxu0 }
 0x6f2   : > { %v6918_v0 = vpop.f32.mrb[26].mxu0 }
 0x6f3   : > { %6921 = vst [vmem:[%s366_s27] sm:$0x1] %v6916_v57  ;;  %v8388_v25 = vpop.f32.mrb[27].mxu0 }
 0x6f4   : > { %9542 = shalt.err (!%p9539_p4)
}
 0x6f5   : > { %s9543_s25 = scalar_lea.hbm %s12557_s24, 16  ;;  %s9547_s21 = scalar_lea.hbm %s12609_s8, 32 }
 0x6f6   : > { %p9544_p9 = scmp.ne.s32.totalorder %s12557_s24, %s9543_s25  ;;  %p9548_p8 = scmp.lt.u32.totalorder %s12557_s24, %s12609_s8 }
 0x6f7   : > { %p9549_p13 = scmp.lt.u32.totalorder %s9547_s21, %s9543_s25  ;;  %p9551_p10 = scmp.lt.u32.totalorder %s9543_s25, %s12557_s24 }
 0x6f8   : > { %p9545_p0 = pnand %p9544_p9, %p9816_p5 }
 0x6f9   : > { %p9550_p6 = por %p9549_p13, %p9548_p8 }
 0x6fa   : > { %p9546_p11 = pneg %p9545_p0 }
 0x6fb   : > { %p9552_p3 = por %p9551_p10, %p9550_p6 }
 0x6fd   : > { %p9553_p7 = pnand %p9552_p3, %p9546_p11 }
 0x6ff   : > { %9556 = shalt.err (!%p9553_p7)
}
 0x700   : > { %8803 = dma.vmem_to_hbm [thread:$0]  (%p9816_p5), %s12559_s12, 16, %s12557_s24, %s6923_s11  }
 0x701 PF: > { %s12811_s27 = sld [smem:[#allocation17_spill]]  ;;  %s12812_s20 = sld [smem:[#allocation18_spill]] }
 0x702   : > { %p12814_p1 = scmp.ge.s32.totalorder %s9603_s30, 2 }
 0x707   : > { %s6947_s19 = sand.u32 1, %s12811_s27   ;;  %p12813_p12 = scmp.ne.s32.totalorder %s12812_s20, 0 }
 0x708   : > { %s6948_s9 = scalar_lea.sflag [#allocation6], %s6947_s19 }
 0x709   : > { %p8820_p2 = pnand %p12814_p1, %p12813_p12 }
 0x70b   : > { %9586 = dma.done.wait (!%p8820_p2), %s6948_s9, 16  }
 0x70c   : > { %9588 = vsyncadd (!%p8820_p2), %s6948_s9, 4294967280  ;;  %p23_p4 = scmp.ge.s32.totalorder %s9802_s26, 4   ;;  %s12815_s27 = smov %s9595_s28 }
 0x70d   : > { %s12816_s28 = smov %s9599_s29  ;;  %s12817_s29 = smov %s9812_s22 }
 0x70e   : > { %s12818_s30 = smov %s9802_s26  ;;  %25 = sbr.rel (!%p23_p4) target bundleno = 7 (0x7), region = 113 }
 0x715   :  { %6952 = vsyncpa [#allocation5], 1 }
 0x716   :  { %6954 = vsyncpa [#allocation5 + $0x1], 1 }
 0x717   :  { %6955 = vsyncpa [#allocation8], 1 }
 0x718   :  { %6956 = vsyncpa [#allocation11], 1 }
 0x719   :  { %6957 = vsyncpa [#allocation6], 1 }
 0x71a   :  { %6959 = vsyncpa [#allocation6 + $0x1], 1 }

</bundles_post_ra>
